<compile_context>
chip_gen: v7x
topology: tpu7x:2x2x1
jax: 0.10.0
libtpu: 0.0.40
codegen_flags: <defaults>
</compile_context>

<pallas_src>
import jax
import jax.numpy as jnp
import numpy as np
from jax import lax
from jax.experimental import pallas as pl
from jax.experimental.pallas import tpu as pltpu


# ----------------------------------------------------------------------------
# Pallas kernel: all LSTM layers fused, time recurrence inside the kernel
# ----------------------------------------------------------------------------
def _fused_lstm_kernel(gates0_ref, wih_ref, whh_ref, b_ref, out_ref,
                       seq_scr, gate_scr):
    """Fused multi-layer LSTM recurrence for one batch block.

    gates0_ref : (T, Bb, 4H) f32  layer-0 input projection + bias (hoisted)
    wih_ref    : (max(L-1,1), H, 4H)  transposed W_ih for layers 1..L-1
    whh_ref    : (L, H, 4H)           transposed W_hh for all layers
    b_ref      : (max(L-1,1), 1, 4H)  b_ih + b_hh for layers 1..L-1 (f32)
    out_ref    : (Bb, H) f32          h[-1] of the last layer
    seq_scr    : (T, Bb, H) f32 VMEM  current layer's output sequence
    gate_scr   : (T, Bb, 4H) f32 VMEM precomputed input gates of next layer

    Gate column order is (i, f, o, g): one sigmoid over the first 3H lanes,
    one tanh over the last H lanes.
    """
    T = gates0_ref.shape[0]
    Bb, H = out_ref.shape
    L = whh_ref.shape[0]
    mxu_dtype = whh_ref.dtype
    f32 = jnp.float32
    unroll = T <= 32   # short fixed trip count: give the LLO scheduler visibility

    def run_layer(layer_idx, gate_src_ref, write_seq):
        whh_l = whh_ref[layer_idx]                                   # (H, 4H)

        def step(t, carry):
            h, c = carry
            # Only the recurrent matmul sits on the serial critical path.
            g = gate_src_ref[t] + jnp.dot(
                h.astype(mxu_dtype), whh_l, preferred_element_type=f32)
            act = jax.nn.sigmoid(g[:, :3 * H])                       # i | f | o
            i_g, f_g, o_g = act[:, :H], act[:, H:2 * H], act[:, 2 * H:]
            g_g = jnp.tanh(g[:, 3 * H:])
            c_new = f_g * c + i_g * g_g
            h_new = o_g * jnp.tanh(c_new)
            if write_seq:
                seq_scr[t] = h_new
            return h_new, c_new

        init = (jnp.zeros((Bb, H), f32), jnp.zeros((Bb, H), f32))
        return lax.fori_loop(0, T, step, init, unroll=unroll)

    # ---- layer 0: input projection already hoisted outside the kernel ------
    h, _ = run_layer(0, gates0_ref, write_seq=(L > 1))

    # ---- layers 1 .. L-1 ----------------------------------------------------
    for l in range(1, L):
        wih_l = wih_ref[l - 1]                                        # (H, 4H)
        b_l = b_ref[l - 1]                                            # (1, 4H)

        # Hoisted (non-recurrent) input projection for this layer: T
        # independent matmuls into gate_scr, kept off the serial h->h chain.
        def proj(t, carry, wih_l=wih_l, b_l=b_l):
            x_t = seq_scr[t]                                          # (Bb, H)
            gate_scr[t] = jnp.dot(
                x_t.astype(mxu_dtype), wih_l,
                preferred_element_type=f32) + b_l
            return carry

        lax.fori_loop(0, T, proj, 0, unroll=unroll)
        h, _ = run_layer(l, gate_scr, write_seq=(l < L - 1))

    out_ref[...] = h.astype(out_ref.dtype)


# ----------------------------------------------------------------------------
# Wrapper: weight prep (gate reorder / transpose / bf16) + pallas_call
# ----------------------------------------------------------------------------
def _pick_batch_block(batch):
    # Split the batch across grid programs only when the block stays a
    # multiple of 8 (sublane tiling). The batch axis is "parallel", so v7x
    # runs independent batch shards on its two TensorCores.
    if batch >= 16 and batch % 16 == 0:
        return batch // 2
    return batch


def deep_text_forward(token_ids, params, *, use_bf16_matmul=True):
    """token_ids: (B, T) int32 -> (B, hidden_dim) float32 (== h[-1])."""
    embed_w = params["embed_weight"]                       # (vocab, embed_dim)
    layers = params["lstm_layers"]
    L = len(layers)
    H = layers[0]["w_hh"].shape[1]
    G = 4 * H
    B, T = token_ids.shape
    mxu_dtype = jnp.bfloat16 if use_bf16_matmul else jnp.float32

    # Reorder PyTorch's (i, f, g, o) gate blocks to (i, f, o, g).
    def reorder(a):                                        # a: (4H, ...) axis 0
        return jnp.concatenate(
            [a[0:H], a[H:2 * H], a[3 * H:4 * H], a[2 * H:3 * H]], axis=0)

    # 1. embedding lookup (padding_idx row is zero in embed_w)
    x = jnp.take(embed_w, token_ids, axis=0).astype(jnp.float32)   # (B, T, E)

    # 2. layer-0 input projection + bias hoisted out of the recurrence:
    #    one MXU-friendly (B*T, E) @ (E, 4H) matmul, emitted time-major.
    l0 = layers[0]
    wih0_t = reorder(l0["w_ih"]).T.astype(jnp.float32)              # (E, 4H)
    b0 = reorder(l0["b_ih"] + l0["b_hh"]).reshape(1, 1, G).astype(jnp.float32)
    gates0 = jnp.einsum("bte,eg->tbg", x, wih0_t,
                        preferred_element_type=jnp.float32) + b0    # (T, B, 4H)

    # 3. stacked recurrent weights (all layers) / input weights (layers > 0)
    whh_all = jnp.stack([reorder(l["w_hh"]).T for l in layers]).astype(mxu_dtype)
    if L > 1:
        wih_rest = jnp.stack(
            [reorder(l["w_ih"]).T for l in layers[1:]]).astype(mxu_dtype)
        b_rest = jnp.stack(
            [reorder(l["b_ih"] + l["b_hh"]).reshape(1, G) for l in layers[1:]]
        ).astype(jnp.float32)
    else:   # dummies; never read by the kernel when L == 1
        wih_rest = jnp.zeros((1, H, G), mxu_dtype)
        b_rest = jnp.zeros((1, 1, G), jnp.float32)

    block_b = _pick_batch_block(B)
    grid = (B // block_b,)
    n_rest = max(L - 1, 1)

    out = pl.pallas_call(
        _fused_lstm_kernel,
        out_shape=jax.ShapeDtypeStruct((B, H), jnp.float32),
        grid_spec=pltpu.PrefetchScalarGridSpec(
            num_scalar_prefetch=0,
            grid=grid,
            in_specs=[
                pl.BlockSpec((T, block_b, G), lambda b: (0, b, 0)),   # gates0
                pl.BlockSpec((n_rest, H, G), lambda b: (0, 0, 0)),    # W_ih 1..L-1
                pl.BlockSpec((L, H, G), lambda b: (0, 0, 0)),         # W_hh all
                pl.BlockSpec((n_rest, 1, G), lambda b: (0, 0, 0)),    # biases 1..L-1
            ],
            out_specs=pl.BlockSpec((block_b, H), lambda b: (b, 0)),
            scratch_shapes=[
                pltpu.VMEM((T, block_b, H), jnp.float32),   # layer output seq
                pltpu.VMEM((T, block_b, G), jnp.float32),   # next layer's gates
            ],
        ),
        # Batch blocks are independent -> "parallel"; the time recurrence lives
        # entirely inside the kernel, so there is no serial grid axis.
        compiler_params=pltpu.CompilerParams(
            dimension_semantics=("parallel",)),
    )(gates0, wih_rest, whh_all, b_rest)

    # TODO(synk): bidirectional=True and the optional MLP text head are not
    # implemented (both are off in the DeepText default config exercised here).
    return out


# ----------------------------------------------------------------------------
# Pure-JAX reference (lax.scan LSTM, PyTorch gate order) for correctness check
# ----------------------------------------------------------------------------
def _lstm_layer_ref(x, w_ih, w_hh, b_ih, b_hh):
    B, T, _ = x.shape
    H = w_hh.shape[1]
    wih_t, whh_t = w_ih.T, w_hh.T
    b = b_ih + b_hh

    def step(carry, x_t):
        h, c = carry
        gates = x_t @ wih_t + h @ whh_t + b
        i = jax.nn.sigmoid(gates[:, 0 * H:1 * H])
        f = jax.nn.sigmoid(gates[:, 1 * H:2 * H])
        g = jnp.tanh(gates[:, 2 * H:3 * H])
        o = jax.nn.sigmoid(gates[:, 3 * H:4 * H])
        c_new = f * c + i * g
        h_new = o * jnp.tanh(c_new)
        return (h_new, c_new), h_new

    init = (jnp.zeros((B, H), jnp.float32), jnp.zeros((B, H), jnp.float32))
    (_, _), outs = jax.lax.scan(step, init, jnp.swapaxes(x, 0, 1))
    return jnp.swapaxes(outs, 0, 1)


def deep_text_forward_ref(token_ids, params):
    x = jnp.take(params["embed_weight"], token_ids, axis=0)
    for layer in params["lstm_layers"]:
        x = _lstm_layer_ref(x, layer["w_ih"], layer["w_hh"],
                            layer["b_ih"], layer["b_hh"])
    return x[:, -1, :]


# ----------------------------------------------------------------------------
# Deterministic parameter init (shapes follow DeepText.__init__)
# ----------------------------------------------------------------------------
def init_params(key, vocab_size, embed_dim, hidden_dim, n_layers, padding_idx):
    keys = jax.random.split(key, 1 + 4 * n_layers)
    # nn.Embedding: N(0,1), zero row at padding_idx
    embed_w = jax.random.normal(keys[0], (vocab_size, embed_dim), jnp.float32)
    embed_w = embed_w.at[padding_idx].set(0.0)

    layers = []
    bound = 1.0 / np.sqrt(hidden_dim)
    for l in range(n_layers):
        d_in = embed_dim if l == 0 else hidden_dim
        k = keys[1 + 4 * l: 1 + 4 * (l + 1)]
        layers.append({
            "w_ih": jax.random.uniform(k[0], (4 * hidden_dim, d_in),
                                       jnp.float32, -bound, bound),
            "w_hh": jax.random.uniform(k[1], (4 * hidden_dim, hidden_dim),
                                       jnp.float32, -bound, bound),
            "b_ih": jax.random.uniform(k[2], (4 * hidden_dim,),
                                       jnp.float32, -bound, bound),
            "b_hh": jax.random.uniform(k[3], (4 * hidden_dim,),
                                       jnp.float32, -bound, bound),
        })
    return {"embed_weight": embed_w, "lstm_layers": layers}


if __name__ == "__main__":
    # Small shapes consistent with DeepText defaults
    B, T = 2, 8
    vocab_size, embed_dim, hidden_dim, n_layers = 32, 16, 32, 3
    padding_idx = 1

    key = jax.random.PRNGKey(0)
    k_tok, k_param = jax.random.split(key)
    params = init_params(k_param, vocab_size, embed_dim, hidden_dim,
                         n_layers, padding_idx)

    # token ids (with some padding tokens)
    token_ids = jax.random.randint(k_tok, (B, T), 0, vocab_size, jnp.int32)
    token_ids = token_ids.at[:, -2:].set(padding_idx)

    ref = jax.block_until_ready(deep_text_forward_ref(token_ids, params))

    # f32 MXU path: tight check of the kernel structure against the reference.
    out_f32 = jax.block_until_ready(
        deep_text_forward(token_ids, params, use_bf16_matmul=False))
    np.testing.assert_allclose(np.asarray(out_f32), np.asarray(ref),
                               rtol=2e-4, atol=2e-5)

    # bf16-weight MXU path (fast path on v6e/v7x): f32 accumulation and f32
    # cell math; looser tolerance only accounts for bf16 operand rounding.
    out_bf16 = jax.block_until_ready(
        deep_text_forward(token_ids, params, use_bf16_matmul=True))
    np.testing.assert_allclose(np.asarray(out_bf16), np.asarray(ref),
                               rtol=5e-2, atol=5e-2)

    assert out_bf16.shape == (B, hidden_dim)
    print("KERNEL_OK")
</pallas_src>

<mosaic_0001>
module attributes {stable_mosaic.version = 11 : i64} {
  func.func @_fused_lstm_kernel(%arg0: i32, %arg1: memref<8x2x128xf32, #tpu.memory_space<vmem>>, %arg2: memref<2x32x128xf32, #tpu.memory_space<vmem>>, %arg3: memref<3x32x128xf32, #tpu.memory_space<vmem>>, %arg4: memref<2x1x128xf32, #tpu.memory_space<vmem>>, %arg5: memref<2x32xf32, #tpu.memory_space<vmem>>, %arg6: memref<8x2x32xf32, #tpu.memory_space<vmem>>, %arg7: memref<8x2x128xf32, #tpu.memory_space<vmem>>) attributes {dimension_semantics = [#tpu.dimension_semantics<parallel>], iteration_bounds = array<i64: 1>, scalar_prefetch = 0 : i64, scratch_operands = 2 : i64, tpu.core_type = #tpu.core_type<tc>, window_params = [{transform_indices = @transform_0, window_bounds = array<i64: 8, 2, 128>}, {pipeline_mode = #tpu.pipeline_mode<synchronous>, transform_indices = @transform_1, window_bounds = array<i64: 2, 32, 128>}, {pipeline_mode = #tpu.pipeline_mode<synchronous>, transform_indices = @transform_2, window_bounds = array<i64: 3, 32, 128>}, {pipeline_mode = #tpu.pipeline_mode<synchronous>, transform_indices = @transform_3, window_bounds = array<i64: 2, 1, 128>}, {transform_indices = @transform_4, window_bounds = array<i64: 2, 32>}]} {
    %c0 = arith.constant 0 : index
    %c0_0 = arith.constant 0 : index
    %c0_1 = arith.constant 0 : index
    %0 = vector.load %arg3[%c0, %c0_0, %c0_1] : memref<3x32x128xf32, #tpu.memory_space<vmem>>, vector<1x32x128xf32>
    %1 = vector.shape_cast %0 : vector<1x32x128xf32> to vector<32x128xf32>
    %cst = arith.constant 0.000000e+00 : f32
    %2 = vector.broadcast %cst : f32 to vector<2x32xf32>
    %cst_2 = arith.constant 0.000000e+00 : f32
    %3 = vector.broadcast %cst_2 : f32 to vector<2x32xf32>
    %c0_i32 = arith.constant 0 : i32
    %4 = arith.index_cast %c0_i32 : i32 to index
    %c0_3 = arith.constant 0 : index
    %c0_4 = arith.constant 0 : index
    %5 = vector.load %arg1[%4, %c0_3, %c0_4] : memref<8x2x128xf32, #tpu.memory_space<vmem>>, vector<1x2x128xf32>
    %6 = vector.shape_cast %5 : vector<1x2x128xf32> to vector<2x128xf32>
    %cst_5 = arith.constant dense<0.000000e+00> : vector<2x128xf32>
    %7 = tpu.matmul %2, %1, %cst_5 {dimension_numbers = #tpu.dot_dimension_numbers<[1], [0], [0], [1], [0, 0, 1, 1], [], []>} : vector<2x32xf32>, vector<32x128xf32>, vector<2x128xf32> -> vector<2x128xf32>
    %8 = arith.addf %6, %7 : vector<2x128xf32>
    %9 = vector.extract_strided_slice %8 {offsets = [0, 0], sizes = [2, 96], strides = [1, 1]} : vector<2x128xf32> to vector<2x96xf32>
    %10 = arith.negf %9 : vector<2x96xf32>
    %11 = math.exp %10 : vector<2x96xf32>
    %cst_6 = arith.constant 1.000000e+00 : f32
    %12 = vector.broadcast %cst_6 : f32 to vector<2x96xf32>
    %13 = arith.addf %12, %11 : vector<2x96xf32>
    %14 = arith.divf %12, %13 : vector<2x96xf32>
    %15 = vector.extract_strided_slice %14 {offsets = [0, 0], sizes = [2, 32], strides = [1, 1]} : vector<2x96xf32> to vector<2x32xf32>
    %16 = vector.extract_strided_slice %14 {offsets = [0, 32], sizes = [2, 32], strides = [1, 1]} : vector<2x96xf32> to vector<2x32xf32>
    %17 = vector.extract_strided_slice %14 {offsets = [0, 64], sizes = [2, 32], strides = [1, 1]} : vector<2x96xf32> to vector<2x32xf32>
    %18 = vector.extract_strided_slice %8 {offsets = [0, 96], sizes = [2, 32], strides = [1, 1]} : vector<2x128xf32> to vector<2x32xf32>
    %19 = math.tanh %18 : vector<2x32xf32>
    %20 = arith.mulf %16, %3 : vector<2x32xf32>
    %21 = arith.mulf %15, %19 : vector<2x32xf32>
    %22 = arith.addf %20, %21 : vector<2x32xf32>
    %23 = math.tanh %22 : vector<2x32xf32>
    %24 = arith.mulf %17, %23 : vector<2x32xf32>
    %25 = arith.index_cast %c0_i32 : i32 to index
    %c0_7 = arith.constant 0 : index
    %c0_8 = arith.constant 0 : index
    %26 = vector.load %arg6[%25, %c0_7, %c0_8] : memref<8x2x32xf32, #tpu.memory_space<vmem>>, vector<1x2x32xf32>
    %27 = vector.shape_cast %26 : vector<1x2x32xf32> to vector<2x32xf32>
    %28 = vector.shape_cast %24 : vector<2x32xf32> to vector<1x2x32xf32>
    tpu.vector_store %arg6[%25, %c0_7, %c0_8], %28 {strides = array<i32>} : memref<8x2x32xf32, #tpu.memory_space<vmem>>, vector<1x2x32xf32>,
    %c1_i32 = arith.constant 1 : i32
    %29 = arith.index_cast %c1_i32 : i32 to index
    %c0_9 = arith.constant 0 : index
    %c0_10 = arith.constant 0 : index
    %30 = vector.load %arg1[%29, %c0_9, %c0_10] : memref<8x2x128xf32, #tpu.memory_space<vmem>>, vector<1x2x128xf32>
    %31 = vector.shape_cast %30 : vector<1x2x128xf32> to vector<2x128xf32>
    %cst_11 = arith.constant dense<0.000000e+00> : vector<2x128xf32>
    %32 = tpu.matmul %24, %1, %cst_11 {dimension_numbers = #tpu.dot_dimension_numbers<[1], [0], [0], [1], [0, 0, 1, 1], [], []>} : vector<2x32xf32>, vector<32x128xf32>, vector<2x128xf32> -> vector<2x128xf32>
    %33 = arith.addf %31, %32 : vector<2x128xf32>
    %34 = vector.extract_strided_slice %33 {offsets = [0, 0], sizes = [2, 96], strides = [1, 1]} : vector<2x128xf32> to vector<2x96xf32>
    %35 = arith.negf %34 : vector<2x96xf32>
    %36 = math.exp %35 : vector<2x96xf32>
    %cst_12 = arith.constant 1.000000e+00 : f32
    %37 = vector.broadcast %cst_12 : f32 to vector<2x96xf32>
    %38 = arith.addf %37, %36 : vector<2x96xf32>
    %39 = arith.divf %37, %38 : vector<2x96xf32>
    %40 = vector.extract_strided_slice %39 {offsets = [0, 0], sizes = [2, 32], strides = [1, 1]} : vector<2x96xf32> to vector<2x32xf32>
    %41 = vector.extract_strided_slice %39 {offsets = [0, 32], sizes = [2, 32], strides = [1, 1]} : vector<2x96xf32> to vector<2x32xf32>
    %42 = vector.extract_strided_slice %39 {offsets = [0, 64], sizes = [2, 32], strides = [1, 1]} : vector<2x96xf32> to vector<2x32xf32>
    %43 = vector.extract_strided_slice %33 {offsets = [0, 96], sizes = [2, 32], strides = [1, 1]} : vector<2x128xf32> to vector<2x32xf32>
    %44 = math.tanh %43 : vector<2x32xf32>
    %45 = arith.mulf %41, %22 : vector<2x32xf32>
    %46 = arith.mulf %40, %44 : vector<2x32xf32>
    %47 = arith.addf %45, %46 : vector<2x32xf32>
    %48 = math.tanh %47 : vector<2x32xf32>
    %49 = arith.mulf %42, %48 : vector<2x32xf32>
    %50 = arith.index_cast %c1_i32 : i32 to index
    %c0_13 = arith.constant 0 : index
    %c0_14 = arith.constant 0 : index
    %51 = vector.load %arg6[%50, %c0_13, %c0_14] : memref<8x2x32xf32, #tpu.memory_space<vmem>>, vector<1x2x32xf32>
    %52 = vector.shape_cast %51 : vector<1x2x32xf32> to vector<2x32xf32>
    %53 = vector.shape_cast %49 : vector<2x32xf32> to vector<1x2x32xf32>
    tpu.vector_store %arg6[%50, %c0_13, %c0_14], %53 {strides = array<i32>} : memref<8x2x32xf32, #tpu.memory_space<vmem>>, vector<1x2x32xf32>,
    %c2_i32 = arith.constant 2 : i32
    %54 = arith.index_cast %c2_i32 : i32 to index
    %c0_15 = arith.constant 0 : index
    %c0_16 = arith.constant 0 : index
    %55 = vector.load %arg1[%54, %c0_15, %c0_16] : memref<8x2x128xf32, #tpu.memory_space<vmem>>, vector<1x2x128xf32>
    %56 = vector.shape_cast %55 : vector<1x2x128xf32> to vector<2x128xf32>
    %cst_17 = arith.constant dense<0.000000e+00> : vector<2x128xf32>
    %57 = tpu.matmul %49, %1, %cst_17 {dimension_numbers = #tpu.dot_dimension_numbers<[1], [0], [0], [1], [0, 0, 1, 1], [], []>} : vector<2x32xf32>, vector<32x128xf32>, vector<2x128xf32> -> vector<2x128xf32>
    %58 = arith.addf %56, %57 : vector<2x128xf32>
    %59 = vector.extract_strided_slice %58 {offsets = [0, 0], sizes = [2, 96], strides = [1, 1]} : vector<2x128xf32> to vector<2x96xf32>
    %60 = arith.negf %59 : vector<2x96xf32>
    %61 = math.exp %60 : vector<2x96xf32>
    %cst_18 = arith.constant 1.000000e+00 : f32
    %62 = vector.broadcast %cst_18 : f32 to vector<2x96xf32>
    %63 = arith.addf %62, %61 : vector<2x96xf32>
    %64 = arith.divf %62, %63 : vector<2x96xf32>
    %65 = vector.extract_strided_slice %64 {offsets = [0, 0], sizes = [2, 32], strides = [1, 1]} : vector<2x96xf32> to vector<2x32xf32>
    %66 = vector.extract_strided_slice %64 {offsets = [0, 32], sizes = [2, 32], strides = [1, 1]} : vector<2x96xf32> to vector<2x32xf32>
    %67 = vector.extract_strided_slice %64 {offsets = [0, 64], sizes = [2, 32], strides = [1, 1]} : vector<2x96xf32> to vector<2x32xf32>
    %68 = vector.extract_strided_slice %58 {offsets = [0, 96], sizes = [2, 32], strides = [1, 1]} : vector<2x128xf32> to vector<2x32xf32>
    %69 = math.tanh %68 : vector<2x32xf32>
    %70 = arith.mulf %66, %47 : vector<2x32xf32>
    %71 = arith.mulf %65, %69 : vector<2x32xf32>
    %72 = arith.addf %70, %71 : vector<2x32xf32>
    %73 = math.tanh %72 : vector<2x32xf32>
    %74 = arith.mulf %67, %73 : vector<2x32xf32>
    %75 = arith.index_cast %c2_i32 : i32 to index
    %c0_19 = arith.constant 0 : index
    %c0_20 = arith.constant 0 : index
    %76 = vector.load %arg6[%75, %c0_19, %c0_20] : memref<8x2x32xf32, #tpu.memory_space<vmem>>, vector<1x2x32xf32>
    %77 = vector.shape_cast %76 : vector<1x2x32xf32> to vector<2x32xf32>
    %78 = vector.shape_cast %74 : vector<2x32xf32> to vector<1x2x32xf32>
    tpu.vector_store %arg6[%75, %c0_19, %c0_20], %78 {strides = array<i32>} : memref<8x2x32xf32, #tpu.memory_space<vmem>>, vector<1x2x32xf32>,
    %c3_i32 = arith.constant 3 : i32
    %79 = arith.index_cast %c3_i32 : i32 to index
    %c0_21 = arith.constant 0 : index
    %c0_22 = arith.constant 0 : index
    %80 = vector.load %arg1[%79, %c0_21, %c0_22] : memref<8x2x128xf32, #tpu.memory_space<vmem>>, vector<1x2x128xf32>
    %81 = vector.shape_cast %80 : vector<1x2x128xf32> to vector<2x128xf32>
    %cst_23 = arith.constant dense<0.000000e+00> : vector<2x128xf32>
    %82 = tpu.matmul %74, %1, %cst_23 {dimension_numbers = #tpu.dot_dimension_numbers<[1], [0], [0], [1], [0, 0, 1, 1], [], []>} : vector<2x32xf32>, vector<32x128xf32>, vector<2x128xf32> -> vector<2x128xf32>
    %83 = arith.addf %81, %82 : vector<2x128xf32>
    %84 = vector.extract_strided_slice %83 {offsets = [0, 0], sizes = [2, 96], strides = [1, 1]} : vector<2x128xf32> to vector<2x96xf32>
    %85 = arith.negf %84 : vector<2x96xf32>
    %86 = math.exp %85 : vector<2x96xf32>
    %cst_24 = arith.constant 1.000000e+00 : f32
    %87 = vector.broadcast %cst_24 : f32 to vector<2x96xf32>
    %88 = arith.addf %87, %86 : vector<2x96xf32>
    %89 = arith.divf %87, %88 : vector<2x96xf32>
    %90 = vector.extract_strided_slice %89 {offsets = [0, 0], sizes = [2, 32], strides = [1, 1]} : vector<2x96xf32> to vector<2x32xf32>
    %91 = vector.extract_strided_slice %89 {offsets = [0, 32], sizes = [2, 32], strides = [1, 1]} : vector<2x96xf32> to vector<2x32xf32>
    %92 = vector.extract_strided_slice %89 {offsets = [0, 64], sizes = [2, 32], strides = [1, 1]} : vector<2x96xf32> to vector<2x32xf32>
    %93 = vector.extract_strided_slice %83 {offsets = [0, 96], sizes = [2, 32], strides = [1, 1]} : vector<2x128xf32> to vector<2x32xf32>
    %94 = math.tanh %93 : vector<2x32xf32>
    %95 = arith.mulf %91, %72 : vector<2x32xf32>
    %96 = arith.mulf %90, %94 : vector<2x32xf32>
    %97 = arith.addf %95, %96 : vector<2x32xf32>
    %98 = math.tanh %97 : vector<2x32xf32>
    %99 = arith.mulf %92, %98 : vector<2x32xf32>
    %100 = arith.index_cast %c3_i32 : i32 to index
    %c0_25 = arith.constant 0 : index
    %c0_26 = arith.constant 0 : index
    %101 = vector.load %arg6[%100, %c0_25, %c0_26] : memref<8x2x32xf32, #tpu.memory_space<vmem>>, vector<1x2x32xf32>
    %102 = vector.shape_cast %101 : vector<1x2x32xf32> to vector<2x32xf32>
    %103 = vector.shape_cast %99 : vector<2x32xf32> to vector<1x2x32xf32>
    tpu.vector_store %arg6[%100, %c0_25, %c0_26], %103 {strides = array<i32>} : memref<8x2x32xf32, #tpu.memory_space<vmem>>, vector<1x2x32xf32>,
    %c4_i32 = arith.constant 4 : i32
    %104 = arith.index_cast %c4_i32 : i32 to index
    %c0_27 = arith.constant 0 : index
    %c0_28 = arith.constant 0 : index
    %105 = vector.load %arg1[%104, %c0_27, %c0_28] : memref<8x2x128xf32, #tpu.memory_space<vmem>>, vector<1x2x128xf32>
    %106 = vector.shape_cast %105 : vector<1x2x128xf32> to vector<2x128xf32>
    %cst_29 = arith.constant dense<0.000000e+00> : vector<2x128xf32>
    %107 = tpu.matmul %99, %1, %cst_29 {dimension_numbers = #tpu.dot_dimension_numbers<[1], [0], [0], [1], [0, 0, 1, 1], [], []>} : vector<2x32xf32>, vector<32x128xf32>, vector<2x128xf32> -> vector<2x128xf32>
    %108 = arith.addf %106, %107 : vector<2x128xf32>
    %109 = vector.extract_strided_slice %108 {offsets = [0, 0], sizes = [2, 96], strides = [1, 1]} : vector<2x128xf32> to vector<2x96xf32>
    %110 = arith.negf %109 : vector<2x96xf32>
    %111 = math.exp %110 : vector<2x96xf32>
    %cst_30 = arith.constant 1.000000e+00 : f32
    %112 = vector.broadcast %cst_30 : f32 to vector<2x96xf32>
    %113 = arith.addf %112, %111 : vector<2x96xf32>
    %114 = arith.divf %112, %113 : vector<2x96xf32>
    %115 = vector.extract_strided_slice %114 {offsets = [0, 0], sizes = [2, 32], strides = [1, 1]} : vector<2x96xf32> to vector<2x32xf32>
    %116 = vector.extract_strided_slice %114 {offsets = [0, 32], sizes = [2, 32], strides = [1, 1]} : vector<2x96xf32> to vector<2x32xf32>
    %117 = vector.extract_strided_slice %114 {offsets = [0, 64], sizes = [2, 32], strides = [1, 1]} : vector<2x96xf32> to vector<2x32xf32>
    %118 = vector.extract_strided_slice %108 {offsets = [0, 96], sizes = [2, 32], strides = [1, 1]} : vector<2x128xf32> to vector<2x32xf32>
    %119 = math.tanh %118 : vector<2x32xf32>
    %120 = arith.mulf %116, %97 : vector<2x32xf32>
    %121 = arith.mulf %115, %119 : vector<2x32xf32>
    %122 = arith.addf %120, %121 : vector<2x32xf32>
    %123 = math.tanh %122 : vector<2x32xf32>
    %124 = arith.mulf %117, %123 : vector<2x32xf32>
    %125 = arith.index_cast %c4_i32 : i32 to index
    %c0_31 = arith.constant 0 : index
    %c0_32 = arith.constant 0 : index
    %126 = vector.load %arg6[%125, %c0_31, %c0_32] : memref<8x2x32xf32, #tpu.memory_space<vmem>>, vector<1x2x32xf32>
    %127 = vector.shape_cast %126 : vector<1x2x32xf32> to vector<2x32xf32>
    %128 = vector.shape_cast %124 : vector<2x32xf32> to vector<1x2x32xf32>
    tpu.vector_store %arg6[%125, %c0_31, %c0_32], %128 {strides = array<i32>} : memref<8x2x32xf32, #tpu.memory_space<vmem>>, vector<1x2x32xf32>,
    %c5_i32 = arith.constant 5 : i32
    %129 = arith.index_cast %c5_i32 : i32 to index
    %c0_33 = arith.constant 0 : index
    %c0_34 = arith.constant 0 : index
    %130 = vector.load %arg1[%129, %c0_33, %c0_34] : memref<8x2x128xf32, #tpu.memory_space<vmem>>, vector<1x2x128xf32>
    %131 = vector.shape_cast %130 : vector<1x2x128xf32> to vector<2x128xf32>
    %cst_35 = arith.constant dense<0.000000e+00> : vector<2x128xf32>
    %132 = tpu.matmul %124, %1, %cst_35 {dimension_numbers = #tpu.dot_dimension_numbers<[1], [0], [0], [1], [0, 0, 1, 1], [], []>} : vector<2x32xf32>, vector<32x128xf32>, vector<2x128xf32> -> vector<2x128xf32>
    %133 = arith.addf %131, %132 : vector<2x128xf32>
    %134 = vector.extract_strided_slice %133 {offsets = [0, 0], sizes = [2, 96], strides = [1, 1]} : vector<2x128xf32> to vector<2x96xf32>
    %135 = arith.negf %134 : vector<2x96xf32>
    %136 = math.exp %135 : vector<2x96xf32>
    %cst_36 = arith.constant 1.000000e+00 : f32
    %137 = vector.broadcast %cst_36 : f32 to vector<2x96xf32>
    %138 = arith.addf %137, %136 : vector<2x96xf32>
    %139 = arith.divf %137, %138 : vector<2x96xf32>
    %140 = vector.extract_strided_slice %139 {offsets = [0, 0], sizes = [2, 32], strides = [1, 1]} : vector<2x96xf32> to vector<2x32xf32>
    %141 = vector.extract_strided_slice %139 {offsets = [0, 32], sizes = [2, 32], strides = [1, 1]} : vector<2x96xf32> to vector<2x32xf32>
    %142 = vector.extract_strided_slice %139 {offsets = [0, 64], sizes = [2, 32], strides = [1, 1]} : vector<2x96xf32> to vector<2x32xf32>
    %143 = vector.extract_strided_slice %133 {offsets = [0, 96], sizes = [2, 32], strides = [1, 1]} : vector<2x128xf32> to vector<2x32xf32>
    %144 = math.tanh %143 : vector<2x32xf32>
    %145 = arith.mulf %141, %122 : vector<2x32xf32>
    %146 = arith.mulf %140, %144 : vector<2x32xf32>
    %147 = arith.addf %145, %146 : vector<2x32xf32>
    %148 = math.tanh %147 : vector<2x32xf32>
    %149 = arith.mulf %142, %148 : vector<2x32xf32>
    %150 = arith.index_cast %c5_i32 : i32 to index
    %c0_37 = arith.constant 0 : index
    %c0_38 = arith.constant 0 : index
    %151 = vector.load %arg6[%150, %c0_37, %c0_38] : memref<8x2x32xf32, #tpu.memory_space<vmem>>, vector<1x2x32xf32>
    %152 = vector.shape_cast %151 : vector<1x2x32xf32> to vector<2x32xf32>
    %153 = vector.shape_cast %149 : vector<2x32xf32> to vector<1x2x32xf32>
    tpu.vector_store %arg6[%150, %c0_37, %c0_38], %153 {strides = array<i32>} : memref<8x2x32xf32, #tpu.memory_space<vmem>>, vector<1x2x32xf32>,
    %c6_i32 = arith.constant 6 : i32
    %154 = arith.index_cast %c6_i32 : i32 to index
    %c0_39 = arith.constant 0 : index
    %c0_40 = arith.constant 0 : index
    %155 = vector.load %arg1[%154, %c0_39, %c0_40] : memref<8x2x128xf32, #tpu.memory_space<vmem>>, vector<1x2x128xf32>
    %156 = vector.shape_cast %155 : vector<1x2x128xf32> to vector<2x128xf32>
    %cst_41 = arith.constant dense<0.000000e+00> : vector<2x128xf32>
    %157 = tpu.matmul %149, %1, %cst_41 {dimension_numbers = #tpu.dot_dimension_numbers<[1], [0], [0], [1], [0, 0, 1, 1], [], []>} : vector<2x32xf32>, vector<32x128xf32>, vector<2x128xf32> -> vector<2x128xf32>
    %158 = arith.addf %156, %157 : vector<2x128xf32>
    %159 = vector.extract_strided_slice %158 {offsets = [0, 0], sizes = [2, 96], strides = [1, 1]} : vector<2x128xf32> to vector<2x96xf32>
    %160 = arith.negf %159 : vector<2x96xf32>
    %161 = math.exp %160 : vector<2x96xf32>
    %cst_42 = arith.constant 1.000000e+00 : f32
    %162 = vector.broadcast %cst_42 : f32 to vector<2x96xf32>
    %163 = arith.addf %162, %161 : vector<2x96xf32>
    %164 = arith.divf %162, %163 : vector<2x96xf32>
    %165 = vector.extract_strided_slice %164 {offsets = [0, 0], sizes = [2, 32], strides = [1, 1]} : vector<2x96xf32> to vector<2x32xf32>
    %166 = vector.extract_strided_slice %164 {offsets = [0, 32], sizes = [2, 32], strides = [1, 1]} : vector<2x96xf32> to vector<2x32xf32>
    %167 = vector.extract_strided_slice %164 {offsets = [0, 64], sizes = [2, 32], strides = [1, 1]} : vector<2x96xf32> to vector<2x32xf32>
    %168 = vector.extract_strided_slice %158 {offsets = [0, 96], sizes = [2, 32], strides = [1, 1]} : vector<2x128xf32> to vector<2x32xf32>
    %169 = math.tanh %168 : vector<2x32xf32>
    %170 = arith.mulf %166, %147 : vector<2x32xf32>
    %171 = arith.mulf %165, %169 : vector<2x32xf32>
    %172 = arith.addf %170, %171 : vector<2x32xf32>
    %173 = math.tanh %172 : vector<2x32xf32>
    %174 = arith.mulf %167, %173 : vector<2x32xf32>
    %175 = arith.index_cast %c6_i32 : i32 to index
    %c0_43 = arith.constant 0 : index
    %c0_44 = arith.constant 0 : index
    %176 = vector.load %arg6[%175, %c0_43, %c0_44] : memref<8x2x32xf32, #tpu.memory_space<vmem>>, vector<1x2x32xf32>
    %177 = vector.shape_cast %176 : vector<1x2x32xf32> to vector<2x32xf32>
    %178 = vector.shape_cast %174 : vector<2x32xf32> to vector<1x2x32xf32>
    tpu.vector_store %arg6[%175, %c0_43, %c0_44], %178 {strides = array<i32>} : memref<8x2x32xf32, #tpu.memory_space<vmem>>, vector<1x2x32xf32>,
    %c7_i32 = arith.constant 7 : i32
    %179 = arith.index_cast %c7_i32 : i32 to index
    %c0_45 = arith.constant 0 : index
    %c0_46 = arith.constant 0 : index
    %180 = vector.load %arg1[%179, %c0_45, %c0_46] : memref<8x2x128xf32, #tpu.memory_space<vmem>>, vector<1x2x128xf32>
    %181 = vector.shape_cast %180 : vector<1x2x128xf32> to vector<2x128xf32>
    %cst_47 = arith.constant dense<0.000000e+00> : vector<2x128xf32>
    %182 = tpu.matmul %174, %1, %cst_47 {dimension_numbers = #tpu.dot_dimension_numbers<[1], [0], [0], [1], [0, 0, 1, 1], [], []>} : vector<2x32xf32>, vector<32x128xf32>, vector<2x128xf32> -> vector<2x128xf32>
    %183 = arith.addf %181, %182 : vector<2x128xf32>
    %184 = vector.extract_strided_slice %183 {offsets = [0, 0], sizes = [2, 96], strides = [1, 1]} : vector<2x128xf32> to vector<2x96xf32>
    %185 = arith.negf %184 : vector<2x96xf32>
    %186 = math.exp %185 : vector<2x96xf32>
    %cst_48 = arith.constant 1.000000e+00 : f32
    %187 = vector.broadcast %cst_48 : f32 to vector<2x96xf32>
    %188 = arith.addf %187, %186 : vector<2x96xf32>
    %189 = arith.divf %187, %188 : vector<2x96xf32>
    %190 = vector.extract_strided_slice %189 {offsets = [0, 0], sizes = [2, 32], strides = [1, 1]} : vector<2x96xf32> to vector<2x32xf32>
    %191 = vector.extract_strided_slice %189 {offsets = [0, 32], sizes = [2, 32], strides = [1, 1]} : vector<2x96xf32> to vector<2x32xf32>
    %192 = vector.extract_strided_slice %189 {offsets = [0, 64], sizes = [2, 32], strides = [1, 1]} : vector<2x96xf32> to vector<2x32xf32>
    %193 = vector.extract_strided_slice %183 {offsets = [0, 96], sizes = [2, 32], strides = [1, 1]} : vector<2x128xf32> to vector<2x32xf32>
    %194 = math.tanh %193 : vector<2x32xf32>
    %195 = arith.mulf %191, %172 : vector<2x32xf32>
    %196 = arith.mulf %190, %194 : vector<2x32xf32>
    %197 = arith.addf %195, %196 : vector<2x32xf32>
    %198 = math.tanh %197 : vector<2x32xf32>
    %199 = arith.mulf %192, %198 : vector<2x32xf32>
    %200 = arith.index_cast %c7_i32 : i32 to index
    %c0_49 = arith.constant 0 : index
    %c0_50 = arith.constant 0 : index
    %201 = vector.load %arg6[%200, %c0_49, %c0_50] : memref<8x2x32xf32, #tpu.memory_space<vmem>>, vector<1x2x32xf32>
    %202 = vector.shape_cast %201 : vector<1x2x32xf32> to vector<2x32xf32>
    %203 = vector.shape_cast %199 : vector<2x32xf32> to vector<1x2x32xf32>
    tpu.vector_store %arg6[%200, %c0_49, %c0_50], %203 {strides = array<i32>} : memref<8x2x32xf32, #tpu.memory_space<vmem>>, vector<1x2x32xf32>,
    %c8_i32 = arith.constant 8 : i32
    %c0_51 = arith.constant 0 : index
    %c0_52 = arith.constant 0 : index
    %c0_53 = arith.constant 0 : index
    %204 = vector.load %arg2[%c0_51, %c0_52, %c0_53] : memref<2x32x128xf32, #tpu.memory_space<vmem>>, vector<1x32x128xf32>
    %205 = vector.shape_cast %204 : vector<1x32x128xf32> to vector<32x128xf32>
    %c0_54 = arith.constant 0 : index
    %c0_55 = arith.constant 0 : index
    %c0_56 = arith.constant 0 : index
    %206 = vector.load %arg4[%c0_54, %c0_55, %c0_56] : memref<2x1x128xf32, #tpu.memory_space<vmem>>, vector<1x1x128xf32>
    %207 = vector.shape_cast %206 : vector<1x1x128xf32> to vector<1x128xf32>
    %c0_i32_57 = arith.constant 0 : i32
    %208 = arith.index_cast %c0_i32_57 : i32 to index
    %c0_58 = arith.constant 0 : index
    %c0_59 = arith.constant 0 : index
    %209 = vector.load %arg6[%208, %c0_58, %c0_59] : memref<8x2x32xf32, #tpu.memory_space<vmem>>, vector<1x2x32xf32>
    %210 = vector.shape_cast %209 : vector<1x2x32xf32> to vector<2x32xf32>
    %cst_60 = arith.constant dense<0.000000e+00> : vector<2x128xf32>
    %211 = tpu.matmul %210, %205, %cst_60 {dimension_numbers = #tpu.dot_dimension_numbers<[1], [0], [0], [1], [0, 0, 1, 1], [], []>} : vector<2x32xf32>, vector<32x128xf32>, vector<2x128xf32> -> vector<2x128xf32>
    %212 = vector.broadcast %207 : vector<1x128xf32> to vector<2x128xf32>
    %213 = arith.addf %211, %212 : vector<2x128xf32>
    %214 = arith.index_cast %c0_i32_57 : i32 to index
    %c0_61 = arith.constant 0 : index
    %c0_62 = arith.constant 0 : index
    %215 = vector.load %arg7[%214, %c0_61, %c0_62] : memref<8x2x128xf32, #tpu.memory_space<vmem>>, vector<1x2x128xf32>
    %216 = vector.shape_cast %215 : vector<1x2x128xf32> to vector<2x128xf32>
    %217 = vector.shape_cast %213 : vector<2x128xf32> to vector<1x2x128xf32>
    tpu.vector_store %arg7[%214, %c0_61, %c0_62], %217 {strides = array<i32>} : memref<8x2x128xf32, #tpu.memory_space<vmem>>, vector<1x2x128xf32>,
    %c1_i32_63 = arith.constant 1 : i32
    %218 = arith.index_cast %c1_i32_63 : i32 to index
    %c0_64 = arith.constant 0 : index
    %c0_65 = arith.constant 0 : index
    %219 = vector.load %arg6[%218, %c0_64, %c0_65] : memref<8x2x32xf32, #tpu.memory_space<vmem>>, vector<1x2x32xf32>
    %220 = vector.shape_cast %219 : vector<1x2x32xf32> to vector<2x32xf32>
    %cst_66 = arith.constant dense<0.000000e+00> : vector<2x128xf32>
    %221 = tpu.matmul %220, %205, %cst_66 {dimension_numbers = #tpu.dot_dimension_numbers<[1], [0], [0], [1], [0, 0, 1, 1], [], []>} : vector<2x32xf32>, vector<32x128xf32>, vector<2x128xf32> -> vector<2x128xf32>
    %222 = vector.broadcast %207 : vector<1x128xf32> to vector<2x128xf32>
    %223 = arith.addf %221, %222 : vector<2x128xf32>
    %224 = arith.index_cast %c1_i32_63 : i32 to index
    %c0_67 = arith.constant 0 : index
    %c0_68 = arith.constant 0 : index
    %225 = vector.load %arg7[%224, %c0_67, %c0_68] : memref<8x2x128xf32, #tpu.memory_space<vmem>>, vector<1x2x128xf32>
    %226 = vector.shape_cast %225 : vector<1x2x128xf32> to vector<2x128xf32>
    %227 = vector.shape_cast %223 : vector<2x128xf32> to vector<1x2x128xf32>
    tpu.vector_store %arg7[%224, %c0_67, %c0_68], %227 {strides = array<i32>} : memref<8x2x128xf32, #tpu.memory_space<vmem>>, vector<1x2x128xf32>,
    %c2_i32_69 = arith.constant 2 : i32
    %228 = arith.index_cast %c2_i32_69 : i32 to index
    %c0_70 = arith.constant 0 : index
    %c0_71 = arith.constant 0 : index
    %229 = vector.load %arg6[%228, %c0_70, %c0_71] : memref<8x2x32xf32, #tpu.memory_space<vmem>>, vector<1x2x32xf32>
    %230 = vector.shape_cast %229 : vector<1x2x32xf32> to vector<2x32xf32>
    %cst_72 = arith.constant dense<0.000000e+00> : vector<2x128xf32>
    %231 = tpu.matmul %230, %205, %cst_72 {dimension_numbers = #tpu.dot_dimension_numbers<[1], [0], [0], [1], [0, 0, 1, 1], [], []>} : vector<2x32xf32>, vector<32x128xf32>, vector<2x128xf32> -> vector<2x128xf32>
    %232 = vector.broadcast %207 : vector<1x128xf32> to vector<2x128xf32>
    %233 = arith.addf %231, %232 : vector<2x128xf32>
    %234 = arith.index_cast %c2_i32_69 : i32 to index
    %c0_73 = arith.constant 0 : index
    %c0_74 = arith.constant 0 : index
    %235 = vector.load %arg7[%234, %c0_73, %c0_74] : memref<8x2x128xf32, #tpu.memory_space<vmem>>, vector<1x2x128xf32>
    %236 = vector.shape_cast %235 : vector<1x2x128xf32> to vector<2x128xf32>
    %237 = vector.shape_cast %233 : vector<2x128xf32> to vector<1x2x128xf32>
    tpu.vector_store %arg7[%234, %c0_73, %c0_74], %237 {strides = array<i32>} : memref<8x2x128xf32, #tpu.memory_space<vmem>>, vector<1x2x128xf32>,
    %c3_i32_75 = arith.constant 3 : i32
    %238 = arith.index_cast %c3_i32_75 : i32 to index
    %c0_76 = arith.constant 0 : index
    %c0_77 = arith.constant 0 : index
    %239 = vector.load %arg6[%238, %c0_76, %c0_77] : memref<8x2x32xf32, #tpu.memory_space<vmem>>, vector<1x2x32xf32>
    %240 = vector.shape_cast %239 : vector<1x2x32xf32> to vector<2x32xf32>
    %cst_78 = arith.constant dense<0.000000e+00> : vector<2x128xf32>
    %241 = tpu.matmul %240, %205, %cst_78 {dimension_numbers = #tpu.dot_dimension_numbers<[1], [0], [0], [1], [0, 0, 1, 1], [], []>} : vector<2x32xf32>, vector<32x128xf32>, vector<2x128xf32> -> vector<2x128xf32>
    %242 = vector.broadcast %207 : vector<1x128xf32> to vector<2x128xf32>
    %243 = arith.addf %241, %242 : vector<2x128xf32>
    %244 = arith.index_cast %c3_i32_75 : i32 to index
    %c0_79 = arith.constant 0 : index
    %c0_80 = arith.constant 0 : index
    %245 = vector.load %arg7[%244, %c0_79, %c0_80] : memref<8x2x128xf32, #tpu.memory_space<vmem>>, vector<1x2x128xf32>
    %246 = vector.shape_cast %245 : vector<1x2x128xf32> to vector<2x128xf32>
    %247 = vector.shape_cast %243 : vector<2x128xf32> to vector<1x2x128xf32>
    tpu.vector_store %arg7[%244, %c0_79, %c0_80], %247 {strides = array<i32>} : memref<8x2x128xf32, #tpu.memory_space<vmem>>, vector<1x2x128xf32>,
    %c4_i32_81 = arith.constant 4 : i32
    %248 = arith.index_cast %c4_i32_81 : i32 to index
    %c0_82 = arith.constant 0 : index
    %c0_83 = arith.constant 0 : index
    %249 = vector.load %arg6[%248, %c0_82, %c0_83] : memref<8x2x32xf32, #tpu.memory_space<vmem>>, vector<1x2x32xf32>
    %250 = vector.shape_cast %249 : vector<1x2x32xf32> to vector<2x32xf32>
    %cst_84 = arith.constant dense<0.000000e+00> : vector<2x128xf32>
    %251 = tpu.matmul %250, %205, %cst_84 {dimension_numbers = #tpu.dot_dimension_numbers<[1], [0], [0], [1], [0, 0, 1, 1], [], []>} : vector<2x32xf32>, vector<32x128xf32>, vector<2x128xf32> -> vector<2x128xf32>
    %252 = vector.broadcast %207 : vector<1x128xf32> to vector<2x128xf32>
    %253 = arith.addf %251, %252 : vector<2x128xf32>
    %254 = arith.index_cast %c4_i32_81 : i32 to index
    %c0_85 = arith.constant 0 : index
    %c0_86 = arith.constant 0 : index
    %255 = vector.load %arg7[%254, %c0_85, %c0_86] : memref<8x2x128xf32, #tpu.memory_space<vmem>>, vector<1x2x128xf32>
    %256 = vector.shape_cast %255 : vector<1x2x128xf32> to vector<2x128xf32>
    %257 = vector.shape_cast %253 : vector<2x128xf32> to vector<1x2x128xf32>
    tpu.vector_store %arg7[%254, %c0_85, %c0_86], %257 {strides = array<i32>} : memref<8x2x128xf32, #tpu.memory_space<vmem>>, vector<1x2x128xf32>,
    %c5_i32_87 = arith.constant 5 : i32
    %258 = arith.index_cast %c5_i32_87 : i32 to index
    %c0_88 = arith.constant 0 : index
    %c0_89 = arith.constant 0 : index
    %259 = vector.load %arg6[%258, %c0_88, %c0_89] : memref<8x2x32xf32, #tpu.memory_space<vmem>>, vector<1x2x32xf32>
    %260 = vector.shape_cast %259 : vector<1x2x32xf32> to vector<2x32xf32>
    %cst_90 = arith.constant dense<0.000000e+00> : vector<2x128xf32>
    %261 = tpu.matmul %260, %205, %cst_90 {dimension_numbers = #tpu.dot_dimension_numbers<[1], [0], [0], [1], [0, 0, 1, 1], [], []>} : vector<2x32xf32>, vector<32x128xf32>, vector<2x128xf32> -> vector<2x128xf32>
    %262 = vector.broadcast %207 : vector<1x128xf32> to vector<2x128xf32>
    %263 = arith.addf %261, %262 : vector<2x128xf32>
    %264 = arith.index_cast %c5_i32_87 : i32 to index
    %c0_91 = arith.constant 0 : index
    %c0_92 = arith.constant 0 : index
    %265 = vector.load %arg7[%264, %c0_91, %c0_92] : memref<8x2x128xf32, #tpu.memory_space<vmem>>, vector<1x2x128xf32>
    %266 = vector.shape_cast %265 : vector<1x2x128xf32> to vector<2x128xf32>
    %267 = vector.shape_cast %263 : vector<2x128xf32> to vector<1x2x128xf32>
    tpu.vector_store %arg7[%264, %c0_91, %c0_92], %267 {strides = array<i32>} : memref<8x2x128xf32, #tpu.memory_space<vmem>>, vector<1x2x128xf32>,
    %c6_i32_93 = arith.constant 6 : i32
    %268 = arith.index_cast %c6_i32_93 : i32 to index
    %c0_94 = arith.constant 0 : index
    %c0_95 = arith.constant 0 : index
    %269 = vector.load %arg6[%268, %c0_94, %c0_95] : memref<8x2x32xf32, #tpu.memory_space<vmem>>, vector<1x2x32xf32>
    %270 = vector.shape_cast %269 : vector<1x2x32xf32> to vector<2x32xf32>
    %cst_96 = arith.constant dense<0.000000e+00> : vector<2x128xf32>
    %271 = tpu.matmul %270, %205, %cst_96 {dimension_numbers = #tpu.dot_dimension_numbers<[1], [0], [0], [1], [0, 0, 1, 1], [], []>} : vector<2x32xf32>, vector<32x128xf32>, vector<2x128xf32> -> vector<2x128xf32>
    %272 = vector.broadcast %207 : vector<1x128xf32> to vector<2x128xf32>
    %273 = arith.addf %271, %272 : vector<2x128xf32>
    %274 = arith.index_cast %c6_i32_93 : i32 to index
    %c0_97 = arith.constant 0 : index
    %c0_98 = arith.constant 0 : index
    %275 = vector.load %arg7[%274, %c0_97, %c0_98] : memref<8x2x128xf32, #tpu.memory_space<vmem>>, vector<1x2x128xf32>
    %276 = vector.shape_cast %275 : vector<1x2x128xf32> to vector<2x128xf32>
    %277 = vector.shape_cast %273 : vector<2x128xf32> to vector<1x2x128xf32>
    tpu.vector_store %arg7[%274, %c0_97, %c0_98], %277 {strides = array<i32>} : memref<8x2x128xf32, #tpu.memory_space<vmem>>, vector<1x2x128xf32>,
    %c7_i32_99 = arith.constant 7 : i32
    %278 = arith.index_cast %c7_i32_99 : i32 to index
    %c0_100 = arith.constant 0 : index
    %c0_101 = arith.constant 0 : index
    %279 = vector.load %arg6[%278, %c0_100, %c0_101] : memref<8x2x32xf32, #tpu.memory_space<vmem>>, vector<1x2x32xf32>
    %280 = vector.shape_cast %279 : vector<1x2x32xf32> to vector<2x32xf32>
    %cst_102 = arith.constant dense<0.000000e+00> : vector<2x128xf32>
    %281 = tpu.matmul %280, %205, %cst_102 {dimension_numbers = #tpu.dot_dimension_numbers<[1], [0], [0], [1], [0, 0, 1, 1], [], []>} : vector<2x32xf32>, vector<32x128xf32>, vector<2x128xf32> -> vector<2x128xf32>
    %282 = vector.broadcast %207 : vector<1x128xf32> to vector<2x128xf32>
    %283 = arith.addf %281, %282 : vector<2x128xf32>
    %284 = arith.index_cast %c7_i32_99 : i32 to index
    %c0_103 = arith.constant 0 : index
    %c0_104 = arith.constant 0 : index
    %285 = vector.load %arg7[%284, %c0_103, %c0_104] : memref<8x2x128xf32, #tpu.memory_space<vmem>>, vector<1x2x128xf32>
    %286 = vector.shape_cast %285 : vector<1x2x128xf32> to vector<2x128xf32>
    %287 = vector.shape_cast %283 : vector<2x128xf32> to vector<1x2x128xf32>
    tpu.vector_store %arg7[%284, %c0_103, %c0_104], %287 {strides = array<i32>} : memref<8x2x128xf32, #tpu.memory_space<vmem>>, vector<1x2x128xf32>,
    %c8_i32_105 = arith.constant 8 : i32
    %c1 = arith.constant 1 : index
    %c0_106 = arith.constant 0 : index
    %c0_107 = arith.constant 0 : index
    %288 = vector.load %arg3[%c1, %c0_106, %c0_107] : memref<3x32x128xf32, #tpu.memory_space<vmem>>, vector<1x32x128xf32>
    %289 = vector.shape_cast %288 : vector<1x32x128xf32> to vector<32x128xf32>
    %cst_108 = arith.constant 0.000000e+00 : f32
    %290 = vector.broadcast %cst_108 : f32 to vector<2x32xf32>
    %cst_109 = arith.constant 0.000000e+00 : f32
    %291 = vector.broadcast %cst_109 : f32 to vector<2x32xf32>
    %c0_i32_110 = arith.constant 0 : i32
    %292 = arith.index_cast %c0_i32_110 : i32 to index
    %c0_111 = arith.constant 0 : index
    %c0_112 = arith.constant 0 : index
    %293 = vector.load %arg7[%292, %c0_111, %c0_112] : memref<8x2x128xf32, #tpu.memory_space<vmem>>, vector<1x2x128xf32>
    %294 = vector.shape_cast %293 : vector<1x2x128xf32> to vector<2x128xf32>
    %cst_113 = arith.constant dense<0.000000e+00> : vector<2x128xf32>
    %295 = tpu.matmul %290, %289, %cst_113 {dimension_numbers = #tpu.dot_dimension_numbers<[1], [0], [0], [1], [0, 0, 1, 1], [], []>} : vector<2x32xf32>, vector<32x128xf32>, vector<2x128xf32> -> vector<2x128xf32>
    %296 = arith.addf %294, %295 : vector<2x128xf32>
    %297 = vector.extract_strided_slice %296 {offsets = [0, 0], sizes = [2, 96], strides = [1, 1]} : vector<2x128xf32> to vector<2x96xf32>
    %298 = arith.negf %297 : vector<2x96xf32>
    %299 = math.exp %298 : vector<2x96xf32>
    %cst_114 = arith.constant 1.000000e+00 : f32
    %300 = vector.broadcast %cst_114 : f32 to vector<2x96xf32>
    %301 = arith.addf %300, %299 : vector<2x96xf32>
    %302 = arith.divf %300, %301 : vector<2x96xf32>
    %303 = vector.extract_strided_slice %302 {offsets = [0, 0], sizes = [2, 32], strides = [1, 1]} : vector<2x96xf32> to vector<2x32xf32>
    %304 = vector.extract_strided_slice %302 {offsets = [0, 32], sizes = [2, 32], strides = [1, 1]} : vector<2x96xf32> to vector<2x32xf32>
    %305 = vector.extract_strided_slice %302 {offsets = [0, 64], sizes = [2, 32], strides = [1, 1]} : vector<2x96xf32> to vector<2x32xf32>
    %306 = vector.extract_strided_slice %296 {offsets = [0, 96], sizes = [2, 32], strides = [1, 1]} : vector<2x128xf32> to vector<2x32xf32>
    %307 = math.tanh %306 : vector<2x32xf32>
    %308 = arith.mulf %304, %291 : vector<2x32xf32>
    %309 = arith.mulf %303, %307 : vector<2x32xf32>
    %310 = arith.addf %308, %309 : vector<2x32xf32>
    %311 = math.tanh %310 : vector<2x32xf32>
    %312 = arith.mulf %305, %311 : vector<2x32xf32>
    %313 = arith.index_cast %c0_i32_110 : i32 to index
    %c0_115 = arith.constant 0 : index
    %c0_116 = arith.constant 0 : index
    %314 = vector.load %arg6[%313, %c0_115, %c0_116] : memref<8x2x32xf32, #tpu.memory_space<vmem>>, vector<1x2x32xf32>
    %315 = vector.shape_cast %314 : vector<1x2x32xf32> to vector<2x32xf32>
    %316 = vector.shape_cast %312 : vector<2x32xf32> to vector<1x2x32xf32>
    tpu.vector_store %arg6[%313, %c0_115, %c0_116], %316 {strides = array<i32>} : memref<8x2x32xf32, #tpu.memory_space<vmem>>, vector<1x2x32xf32>,
    %c1_i32_117 = arith.constant 1 : i32
    %317 = arith.index_cast %c1_i32_117 : i32 to index
    %c0_118 = arith.constant 0 : index
    %c0_119 = arith.constant 0 : index
    %318 = vector.load %arg7[%317, %c0_118, %c0_119] : memref<8x2x128xf32, #tpu.memory_space<vmem>>, vector<1x2x128xf32>
    %319 = vector.shape_cast %318 : vector<1x2x128xf32> to vector<2x128xf32>
    %cst_120 = arith.constant dense<0.000000e+00> : vector<2x128xf32>
    %320 = tpu.matmul %312, %289, %cst_120 {dimension_numbers = #tpu.dot_dimension_numbers<[1], [0], [0], [1], [0, 0, 1, 1], [], []>} : vector<2x32xf32>, vector<32x128xf32>, vector<2x128xf32> -> vector<2x128xf32>
    %321 = arith.addf %319, %320 : vector<2x128xf32>
    %322 = vector.extract_strided_slice %321 {offsets = [0, 0], sizes = [2, 96], strides = [1, 1]} : vector<2x128xf32> to vector<2x96xf32>
    %323 = arith.negf %322 : vector<2x96xf32>
    %324 = math.exp %323 : vector<2x96xf32>
    %cst_121 = arith.constant 1.000000e+00 : f32
    %325 = vector.broadcast %cst_121 : f32 to vector<2x96xf32>
    %326 = arith.addf %325, %324 : vector<2x96xf32>
    %327 = arith.divf %325, %326 : vector<2x96xf32>
    %328 = vector.extract_strided_slice %327 {offsets = [0, 0], sizes = [2, 32], strides = [1, 1]} : vector<2x96xf32> to vector<2x32xf32>
    %329 = vector.extract_strided_slice %327 {offsets = [0, 32], sizes = [2, 32], strides = [1, 1]} : vector<2x96xf32> to vector<2x32xf32>
    %330 = vector.extract_strided_slice %327 {offsets = [0, 64], sizes = [2, 32], strides = [1, 1]} : vector<2x96xf32> to vector<2x32xf32>
    %331 = vector.extract_strided_slice %321 {offsets = [0, 96], sizes = [2, 32], strides = [1, 1]} : vector<2x128xf32> to vector<2x32xf32>
    %332 = math.tanh %331 : vector<2x32xf32>
    %333 = arith.mulf %329, %310 : vector<2x32xf32>
    %334 = arith.mulf %328, %332 : vector<2x32xf32>
    %335 = arith.addf %333, %334 : vector<2x32xf32>
    %336 = math.tanh %335 : vector<2x32xf32>
    %337 = arith.mulf %330, %336 : vector<2x32xf32>
    %338 = arith.index_cast %c1_i32_117 : i32 to index
    %c0_122 = arith.constant 0 : index
    %c0_123 = arith.constant 0 : index
    %339 = vector.load %arg6[%338, %c0_122, %c0_123] : memref<8x2x32xf32, #tpu.memory_space<vmem>>, vector<1x2x32xf32>
    %340 = vector.shape_cast %339 : vector<1x2x32xf32> to vector<2x32xf32>
    %341 = vector.shape_cast %337 : vector<2x32xf32> to vector<1x2x32xf32>
    tpu.vector_store %arg6[%338, %c0_122, %c0_123], %341 {strides = array<i32>} : memref<8x2x32xf32, #tpu.memory_space<vmem>>, vector<1x2x32xf32>,
    %c2_i32_124 = arith.constant 2 : i32
    %342 = arith.index_cast %c2_i32_124 : i32 to index
    %c0_125 = arith.constant 0 : index
    %c0_126 = arith.constant 0 : index
    %343 = vector.load %arg7[%342, %c0_125, %c0_126] : memref<8x2x128xf32, #tpu.memory_space<vmem>>, vector<1x2x128xf32>
    %344 = vector.shape_cast %343 : vector<1x2x128xf32> to vector<2x128xf32>
    %cst_127 = arith.constant dense<0.000000e+00> : vector<2x128xf32>
    %345 = tpu.matmul %337, %289, %cst_127 {dimension_numbers = #tpu.dot_dimension_numbers<[1], [0], [0], [1], [0, 0, 1, 1], [], []>} : vector<2x32xf32>, vector<32x128xf32>, vector<2x128xf32> -> vector<2x128xf32>
    %346 = arith.addf %344, %345 : vector<2x128xf32>
    %347 = vector.extract_strided_slice %346 {offsets = [0, 0], sizes = [2, 96], strides = [1, 1]} : vector<2x128xf32> to vector<2x96xf32>
    %348 = arith.negf %347 : vector<2x96xf32>
    %349 = math.exp %348 : vector<2x96xf32>
    %cst_128 = arith.constant 1.000000e+00 : f32
    %350 = vector.broadcast %cst_128 : f32 to vector<2x96xf32>
    %351 = arith.addf %350, %349 : vector<2x96xf32>
    %352 = arith.divf %350, %351 : vector<2x96xf32>
    %353 = vector.extract_strided_slice %352 {offsets = [0, 0], sizes = [2, 32], strides = [1, 1]} : vector<2x96xf32> to vector<2x32xf32>
    %354 = vector.extract_strided_slice %352 {offsets = [0, 32], sizes = [2, 32], strides = [1, 1]} : vector<2x96xf32> to vector<2x32xf32>
    %355 = vector.extract_strided_slice %352 {offsets = [0, 64], sizes = [2, 32], strides = [1, 1]} : vector<2x96xf32> to vector<2x32xf32>
    %356 = vector.extract_strided_slice %346 {offsets = [0, 96], sizes = [2, 32], strides = [1, 1]} : vector<2x128xf32> to vector<2x32xf32>
    %357 = math.tanh %356 : vector<2x32xf32>
    %358 = arith.mulf %354, %335 : vector<2x32xf32>
    %359 = arith.mulf %353, %357 : vector<2x32xf32>
    %360 = arith.addf %358, %359 : vector<2x32xf32>
    %361 = math.tanh %360 : vector<2x32xf32>
    %362 = arith.mulf %355, %361 : vector<2x32xf32>
    %363 = arith.index_cast %c2_i32_124 : i32 to index
    %c0_129 = arith.constant 0 : index
    %c0_130 = arith.constant 0 : index
    %364 = vector.load %arg6[%363, %c0_129, %c0_130] : memref<8x2x32xf32, #tpu.memory_space<vmem>>, vector<1x2x32xf32>
    %365 = vector.shape_cast %364 : vector<1x2x32xf32> to vector<2x32xf32>
    %366 = vector.shape_cast %362 : vector<2x32xf32> to vector<1x2x32xf32>
    tpu.vector_store %arg6[%363, %c0_129, %c0_130], %366 {strides = array<i32>} : memref<8x2x32xf32, #tpu.memory_space<vmem>>, vector<1x2x32xf32>,
    %c3_i32_131 = arith.constant 3 : i32
    %367 = arith.index_cast %c3_i32_131 : i32 to index
    %c0_132 = arith.constant 0 : index
    %c0_133 = arith.constant 0 : index
    %368 = vector.load %arg7[%367, %c0_132, %c0_133] : memref<8x2x128xf32, #tpu.memory_space<vmem>>, vector<1x2x128xf32>
    %369 = vector.shape_cast %368 : vector<1x2x128xf32> to vector<2x128xf32>
    %cst_134 = arith.constant dense<0.000000e+00> : vector<2x128xf32>
    %370 = tpu.matmul %362, %289, %cst_134 {dimension_numbers = #tpu.dot_dimension_numbers<[1], [0], [0], [1], [0, 0, 1, 1], [], []>} : vector<2x32xf32>, vector<32x128xf32>, vector<2x128xf32> -> vector<2x128xf32>
    %371 = arith.addf %369, %370 : vector<2x128xf32>
    %372 = vector.extract_strided_slice %371 {offsets = [0, 0], sizes = [2, 96], strides = [1, 1]} : vector<2x128xf32> to vector<2x96xf32>
    %373 = arith.negf %372 : vector<2x96xf32>
    %374 = math.exp %373 : vector<2x96xf32>
    %cst_135 = arith.constant 1.000000e+00 : f32
    %375 = vector.broadcast %cst_135 : f32 to vector<2x96xf32>
    %376 = arith.addf %375, %374 : vector<2x96xf32>
    %377 = arith.divf %375, %376 : vector<2x96xf32>
    %378 = vector.extract_strided_slice %377 {offsets = [0, 0], sizes = [2, 32], strides = [1, 1]} : vector<2x96xf32> to vector<2x32xf32>
    %379 = vector.extract_strided_slice %377 {offsets = [0, 32], sizes = [2, 32], strides = [1, 1]} : vector<2x96xf32> to vector<2x32xf32>
    %380 = vector.extract_strided_slice %377 {offsets = [0, 64], sizes = [2, 32], strides = [1, 1]} : vector<2x96xf32> to vector<2x32xf32>
    %381 = vector.extract_strided_slice %371 {offsets = [0, 96], sizes = [2, 32], strides = [1, 1]} : vector<2x128xf32> to vector<2x32xf32>
    %382 = math.tanh %381 : vector<2x32xf32>
    %383 = arith.mulf %379, %360 : vector<2x32xf32>
    %384 = arith.mulf %378, %382 : vector<2x32xf32>
    %385 = arith.addf %383, %384 : vector<2x32xf32>
    %386 = math.tanh %385 : vector<2x32xf32>
    %387 = arith.mulf %380, %386 : vector<2x32xf32>
    %388 = arith.index_cast %c3_i32_131 : i32 to index
    %c0_136 = arith.constant 0 : index
    %c0_137 = arith.constant 0 : index
    %389 = vector.load %arg6[%388, %c0_136, %c0_137] : memref<8x2x32xf32, #tpu.memory_space<vmem>>, vector<1x2x32xf32>
    %390 = vector.shape_cast %389 : vector<1x2x32xf32> to vector<2x32xf32>
    %391 = vector.shape_cast %387 : vector<2x32xf32> to vector<1x2x32xf32>
    tpu.vector_store %arg6[%388, %c0_136, %c0_137], %391 {strides = array<i32>} : memref<8x2x32xf32, #tpu.memory_space<vmem>>, vector<1x2x32xf32>,
    %c4_i32_138 = arith.constant 4 : i32
    %392 = arith.index_cast %c4_i32_138 : i32 to index
    %c0_139 = arith.constant 0 : index
    %c0_140 = arith.constant 0 : index
    %393 = vector.load %arg7[%392, %c0_139, %c0_140] : memref<8x2x128xf32, #tpu.memory_space<vmem>>, vector<1x2x128xf32>
    %394 = vector.shape_cast %393 : vector<1x2x128xf32> to vector<2x128xf32>
    %cst_141 = arith.constant dense<0.000000e+00> : vector<2x128xf32>
    %395 = tpu.matmul %387, %289, %cst_141 {dimension_numbers = #tpu.dot_dimension_numbers<[1], [0], [0], [1], [0, 0, 1, 1], [], []>} : vector<2x32xf32>, vector<32x128xf32>, vector<2x128xf32> -> vector<2x128xf32>
    %396 = arith.addf %394, %395 : vector<2x128xf32>
    %397 = vector.extract_strided_slice %396 {offsets = [0, 0], sizes = [2, 96], strides = [1, 1]} : vector<2x128xf32> to vector<2x96xf32>
    %398 = arith.negf %397 : vector<2x96xf32>
    %399 = math.exp %398 : vector<2x96xf32>
    %cst_142 = arith.constant 1.000000e+00 : f32
    %400 = vector.broadcast %cst_142 : f32 to vector<2x96xf32>
    %401 = arith.addf %400, %399 : vector<2x96xf32>
    %402 = arith.divf %400, %401 : vector<2x96xf32>
    %403 = vector.extract_strided_slice %402 {offsets = [0, 0], sizes = [2, 32], strides = [1, 1]} : vector<2x96xf32> to vector<2x32xf32>
    %404 = vector.extract_strided_slice %402 {offsets = [0, 32], sizes = [2, 32], strides = [1, 1]} : vector<2x96xf32> to vector<2x32xf32>
    %405 = vector.extract_strided_slice %402 {offsets = [0, 64], sizes = [2, 32], strides = [1, 1]} : vector<2x96xf32> to vector<2x32xf32>
    %406 = vector.extract_strided_slice %396 {offsets = [0, 96], sizes = [2, 32], strides = [1, 1]} : vector<2x128xf32> to vector<2x32xf32>
    %407 = math.tanh %406 : vector<2x32xf32>
    %408 = arith.mulf %404, %385 : vector<2x32xf32>
    %409 = arith.mulf %403, %407 : vector<2x32xf32>
    %410 = arith.addf %408, %409 : vector<2x32xf32>
    %411 = math.tanh %410 : vector<2x32xf32>
    %412 = arith.mulf %405, %411 : vector<2x32xf32>
    %413 = arith.index_cast %c4_i32_138 : i32 to index
    %c0_143 = arith.constant 0 : index
    %c0_144 = arith.constant 0 : index
    %414 = vector.load %arg6[%413, %c0_143, %c0_144] : memref<8x2x32xf32, #tpu.memory_space<vmem>>, vector<1x2x32xf32>
    %415 = vector.shape_cast %414 : vector<1x2x32xf32> to vector<2x32xf32>
    %416 = vector.shape_cast %412 : vector<2x32xf32> to vector<1x2x32xf32>
    tpu.vector_store %arg6[%413, %c0_143, %c0_144], %416 {strides = array<i32>} : memref<8x2x32xf32, #tpu.memory_space<vmem>>, vector<1x2x32xf32>,
    %c5_i32_145 = arith.constant 5 : i32
    %417 = arith.index_cast %c5_i32_145 : i32 to index
    %c0_146 = arith.constant 0 : index
    %c0_147 = arith.constant 0 : index
    %418 = vector.load %arg7[%417, %c0_146, %c0_147] : memref<8x2x128xf32, #tpu.memory_space<vmem>>, vector<1x2x128xf32>
    %419 = vector.shape_cast %418 : vector<1x2x128xf32> to vector<2x128xf32>
    %cst_148 = arith.constant dense<0.000000e+00> : vector<2x128xf32>
    %420 = tpu.matmul %412, %289, %cst_148 {dimension_numbers = #tpu.dot_dimension_numbers<[1], [0], [0], [1], [0, 0, 1, 1], [], []>} : vector<2x32xf32>, vector<32x128xf32>, vector<2x128xf32> -> vector<2x128xf32>
    %421 = arith.addf %419, %420 : vector<2x128xf32>
    %422 = vector.extract_strided_slice %421 {offsets = [0, 0], sizes = [2, 96], strides = [1, 1]} : vector<2x128xf32> to vector<2x96xf32>
    %423 = arith.negf %422 : vector<2x96xf32>
    %424 = math.exp %423 : vector<2x96xf32>
    %cst_149 = arith.constant 1.000000e+00 : f32
    %425 = vector.broadcast %cst_149 : f32 to vector<2x96xf32>
    %426 = arith.addf %425, %424 : vector<2x96xf32>
    %427 = arith.divf %425, %426 : vector<2x96xf32>
    %428 = vector.extract_strided_slice %427 {offsets = [0, 0], sizes = [2, 32], strides = [1, 1]} : vector<2x96xf32> to vector<2x32xf32>
    %429 = vector.extract_strided_slice %427 {offsets = [0, 32], sizes = [2, 32], strides = [1, 1]} : vector<2x96xf32> to vector<2x32xf32>
    %430 = vector.extract_strided_slice %427 {offsets = [0, 64], sizes = [2, 32], strides = [1, 1]} : vector<2x96xf32> to vector<2x32xf32>
    %431 = vector.extract_strided_slice %421 {offsets = [0, 96], sizes = [2, 32], strides = [1, 1]} : vector<2x128xf32> to vector<2x32xf32>
    %432 = math.tanh %431 : vector<2x32xf32>
    %433 = arith.mulf %429, %410 : vector<2x32xf32>
    %434 = arith.mulf %428, %432 : vector<2x32xf32>
    %435 = arith.addf %433, %434 : vector<2x32xf32>
    %436 = math.tanh %435 : vector<2x32xf32>
    %437 = arith.mulf %430, %436 : vector<2x32xf32>
    %438 = arith.index_cast %c5_i32_145 : i32 to index
    %c0_150 = arith.constant 0 : index
    %c0_151 = arith.constant 0 : index
    %439 = vector.load %arg6[%438, %c0_150, %c0_151] : memref<8x2x32xf32, #tpu.memory_space<vmem>>, vector<1x2x32xf32>
    %440 = vector.shape_cast %439 : vector<1x2x32xf32> to vector<2x32xf32>
    %441 = vector.shape_cast %437 : vector<2x32xf32> to vector<1x2x32xf32>
    tpu.vector_store %arg6[%438, %c0_150, %c0_151], %441 {strides = array<i32>} : memref<8x2x32xf32, #tpu.memory_space<vmem>>, vector<1x2x32xf32>,
    %c6_i32_152 = arith.constant 6 : i32
    %442 = arith.index_cast %c6_i32_152 : i32 to index
    %c0_153 = arith.constant 0 : index
    %c0_154 = arith.constant 0 : index
    %443 = vector.load %arg7[%442, %c0_153, %c0_154] : memref<8x2x128xf32, #tpu.memory_space<vmem>>, vector<1x2x128xf32>
    %444 = vector.shape_cast %443 : vector<1x2x128xf32> to vector<2x128xf32>
    %cst_155 = arith.constant dense<0.000000e+00> : vector<2x128xf32>
    %445 = tpu.matmul %437, %289, %cst_155 {dimension_numbers = #tpu.dot_dimension_numbers<[1], [0], [0], [1], [0, 0, 1, 1], [], []>} : vector<2x32xf32>, vector<32x128xf32>, vector<2x128xf32> -> vector<2x128xf32>
    %446 = arith.addf %444, %445 : vector<2x128xf32>
    %447 = vector.extract_strided_slice %446 {offsets = [0, 0], sizes = [2, 96], strides = [1, 1]} : vector<2x128xf32> to vector<2x96xf32>
    %448 = arith.negf %447 : vector<2x96xf32>
    %449 = math.exp %448 : vector<2x96xf32>
    %cst_156 = arith.constant 1.000000e+00 : f32
    %450 = vector.broadcast %cst_156 : f32 to vector<2x96xf32>
    %451 = arith.addf %450, %449 : vector<2x96xf32>
    %452 = arith.divf %450, %451 : vector<2x96xf32>
    %453 = vector.extract_strided_slice %452 {offsets = [0, 0], sizes = [2, 32], strides = [1, 1]} : vector<2x96xf32> to vector<2x32xf32>
    %454 = vector.extract_strided_slice %452 {offsets = [0, 32], sizes = [2, 32], strides = [1, 1]} : vector<2x96xf32> to vector<2x32xf32>
    %455 = vector.extract_strided_slice %452 {offsets = [0, 64], sizes = [2, 32], strides = [1, 1]} : vector<2x96xf32> to vector<2x32xf32>
    %456 = vector.extract_strided_slice %446 {offsets = [0, 96], sizes = [2, 32], strides = [1, 1]} : vector<2x128xf32> to vector<2x32xf32>
    %457 = math.tanh %456 : vector<2x32xf32>
    %458 = arith.mulf %454, %435 : vector<2x32xf32>
    %459 = arith.mulf %453, %457 : vector<2x32xf32>
    %460 = arith.addf %458, %459 : vector<2x32xf32>
    %461 = math.tanh %460 : vector<2x32xf32>
    %462 = arith.mulf %455, %461 : vector<2x32xf32>
    %463 = arith.index_cast %c6_i32_152 : i32 to index
    %c0_157 = arith.constant 0 : index
    %c0_158 = arith.constant 0 : index
    %464 = vector.load %arg6[%463, %c0_157, %c0_158] : memref<8x2x32xf32, #tpu.memory_space<vmem>>, vector<1x2x32xf32>
    %465 = vector.shape_cast %464 : vector<1x2x32xf32> to vector<2x32xf32>
    %466 = vector.shape_cast %462 : vector<2x32xf32> to vector<1x2x32xf32>
    tpu.vector_store %arg6[%463, %c0_157, %c0_158], %466 {strides = array<i32>} : memref<8x2x32xf32, #tpu.memory_space<vmem>>, vector<1x2x32xf32>,
    %c7_i32_159 = arith.constant 7 : i32
    %467 = arith.index_cast %c7_i32_159 : i32 to index
    %c0_160 = arith.constant 0 : index
    %c0_161 = arith.constant 0 : index
    %468 = vector.load %arg7[%467, %c0_160, %c0_161] : memref<8x2x128xf32, #tpu.memory_space<vmem>>, vector<1x2x128xf32>
    %469 = vector.shape_cast %468 : vector<1x2x128xf32> to vector<2x128xf32>
    %cst_162 = arith.constant dense<0.000000e+00> : vector<2x128xf32>
    %470 = tpu.matmul %462, %289, %cst_162 {dimension_numbers = #tpu.dot_dimension_numbers<[1], [0], [0], [1], [0, 0, 1, 1], [], []>} : vector<2x32xf32>, vector<32x128xf32>, vector<2x128xf32> -> vector<2x128xf32>
    %471 = arith.addf %469, %470 : vector<2x128xf32>
    %472 = vector.extract_strided_slice %471 {offsets = [0, 0], sizes = [2, 96], strides = [1, 1]} : vector<2x128xf32> to vector<2x96xf32>
    %473 = arith.negf %472 : vector<2x96xf32>
    %474 = math.exp %473 : vector<2x96xf32>
    %cst_163 = arith.constant 1.000000e+00 : f32
    %475 = vector.broadcast %cst_163 : f32 to vector<2x96xf32>
    %476 = arith.addf %475, %474 : vector<2x96xf32>
    %477 = arith.divf %475, %476 : vector<2x96xf32>
    %478 = vector.extract_strided_slice %477 {offsets = [0, 0], sizes = [2, 32], strides = [1, 1]} : vector<2x96xf32> to vector<2x32xf32>
    %479 = vector.extract_strided_slice %477 {offsets = [0, 32], sizes = [2, 32], strides = [1, 1]} : vector<2x96xf32> to vector<2x32xf32>
    %480 = vector.extract_strided_slice %477 {offsets = [0, 64], sizes = [2, 32], strides = [1, 1]} : vector<2x96xf32> to vector<2x32xf32>
    %481 = vector.extract_strided_slice %471 {offsets = [0, 96], sizes = [2, 32], strides = [1, 1]} : vector<2x128xf32> to vector<2x32xf32>
    %482 = math.tanh %481 : vector<2x32xf32>
    %483 = arith.mulf %479, %460 : vector<2x32xf32>
    %484 = arith.mulf %478, %482 : vector<2x32xf32>
    %485 = arith.addf %483, %484 : vector<2x32xf32>
    %486 = math.tanh %485 : vector<2x32xf32>
    %487 = arith.mulf %480, %486 : vector<2x32xf32>
    %488 = arith.index_cast %c7_i32_159 : i32 to index
    %c0_164 = arith.constant 0 : index
    %c0_165 = arith.constant 0 : index
    %489 = vector.load %arg6[%488, %c0_164, %c0_165] : memref<8x2x32xf32, #tpu.memory_space<vmem>>, vector<1x2x32xf32>
    %490 = vector.shape_cast %489 : vector<1x2x32xf32> to vector<2x32xf32>
    %491 = vector.shape_cast %487 : vector<2x32xf32> to vector<1x2x32xf32>
    tpu.vector_store %arg6[%488, %c0_164, %c0_165], %491 {strides = array<i32>} : memref<8x2x32xf32, #tpu.memory_space<vmem>>, vector<1x2x32xf32>,
    %c8_i32_166 = arith.constant 8 : i32
    %c1_167 = arith.constant 1 : index
    %c0_168 = arith.constant 0 : index
    %c0_169 = arith.constant 0 : index
    %492 = vector.load %arg2[%c1_167, %c0_168, %c0_169] : memref<2x32x128xf32, #tpu.memory_space<vmem>>, vector<1x32x128xf32>
    %493 = vector.shape_cast %492 : vector<1x32x128xf32> to vector<32x128xf32>
    %c1_170 = arith.constant 1 : index
    %c0_171 = arith.constant 0 : index
    %c0_172 = arith.constant 0 : index
    %494 = vector.load %arg4[%c1_170, %c0_171, %c0_172] : memref<2x1x128xf32, #tpu.memory_space<vmem>>, vector<1x1x128xf32>
    %495 = vector.shape_cast %494 : vector<1x1x128xf32> to vector<1x128xf32>
    %c0_i32_173 = arith.constant 0 : i32
    %496 = arith.index_cast %c0_i32_173 : i32 to index
    %c0_174 = arith.constant 0 : index
    %c0_175 = arith.constant 0 : index
    %497 = vector.load %arg6[%496, %c0_174, %c0_175] : memref<8x2x32xf32, #tpu.memory_space<vmem>>, vector<1x2x32xf32>
    %498 = vector.shape_cast %497 : vector<1x2x32xf32> to vector<2x32xf32>
    %cst_176 = arith.constant dense<0.000000e+00> : vector<2x128xf32>
    %499 = tpu.matmul %498, %493, %cst_176 {dimension_numbers = #tpu.dot_dimension_numbers<[1], [0], [0], [1], [0, 0, 1, 1], [], []>} : vector<2x32xf32>, vector<32x128xf32>, vector<2x128xf32> -> vector<2x128xf32>
    %500 = vector.broadcast %495 : vector<1x128xf32> to vector<2x128xf32>
    %501 = arith.addf %499, %500 : vector<2x128xf32>
    %502 = arith.index_cast %c0_i32_173 : i32 to index
    %c0_177 = arith.constant 0 : index
    %c0_178 = arith.constant 0 : index
    %503 = vector.load %arg7[%502, %c0_177, %c0_178] : memref<8x2x128xf32, #tpu.memory_space<vmem>>, vector<1x2x128xf32>
    %504 = vector.shape_cast %503 : vector<1x2x128xf32> to vector<2x128xf32>
    %505 = vector.shape_cast %501 : vector<2x128xf32> to vector<1x2x128xf32>
    tpu.vector_store %arg7[%502, %c0_177, %c0_178], %505 {strides = array<i32>} : memref<8x2x128xf32, #tpu.memory_space<vmem>>, vector<1x2x128xf32>,
    %c1_i32_179 = arith.constant 1 : i32
    %506 = arith.index_cast %c1_i32_179 : i32 to index
    %c0_180 = arith.constant 0 : index
    %c0_181 = arith.constant 0 : index
    %507 = vector.load %arg6[%506, %c0_180, %c0_181] : memref<8x2x32xf32, #tpu.memory_space<vmem>>, vector<1x2x32xf32>
    %508 = vector.shape_cast %507 : vector<1x2x32xf32> to vector<2x32xf32>
    %cst_182 = arith.constant dense<0.000000e+00> : vector<2x128xf32>
    %509 = tpu.matmul %508, %493, %cst_182 {dimension_numbers = #tpu.dot_dimension_numbers<[1], [0], [0], [1], [0, 0, 1, 1], [], []>} : vector<2x32xf32>, vector<32x128xf32>, vector<2x128xf32> -> vector<2x128xf32>
    %510 = vector.broadcast %495 : vector<1x128xf32> to vector<2x128xf32>
    %511 = arith.addf %509, %510 : vector<2x128xf32>
    %512 = arith.index_cast %c1_i32_179 : i32 to index
    %c0_183 = arith.constant 0 : index
    %c0_184 = arith.constant 0 : index
    %513 = vector.load %arg7[%512, %c0_183, %c0_184] : memref<8x2x128xf32, #tpu.memory_space<vmem>>, vector<1x2x128xf32>
    %514 = vector.shape_cast %513 : vector<1x2x128xf32> to vector<2x128xf32>
    %515 = vector.shape_cast %511 : vector<2x128xf32> to vector<1x2x128xf32>
    tpu.vector_store %arg7[%512, %c0_183, %c0_184], %515 {strides = array<i32>} : memref<8x2x128xf32, #tpu.memory_space<vmem>>, vector<1x2x128xf32>,
    %c2_i32_185 = arith.constant 2 : i32
    %516 = arith.index_cast %c2_i32_185 : i32 to index
    %c0_186 = arith.constant 0 : index
    %c0_187 = arith.constant 0 : index
    %517 = vector.load %arg6[%516, %c0_186, %c0_187] : memref<8x2x32xf32, #tpu.memory_space<vmem>>, vector<1x2x32xf32>
    %518 = vector.shape_cast %517 : vector<1x2x32xf32> to vector<2x32xf32>
    %cst_188 = arith.constant dense<0.000000e+00> : vector<2x128xf32>
    %519 = tpu.matmul %518, %493, %cst_188 {dimension_numbers = #tpu.dot_dimension_numbers<[1], [0], [0], [1], [0, 0, 1, 1], [], []>} : vector<2x32xf32>, vector<32x128xf32>, vector<2x128xf32> -> vector<2x128xf32>
    %520 = vector.broadcast %495 : vector<1x128xf32> to vector<2x128xf32>
    %521 = arith.addf %519, %520 : vector<2x128xf32>
    %522 = arith.index_cast %c2_i32_185 : i32 to index
    %c0_189 = arith.constant 0 : index
    %c0_190 = arith.constant 0 : index
    %523 = vector.load %arg7[%522, %c0_189, %c0_190] : memref<8x2x128xf32, #tpu.memory_space<vmem>>, vector<1x2x128xf32>
    %524 = vector.shape_cast %523 : vector<1x2x128xf32> to vector<2x128xf32>
    %525 = vector.shape_cast %521 : vector<2x128xf32> to vector<1x2x128xf32>
    tpu.vector_store %arg7[%522, %c0_189, %c0_190], %525 {strides = array<i32>} : memref<8x2x128xf32, #tpu.memory_space<vmem>>, vector<1x2x128xf32>,
    %c3_i32_191 = arith.constant 3 : i32
    %526 = arith.index_cast %c3_i32_191 : i32 to index
    %c0_192 = arith.constant 0 : index
    %c0_193 = arith.constant 0 : index
    %527 = vector.load %arg6[%526, %c0_192, %c0_193] : memref<8x2x32xf32, #tpu.memory_space<vmem>>, vector<1x2x32xf32>
    %528 = vector.shape_cast %527 : vector<1x2x32xf32> to vector<2x32xf32>
    %cst_194 = arith.constant dense<0.000000e+00> : vector<2x128xf32>
    %529 = tpu.matmul %528, %493, %cst_194 {dimension_numbers = #tpu.dot_dimension_numbers<[1], [0], [0], [1], [0, 0, 1, 1], [], []>} : vector<2x32xf32>, vector<32x128xf32>, vector<2x128xf32> -> vector<2x128xf32>
    %530 = vector.broadcast %495 : vector<1x128xf32> to vector<2x128xf32>
    %531 = arith.addf %529, %530 : vector<2x128xf32>
    %532 = arith.index_cast %c3_i32_191 : i32 to index
    %c0_195 = arith.constant 0 : index
    %c0_196 = arith.constant 0 : index
    %533 = vector.load %arg7[%532, %c0_195, %c0_196] : memref<8x2x128xf32, #tpu.memory_space<vmem>>, vector<1x2x128xf32>
    %534 = vector.shape_cast %533 : vector<1x2x128xf32> to vector<2x128xf32>
    %535 = vector.shape_cast %531 : vector<2x128xf32> to vector<1x2x128xf32>
    tpu.vector_store %arg7[%532, %c0_195, %c0_196], %535 {strides = array<i32>} : memref<8x2x128xf32, #tpu.memory_space<vmem>>, vector<1x2x128xf32>,
    %c4_i32_197 = arith.constant 4 : i32
    %536 = arith.index_cast %c4_i32_197 : i32 to index
    %c0_198 = arith.constant 0 : index
    %c0_199 = arith.constant 0 : index
    %537 = vector.load %arg6[%536, %c0_198, %c0_199] : memref<8x2x32xf32, #tpu.memory_space<vmem>>, vector<1x2x32xf32>
    %538 = vector.shape_cast %537 : vector<1x2x32xf32> to vector<2x32xf32>
    %cst_200 = arith.constant dense<0.000000e+00> : vector<2x128xf32>
    %539 = tpu.matmul %538, %493, %cst_200 {dimension_numbers = #tpu.dot_dimension_numbers<[1], [0], [0], [1], [0, 0, 1, 1], [], []>} : vector<2x32xf32>, vector<32x128xf32>, vector<2x128xf32> -> vector<2x128xf32>
    %540 = vector.broadcast %495 : vector<1x128xf32> to vector<2x128xf32>
    %541 = arith.addf %539, %540 : vector<2x128xf32>
    %542 = arith.index_cast %c4_i32_197 : i32 to index
    %c0_201 = arith.constant 0 : index
    %c0_202 = arith.constant 0 : index
    %543 = vector.load %arg7[%542, %c0_201, %c0_202] : memref<8x2x128xf32, #tpu.memory_space<vmem>>, vector<1x2x128xf32>
    %544 = vector.shape_cast %543 : vector<1x2x128xf32> to vector<2x128xf32>
    %545 = vector.shape_cast %541 : vector<2x128xf32> to vector<1x2x128xf32>
    tpu.vector_store %arg7[%542, %c0_201, %c0_202], %545 {strides = array<i32>} : memref<8x2x128xf32, #tpu.memory_space<vmem>>, vector<1x2x128xf32>,
    %c5_i32_203 = arith.constant 5 : i32
    %546 = arith.index_cast %c5_i32_203 : i32 to index
    %c0_204 = arith.constant 0 : index
    %c0_205 = arith.constant 0 : index
    %547 = vector.load %arg6[%546, %c0_204, %c0_205] : memref<8x2x32xf32, #tpu.memory_space<vmem>>, vector<1x2x32xf32>
    %548 = vector.shape_cast %547 : vector<1x2x32xf32> to vector<2x32xf32>
    %cst_206 = arith.constant dense<0.000000e+00> : vector<2x128xf32>
    %549 = tpu.matmul %548, %493, %cst_206 {dimension_numbers = #tpu.dot_dimension_numbers<[1], [0], [0], [1], [0, 0, 1, 1], [], []>} : vector<2x32xf32>, vector<32x128xf32>, vector<2x128xf32> -> vector<2x128xf32>
    %550 = vector.broadcast %495 : vector<1x128xf32> to vector<2x128xf32>
    %551 = arith.addf %549, %550 : vector<2x128xf32>
    %552 = arith.index_cast %c5_i32_203 : i32 to index
    %c0_207 = arith.constant 0 : index
    %c0_208 = arith.constant 0 : index
    %553 = vector.load %arg7[%552, %c0_207, %c0_208] : memref<8x2x128xf32, #tpu.memory_space<vmem>>, vector<1x2x128xf32>
    %554 = vector.shape_cast %553 : vector<1x2x128xf32> to vector<2x128xf32>
    %555 = vector.shape_cast %551 : vector<2x128xf32> to vector<1x2x128xf32>
    tpu.vector_store %arg7[%552, %c0_207, %c0_208], %555 {strides = array<i32>} : memref<8x2x128xf32, #tpu.memory_space<vmem>>, vector<1x2x128xf32>,
    %c6_i32_209 = arith.constant 6 : i32
    %556 = arith.index_cast %c6_i32_209 : i32 to index
    %c0_210 = arith.constant 0 : index
    %c0_211 = arith.constant 0 : index
    %557 = vector.load %arg6[%556, %c0_210, %c0_211] : memref<8x2x32xf32, #tpu.memory_space<vmem>>, vector<1x2x32xf32>
    %558 = vector.shape_cast %557 : vector<1x2x32xf32> to vector<2x32xf32>
    %cst_212 = arith.constant dense<0.000000e+00> : vector<2x128xf32>
    %559 = tpu.matmul %558, %493, %cst_212 {dimension_numbers = #tpu.dot_dimension_numbers<[1], [0], [0], [1], [0, 0, 1, 1], [], []>} : vector<2x32xf32>, vector<32x128xf32>, vector<2x128xf32> -> vector<2x128xf32>
    %560 = vector.broadcast %495 : vector<1x128xf32> to vector<2x128xf32>
    %561 = arith.addf %559, %560 : vector<2x128xf32>
    %562 = arith.index_cast %c6_i32_209 : i32 to index
    %c0_213 = arith.constant 0 : index
    %c0_214 = arith.constant 0 : index
    %563 = vector.load %arg7[%562, %c0_213, %c0_214] : memref<8x2x128xf32, #tpu.memory_space<vmem>>, vector<1x2x128xf32>
    %564 = vector.shape_cast %563 : vector<1x2x128xf32> to vector<2x128xf32>
    %565 = vector.shape_cast %561 : vector<2x128xf32> to vector<1x2x128xf32>
    tpu.vector_store %arg7[%562, %c0_213, %c0_214], %565 {strides = array<i32>} : memref<8x2x128xf32, #tpu.memory_space<vmem>>, vector<1x2x128xf32>,
    %c7_i32_215 = arith.constant 7 : i32
    %566 = arith.index_cast %c7_i32_215 : i32 to index
    %c0_216 = arith.constant 0 : index
    %c0_217 = arith.constant 0 : index
    %567 = vector.load %arg6[%566, %c0_216, %c0_217] : memref<8x2x32xf32, #tpu.memory_space<vmem>>, vector<1x2x32xf32>
    %568 = vector.shape_cast %567 : vector<1x2x32xf32> to vector<2x32xf32>
    %cst_218 = arith.constant dense<0.000000e+00> : vector<2x128xf32>
    %569 = tpu.matmul %568, %493, %cst_218 {dimension_numbers = #tpu.dot_dimension_numbers<[1], [0], [0], [1], [0, 0, 1, 1], [], []>} : vector<2x32xf32>, vector<32x128xf32>, vector<2x128xf32> -> vector<2x128xf32>
    %570 = vector.broadcast %495 : vector<1x128xf32> to vector<2x128xf32>
    %571 = arith.addf %569, %570 : vector<2x128xf32>
    %572 = arith.index_cast %c7_i32_215 : i32 to index
    %c0_219 = arith.constant 0 : index
    %c0_220 = arith.constant 0 : index
    %573 = vector.load %arg7[%572, %c0_219, %c0_220] : memref<8x2x128xf32, #tpu.memory_space<vmem>>, vector<1x2x128xf32>
    %574 = vector.shape_cast %573 : vector<1x2x128xf32> to vector<2x128xf32>
    %575 = vector.shape_cast %571 : vector<2x128xf32> to vector<1x2x128xf32>
    tpu.vector_store %arg7[%572, %c0_219, %c0_220], %575 {strides = array<i32>} : memref<8x2x128xf32, #tpu.memory_space<vmem>>, vector<1x2x128xf32>,
    %c8_i32_221 = arith.constant 8 : i32
    %c2 = arith.constant 2 : index
    %c0_222 = arith.constant 0 : index
    %c0_223 = arith.constant 0 : index
    %576 = vector.load %arg3[%c2, %c0_222, %c0_223] : memref<3x32x128xf32, #tpu.memory_space<vmem>>, vector<1x32x128xf32>
    %577 = vector.shape_cast %576 : vector<1x32x128xf32> to vector<32x128xf32>
    %cst_224 = arith.constant 0.000000e+00 : f32
    %578 = vector.broadcast %cst_224 : f32 to vector<2x32xf32>
    %cst_225 = arith.constant 0.000000e+00 : f32
    %579 = vector.broadcast %cst_225 : f32 to vector<2x32xf32>
    %c0_i32_226 = arith.constant 0 : i32
    %580 = arith.index_cast %c0_i32_226 : i32 to index
    %c0_227 = arith.constant 0 : index
    %c0_228 = arith.constant 0 : index
    %581 = vector.load %arg7[%580, %c0_227, %c0_228] : memref<8x2x128xf32, #tpu.memory_space<vmem>>, vector<1x2x128xf32>
    %582 = vector.shape_cast %581 : vector<1x2x128xf32> to vector<2x128xf32>
    %cst_229 = arith.constant dense<0.000000e+00> : vector<2x128xf32>
    %583 = tpu.matmul %578, %577, %cst_229 {dimension_numbers = #tpu.dot_dimension_numbers<[1], [0], [0], [1], [0, 0, 1, 1], [], []>} : vector<2x32xf32>, vector<32x128xf32>, vector<2x128xf32> -> vector<2x128xf32>
    %584 = arith.addf %582, %583 : vector<2x128xf32>
    %585 = vector.extract_strided_slice %584 {offsets = [0, 0], sizes = [2, 96], strides = [1, 1]} : vector<2x128xf32> to vector<2x96xf32>
    %586 = arith.negf %585 : vector<2x96xf32>
    %587 = math.exp %586 : vector<2x96xf32>
    %cst_230 = arith.constant 1.000000e+00 : f32
    %588 = vector.broadcast %cst_230 : f32 to vector<2x96xf32>
    %589 = arith.addf %588, %587 : vector<2x96xf32>
    %590 = arith.divf %588, %589 : vector<2x96xf32>
    %591 = vector.extract_strided_slice %590 {offsets = [0, 0], sizes = [2, 32], strides = [1, 1]} : vector<2x96xf32> to vector<2x32xf32>
    %592 = vector.extract_strided_slice %590 {offsets = [0, 32], sizes = [2, 32], strides = [1, 1]} : vector<2x96xf32> to vector<2x32xf32>
    %593 = vector.extract_strided_slice %590 {offsets = [0, 64], sizes = [2, 32], strides = [1, 1]} : vector<2x96xf32> to vector<2x32xf32>
    %594 = vector.extract_strided_slice %584 {offsets = [0, 96], sizes = [2, 32], strides = [1, 1]} : vector<2x128xf32> to vector<2x32xf32>
    %595 = math.tanh %594 : vector<2x32xf32>
    %596 = arith.mulf %592, %579 : vector<2x32xf32>
    %597 = arith.mulf %591, %595 : vector<2x32xf32>
    %598 = arith.addf %596, %597 : vector<2x32xf32>
    %599 = math.tanh %598 : vector<2x32xf32>
    %600 = arith.mulf %593, %599 : vector<2x32xf32>
    %c1_i32_231 = arith.constant 1 : i32
    %601 = arith.index_cast %c1_i32_231 : i32 to index
    %c0_232 = arith.constant 0 : index
    %c0_233 = arith.constant 0 : index
    %602 = vector.load %arg7[%601, %c0_232, %c0_233] : memref<8x2x128xf32, #tpu.memory_space<vmem>>, vector<1x2x128xf32>
    %603 = vector.shape_cast %602 : vector<1x2x128xf32> to vector<2x128xf32>
    %cst_234 = arith.constant dense<0.000000e+00> : vector<2x128xf32>
    %604 = tpu.matmul %600, %577, %cst_234 {dimension_numbers = #tpu.dot_dimension_numbers<[1], [0], [0], [1], [0, 0, 1, 1], [], []>} : vector<2x32xf32>, vector<32x128xf32>, vector<2x128xf32> -> vector<2x128xf32>
    %605 = arith.addf %603, %604 : vector<2x128xf32>
    %606 = vector.extract_strided_slice %605 {offsets = [0, 0], sizes = [2, 96], strides = [1, 1]} : vector<2x128xf32> to vector<2x96xf32>
    %607 = arith.negf %606 : vector<2x96xf32>
    %608 = math.exp %607 : vector<2x96xf32>
    %cst_235 = arith.constant 1.000000e+00 : f32
    %609 = vector.broadcast %cst_235 : f32 to vector<2x96xf32>
    %610 = arith.addf %609, %608 : vector<2x96xf32>
    %611 = arith.divf %609, %610 : vector<2x96xf32>
    %612 = vector.extract_strided_slice %611 {offsets = [0, 0], sizes = [2, 32], strides = [1, 1]} : vector<2x96xf32> to vector<2x32xf32>
    %613 = vector.extract_strided_slice %611 {offsets = [0, 32], sizes = [2, 32], strides = [1, 1]} : vector<2x96xf32> to vector<2x32xf32>
    %614 = vector.extract_strided_slice %611 {offsets = [0, 64], sizes = [2, 32], strides = [1, 1]} : vector<2x96xf32> to vector<2x32xf32>
    %615 = vector.extract_strided_slice %605 {offsets = [0, 96], sizes = [2, 32], strides = [1, 1]} : vector<2x128xf32> to vector<2x32xf32>
    %616 = math.tanh %615 : vector<2x32xf32>
    %617 = arith.mulf %613, %598 : vector<2x32xf32>
    %618 = arith.mulf %612, %616 : vector<2x32xf32>
    %619 = arith.addf %617, %618 : vector<2x32xf32>
    %620 = math.tanh %619 : vector<2x32xf32>
    %621 = arith.mulf %614, %620 : vector<2x32xf32>
    %c2_i32_236 = arith.constant 2 : i32
    %622 = arith.index_cast %c2_i32_236 : i32 to index
    %c0_237 = arith.constant 0 : index
    %c0_238 = arith.constant 0 : index
    %623 = vector.load %arg7[%622, %c0_237, %c0_238] : memref<8x2x128xf32, #tpu.memory_space<vmem>>, vector<1x2x128xf32>
    %624 = vector.shape_cast %623 : vector<1x2x128xf32> to vector<2x128xf32>
    %cst_239 = arith.constant dense<0.000000e+00> : vector<2x128xf32>
    %625 = tpu.matmul %621, %577, %cst_239 {dimension_numbers = #tpu.dot_dimension_numbers<[1], [0], [0], [1], [0, 0, 1, 1], [], []>} : vector<2x32xf32>, vector<32x128xf32>, vector<2x128xf32> -> vector<2x128xf32>
    %626 = arith.addf %624, %625 : vector<2x128xf32>
    %627 = vector.extract_strided_slice %626 {offsets = [0, 0], sizes = [2, 96], strides = [1, 1]} : vector<2x128xf32> to vector<2x96xf32>
    %628 = arith.negf %627 : vector<2x96xf32>
    %629 = math.exp %628 : vector<2x96xf32>
    %cst_240 = arith.constant 1.000000e+00 : f32
    %630 = vector.broadcast %cst_240 : f32 to vector<2x96xf32>
    %631 = arith.addf %630, %629 : vector<2x96xf32>
    %632 = arith.divf %630, %631 : vector<2x96xf32>
    %633 = vector.extract_strided_slice %632 {offsets = [0, 0], sizes = [2, 32], strides = [1, 1]} : vector<2x96xf32> to vector<2x32xf32>
    %634 = vector.extract_strided_slice %632 {offsets = [0, 32], sizes = [2, 32], strides = [1, 1]} : vector<2x96xf32> to vector<2x32xf32>
    %635 = vector.extract_strided_slice %632 {offsets = [0, 64], sizes = [2, 32], strides = [1, 1]} : vector<2x96xf32> to vector<2x32xf32>
    %636 = vector.extract_strided_slice %626 {offsets = [0, 96], sizes = [2, 32], strides = [1, 1]} : vector<2x128xf32> to vector<2x32xf32>
    %637 = math.tanh %636 : vector<2x32xf32>
    %638 = arith.mulf %634, %619 : vector<2x32xf32>
    %639 = arith.mulf %633, %637 : vector<2x32xf32>
    %640 = arith.addf %638, %639 : vector<2x32xf32>
    %641 = math.tanh %640 : vector<2x32xf32>
    %642 = arith.mulf %635, %641 : vector<2x32xf32>
    %c3_i32_241 = arith.constant 3 : i32
    %643 = arith.index_cast %c3_i32_241 : i32 to index
    %c0_242 = arith.constant 0 : index
    %c0_243 = arith.constant 0 : index
    %644 = vector.load %arg7[%643, %c0_242, %c0_243] : memref<8x2x128xf32, #tpu.memory_space<vmem>>, vector<1x2x128xf32>
    %645 = vector.shape_cast %644 : vector<1x2x128xf32> to vector<2x128xf32>
    %cst_244 = arith.constant dense<0.000000e+00> : vector<2x128xf32>
    %646 = tpu.matmul %642, %577, %cst_244 {dimension_numbers = #tpu.dot_dimension_numbers<[1], [0], [0], [1], [0, 0, 1, 1], [], []>} : vector<2x32xf32>, vector<32x128xf32>, vector<2x128xf32> -> vector<2x128xf32>
    %647 = arith.addf %645, %646 : vector<2x128xf32>
    %648 = vector.extract_strided_slice %647 {offsets = [0, 0], sizes = [2, 96], strides = [1, 1]} : vector<2x128xf32> to vector<2x96xf32>
    %649 = arith.negf %648 : vector<2x96xf32>
    %650 = math.exp %649 : vector<2x96xf32>
    %cst_245 = arith.constant 1.000000e+00 : f32
    %651 = vector.broadcast %cst_245 : f32 to vector<2x96xf32>
    %652 = arith.addf %651, %650 : vector<2x96xf32>
    %653 = arith.divf %651, %652 : vector<2x96xf32>
    %654 = vector.extract_strided_slice %653 {offsets = [0, 0], sizes = [2, 32], strides = [1, 1]} : vector<2x96xf32> to vector<2x32xf32>
    %655 = vector.extract_strided_slice %653 {offsets = [0, 32], sizes = [2, 32], strides = [1, 1]} : vector<2x96xf32> to vector<2x32xf32>
    %656 = vector.extract_strided_slice %653 {offsets = [0, 64], sizes = [2, 32], strides = [1, 1]} : vector<2x96xf32> to vector<2x32xf32>
    %657 = vector.extract_strided_slice %647 {offsets = [0, 96], sizes = [2, 32], strides = [1, 1]} : vector<2x128xf32> to vector<2x32xf32>
    %658 = math.tanh %657 : vector<2x32xf32>
    %659 = arith.mulf %655, %640 : vector<2x32xf32>
    %660 = arith.mulf %654, %658 : vector<2x32xf32>
    %661 = arith.addf %659, %660 : vector<2x32xf32>
    %662 = math.tanh %661 : vector<2x32xf32>
    %663 = arith.mulf %656, %662 : vector<2x32xf32>
    %c4_i32_246 = arith.constant 4 : i32
    %664 = arith.index_cast %c4_i32_246 : i32 to index
    %c0_247 = arith.constant 0 : index
    %c0_248 = arith.constant 0 : index
    %665 = vector.load %arg7[%664, %c0_247, %c0_248] : memref<8x2x128xf32, #tpu.memory_space<vmem>>, vector<1x2x128xf32>
    %666 = vector.shape_cast %665 : vector<1x2x128xf32> to vector<2x128xf32>
    %cst_249 = arith.constant dense<0.000000e+00> : vector<2x128xf32>
    %667 = tpu.matmul %663, %577, %cst_249 {dimension_numbers = #tpu.dot_dimension_numbers<[1], [0], [0], [1], [0, 0, 1, 1], [], []>} : vector<2x32xf32>, vector<32x128xf32>, vector<2x128xf32> -> vector<2x128xf32>
    %668 = arith.addf %666, %667 : vector<2x128xf32>
    %669 = vector.extract_strided_slice %668 {offsets = [0, 0], sizes = [2, 96], strides = [1, 1]} : vector<2x128xf32> to vector<2x96xf32>
    %670 = arith.negf %669 : vector<2x96xf32>
    %671 = math.exp %670 : vector<2x96xf32>
    %cst_250 = arith.constant 1.000000e+00 : f32
    %672 = vector.broadcast %cst_250 : f32 to vector<2x96xf32>
    %673 = arith.addf %672, %671 : vector<2x96xf32>
    %674 = arith.divf %672, %673 : vector<2x96xf32>
    %675 = vector.extract_strided_slice %674 {offsets = [0, 0], sizes = [2, 32], strides = [1, 1]} : vector<2x96xf32> to vector<2x32xf32>
    %676 = vector.extract_strided_slice %674 {offsets = [0, 32], sizes = [2, 32], strides = [1, 1]} : vector<2x96xf32> to vector<2x32xf32>
    %677 = vector.extract_strided_slice %674 {offsets = [0, 64], sizes = [2, 32], strides = [1, 1]} : vector<2x96xf32> to vector<2x32xf32>
    %678 = vector.extract_strided_slice %668 {offsets = [0, 96], sizes = [2, 32], strides = [1, 1]} : vector<2x128xf32> to vector<2x32xf32>
    %679 = math.tanh %678 : vector<2x32xf32>
    %680 = arith.mulf %676, %661 : vector<2x32xf32>
    %681 = arith.mulf %675, %679 : vector<2x32xf32>
    %682 = arith.addf %680, %681 : vector<2x32xf32>
    %683 = math.tanh %682 : vector<2x32xf32>
    %684 = arith.mulf %677, %683 : vector<2x32xf32>
    %c5_i32_251 = arith.constant 5 : i32
    %685 = arith.index_cast %c5_i32_251 : i32 to index
    %c0_252 = arith.constant 0 : index
    %c0_253 = arith.constant 0 : index
    %686 = vector.load %arg7[%685, %c0_252, %c0_253] : memref<8x2x128xf32, #tpu.memory_space<vmem>>, vector<1x2x128xf32>
    %687 = vector.shape_cast %686 : vector<1x2x128xf32> to vector<2x128xf32>
    %cst_254 = arith.constant dense<0.000000e+00> : vector<2x128xf32>
    %688 = tpu.matmul %684, %577, %cst_254 {dimension_numbers = #tpu.dot_dimension_numbers<[1], [0], [0], [1], [0, 0, 1, 1], [], []>} : vector<2x32xf32>, vector<32x128xf32>, vector<2x128xf32> -> vector<2x128xf32>
    %689 = arith.addf %687, %688 : vector<2x128xf32>
    %690 = vector.extract_strided_slice %689 {offsets = [0, 0], sizes = [2, 96], strides = [1, 1]} : vector<2x128xf32> to vector<2x96xf32>
    %691 = arith.negf %690 : vector<2x96xf32>
    %692 = math.exp %691 : vector<2x96xf32>
    %cst_255 = arith.constant 1.000000e+00 : f32
    %693 = vector.broadcast %cst_255 : f32 to vector<2x96xf32>
    %694 = arith.addf %693, %692 : vector<2x96xf32>
    %695 = arith.divf %693, %694 : vector<2x96xf32>
    %696 = vector.extract_strided_slice %695 {offsets = [0, 0], sizes = [2, 32], strides = [1, 1]} : vector<2x96xf32> to vector<2x32xf32>
    %697 = vector.extract_strided_slice %695 {offsets = [0, 32], sizes = [2, 32], strides = [1, 1]} : vector<2x96xf32> to vector<2x32xf32>
    %698 = vector.extract_strided_slice %695 {offsets = [0, 64], sizes = [2, 32], strides = [1, 1]} : vector<2x96xf32> to vector<2x32xf32>
    %699 = vector.extract_strided_slice %689 {offsets = [0, 96], sizes = [2, 32], strides = [1, 1]} : vector<2x128xf32> to vector<2x32xf32>
    %700 = math.tanh %699 : vector<2x32xf32>
    %701 = arith.mulf %697, %682 : vector<2x32xf32>
    %702 = arith.mulf %696, %700 : vector<2x32xf32>
    %703 = arith.addf %701, %702 : vector<2x32xf32>
    %704 = math.tanh %703 : vector<2x32xf32>
    %705 = arith.mulf %698, %704 : vector<2x32xf32>
    %c6_i32_256 = arith.constant 6 : i32
    %706 = arith.index_cast %c6_i32_256 : i32 to index
    %c0_257 = arith.constant 0 : index
    %c0_258 = arith.constant 0 : index
    %707 = vector.load %arg7[%706, %c0_257, %c0_258] : memref<8x2x128xf32, #tpu.memory_space<vmem>>, vector<1x2x128xf32>
    %708 = vector.shape_cast %707 : vector<1x2x128xf32> to vector<2x128xf32>
    %cst_259 = arith.constant dense<0.000000e+00> : vector<2x128xf32>
    %709 = tpu.matmul %705, %577, %cst_259 {dimension_numbers = #tpu.dot_dimension_numbers<[1], [0], [0], [1], [0, 0, 1, 1], [], []>} : vector<2x32xf32>, vector<32x128xf32>, vector<2x128xf32> -> vector<2x128xf32>
    %710 = arith.addf %708, %709 : vector<2x128xf32>
    %711 = vector.extract_strided_slice %710 {offsets = [0, 0], sizes = [2, 96], strides = [1, 1]} : vector<2x128xf32> to vector<2x96xf32>
    %712 = arith.negf %711 : vector<2x96xf32>
    %713 = math.exp %712 : vector<2x96xf32>
    %cst_260 = arith.constant 1.000000e+00 : f32
    %714 = vector.broadcast %cst_260 : f32 to vector<2x96xf32>
    %715 = arith.addf %714, %713 : vector<2x96xf32>
    %716 = arith.divf %714, %715 : vector<2x96xf32>
    %717 = vector.extract_strided_slice %716 {offsets = [0, 0], sizes = [2, 32], strides = [1, 1]} : vector<2x96xf32> to vector<2x32xf32>
    %718 = vector.extract_strided_slice %716 {offsets = [0, 32], sizes = [2, 32], strides = [1, 1]} : vector<2x96xf32> to vector<2x32xf32>
    %719 = vector.extract_strided_slice %716 {offsets = [0, 64], sizes = [2, 32], strides = [1, 1]} : vector<2x96xf32> to vector<2x32xf32>
    %720 = vector.extract_strided_slice %710 {offsets = [0, 96], sizes = [2, 32], strides = [1, 1]} : vector<2x128xf32> to vector<2x32xf32>
    %721 = math.tanh %720 : vector<2x32xf32>
    %722 = arith.mulf %718, %703 : vector<2x32xf32>
    %723 = arith.mulf %717, %721 : vector<2x32xf32>
    %724 = arith.addf %722, %723 : vector<2x32xf32>
    %725 = math.tanh %724 : vector<2x32xf32>
    %726 = arith.mulf %719, %725 : vector<2x32xf32>
    %c7_i32_261 = arith.constant 7 : i32
    %727 = arith.index_cast %c7_i32_261 : i32 to index
    %c0_262 = arith.constant 0 : index
    %c0_263 = arith.constant 0 : index
    %728 = vector.load %arg7[%727, %c0_262, %c0_263] : memref<8x2x128xf32, #tpu.memory_space<vmem>>, vector<1x2x128xf32>
    %729 = vector.shape_cast %728 : vector<1x2x128xf32> to vector<2x128xf32>
    %cst_264 = arith.constant dense<0.000000e+00> : vector<2x128xf32>
    %730 = tpu.matmul %726, %577, %cst_264 {dimension_numbers = #tpu.dot_dimension_numbers<[1], [0], [0], [1], [0, 0, 1, 1], [], []>} : vector<2x32xf32>, vector<32x128xf32>, vector<2x128xf32> -> vector<2x128xf32>
    %731 = arith.addf %729, %730 : vector<2x128xf32>
    %732 = vector.extract_strided_slice %731 {offsets = [0, 0], sizes = [2, 96], strides = [1, 1]} : vector<2x128xf32> to vector<2x96xf32>
    %733 = arith.negf %732 : vector<2x96xf32>
    %734 = math.exp %733 : vector<2x96xf32>
    %cst_265 = arith.constant 1.000000e+00 : f32
    %735 = vector.broadcast %cst_265 : f32 to vector<2x96xf32>
    %736 = arith.addf %735, %734 : vector<2x96xf32>
    %737 = arith.divf %735, %736 : vector<2x96xf32>
    %738 = vector.extract_strided_slice %737 {offsets = [0, 0], sizes = [2, 32], strides = [1, 1]} : vector<2x96xf32> to vector<2x32xf32>
    %739 = vector.extract_strided_slice %737 {offsets = [0, 32], sizes = [2, 32], strides = [1, 1]} : vector<2x96xf32> to vector<2x32xf32>
    %740 = vector.extract_strided_slice %737 {offsets = [0, 64], sizes = [2, 32], strides = [1, 1]} : vector<2x96xf32> to vector<2x32xf32>
    %741 = vector.extract_strided_slice %731 {offsets = [0, 96], sizes = [2, 32], strides = [1, 1]} : vector<2x128xf32> to vector<2x32xf32>
    %742 = math.tanh %741 : vector<2x32xf32>
    %743 = arith.mulf %739, %724 : vector<2x32xf32>
    %744 = arith.mulf %738, %742 : vector<2x32xf32>
    %745 = arith.addf %743, %744 : vector<2x32xf32>
    %746 = math.tanh %745 : vector<2x32xf32>
    %747 = arith.mulf %740, %746 : vector<2x32xf32>
    %c8_i32_266 = arith.constant 8 : i32
    %c0_267 = arith.constant 0 : index
    %c0_268 = arith.constant 0 : index
    %748 = vector.load %arg5[%c0_267, %c0_268] : memref<2x32xf32, #tpu.memory_space<vmem>>, vector<2x32xf32>
    tpu.vector_store %arg5[%c0_267, %c0_268], %747 {strides = array<i32>} : memref<2x32xf32, #tpu.memory_space<vmem>>, vector<2x32xf32>,
    return
  }
  func.func @transform_0(%arg0: i32) -> (i32, i32, i32) {
    %c0_i32 = arith.constant 0 : i32
    %c0_i32_0 = arith.constant 0 : i32
    %c0_i32_1 = arith.constant 0 : i32
    return %c0_i32, %arg0, %c0_i32_0 : i32, i32, i32
  }
  func.func @transform_1(%arg0: i32) -> (i32, i32, i32) {
    %c0_i32 = arith.constant 0 : i32
    %c0_i32_0 = arith.constant 0 : i32
    %c0_i32_1 = arith.constant 0 : i32
    %c0_i32_2 = arith.constant 0 : i32
    return %c0_i32, %c0_i32_0, %c0_i32_1 : i32, i32, i32
  }
  func.func @transform_2(%arg0: i32) -> (i32, i32, i32) {
    %c0_i32 = arith.constant 0 : i32
    %c0_i32_0 = arith.constant 0 : i32
    %c0_i32_1 = arith.constant 0 : i32
    %c0_i32_2 = arith.constant 0 : i32
    return %c0_i32, %c0_i32_0, %c0_i32_1 : i32, i32, i32
  }
  func.func @transform_3(%arg0: i32) -> (i32, i32, i32) {
    %c0_i32 = arith.constant 0 : i32
    %c0_i32_0 = arith.constant 0 : i32
    %c0_i32_1 = arith.constant 0 : i32
    %c0_i32_2 = arith.constant 0 : i32
    return %c0_i32, %c0_i32_0, %c0_i32_1 : i32, i32, i32
  }
  func.func @transform_4(%arg0: i32) -> (i32, i32) {
    %c0_i32 = arith.constant 0 : i32
    %c0_i32_0 = arith.constant 0 : i32
    return %arg0, %c0_i32 : i32, i32
  }
}

</mosaic_0001>

<bundles_post_ra>
// kernel: tpu_custom_call.1
= control target key start
LH: loop header
LB: loop body
LE: loop exit
PB: predicated region body
PF: predicated region fallthrough
CT: control target
= control target key end

     0   :  { %9 = vsyncpa [#allocation5], 0  ;;  %s5581_s0 = inlined_call_operand.hbm [shape: f32[8,2,128], index: 0, kind: input, shape index: {}]   ;;  %s5582_s1 = inlined_call_operand.hbm [shape: f32[2,32,128], index: 1, kind: input, shape index: {}]   ;;  %s5583_s2 = inlined_call_operand.hbm [shape: f32[3,32,128], index: 2, kind: input, shape index: {}]   ;;  %s5584_s3 = inlined_call_operand.vmem [shape: f32[2,1,128], index: 3, kind: input, shape index: {}]   ;;  %s5585_s4 = inlined_call_operand.hbm [shape: f32[2,32], index: 4, kind: output, shape index: {}]  }
   0x1   :  { %10 = vsyncpa [#allocation8], 0 }
   0x2   :  { %11 = vsyncpa [#allocation6], 0  ;;  %s5033_s15 = smov [#allocation7]   ;;  %s4939_s19 = scalar_lea.hbm %s5582_s1, 1024 }
   0x3   :  { %s29_s16 = sshll.u32 %s5033_s15, 4  ;;  %p4940_p0 = scmp.ne.s32.totalorder %s5582_s1, %s4939_s19  ;;  %s30_s16 = int_to_ptr.vmem [resolvable:$true] %s29_s16 }
   0x4   :  { %p4943_p1 = scmp.lt.u32.totalorder %s4939_s19, %s5582_s1 }
   0x6   :  { %p4945_p2 = pnand %p4943_p1, %p4940_p0 }
   0x8   :  { %4948 = shalt.err (!%p4945_p2)
}
   0x9   :  { %s4949_s24 = scalar_lea.vmem %s30_s16, 1024  ;;  %p4954_p4 = scmp.lt.s32.totalorder %s30_s16, %s30_s16 }
   0xa   :  { %p4950_p3 = scmp.ne.s32.totalorder %s30_s16, %s4949_s24  ;;  %p4955_p5 = scmp.lt.s32.totalorder %s4949_s24, %s4949_s24 }
   0xc   :  { %p4956_p6 = por %p4955_p5, %p4954_p4 }
   0xe   :  { %p4957_p7 = pnand %p4956_p6, %p4950_p3 }
  0x10   :  { %4960 = shalt.err (!%p4957_p7)
}
  0x11   :  { %s5034_s25 = smov 128   ;;  %s5035_s26 = smov 8  }
  0x12   :  { %35 = dma.hbm_to_vmem [thread:$0]  %s5582_s1, 1024, %s30_s16, [#allocation8], %s5034_s25, %s5034_s25, %s5035_s26  }
  0x13   :  { %s5036_s29 = smov [#allocation4]   ;;  %s4961_s7 = scalar_lea.hbm %s5581_s0, 256 }
  0x14   :  { %s17_s30 = sshll.u32 %s5036_s29, 4  ;;  %p4962_p8 = scmp.ne.s32.totalorder %s5581_s0, %s4961_s7  ;;  %s18_s30 = int_to_ptr.vmem [resolvable:$true] %s17_s30 }
  0x15   :  { %p4965_p9 = scmp.lt.u32.totalorder %s4961_s7, %s5581_s0 }
  0x17   :  { %p4967_p10 = pnand %p4965_p9, %p4962_p8 }
  0x19   :  { %4970 = shalt.err (!%p4967_p10)
}
  0x1a   :  { %s4971_s12 = scalar_lea.vmem %s18_s30, 256  ;;  %p4976_p12 = scmp.lt.s32.totalorder %s18_s30, %s18_s30 }
  0x1b   :  { %p4972_p11 = scmp.ne.s32.totalorder %s18_s30, %s4971_s12  ;;  %p4977_p13 = scmp.lt.s32.totalorder %s4971_s12, %s4971_s12 }
  0x1d   :  { %p4978_p0 = por %p4977_p13, %p4976_p12 }
  0x1f   :  { %p4979_p1 = pnand %p4978_p0, %p4972_p11 }
  0x21   :  { %4982 = shalt.err (!%p4979_p1)
}
  0x22   :  { %s5037_s1 = smov 32   ;;  %s5038_s13 = smov 2  }
  0x23   :  { %23 = dma.hbm_to_vmem [thread:$0]  %s5581_s0, 256, %s18_s30, [#allocation5], %s5037_s1, %s5037_s1, %s5038_s13  }
  0x24   :  { %s5039_s16 = smov [#allocation9]   ;;  %s4983_s20 = scalar_lea.hbm %s5583_s2, 1536 }
  0x25   :  { %s41_s17 = sshll.u32 %s5039_s16, 4  ;;  %p4984_p2 = scmp.ne.s32.totalorder %s5583_s2, %s4983_s20  ;;  %s42_s17 = int_to_ptr.vmem [resolvable:$true] %s41_s17 }
  0x26   :  { %p4987_p3 = scmp.lt.u32.totalorder %s4983_s20, %s5583_s2 }
  0x28   :  { %p4989_p4 = pnand %p4987_p3, %p4984_p2 }
  0x2a   :  { %4992 = shalt.err (!%p4989_p4)
}
  0x2b   :  { %s4993_s27 = scalar_lea.vmem %s42_s17, 1536  ;;  %p4998_p6 = scmp.lt.s32.totalorder %s42_s17, %s42_s17 }
  0x2c   :  { %p4994_p5 = scmp.ne.s32.totalorder %s42_s17, %s4993_s27  ;;  %p4999_p7 = scmp.lt.s32.totalorder %s4993_s27, %s4993_s27 }
  0x2e   :  { %p5000_p8 = por %p4999_p7, %p4998_p6 }
  0x30   :  { %p5001_p9 = pnand %p5000_p8, %p4994_p5 }
  0x32   :  { %5004 = shalt.err (!%p5001_p9)
}
  0x33   :  { %47 = dma.hbm_to_vmem [thread:$0]  %s5583_s2, 1536, %s42_s17, [#allocation8], %s5034_s25, %s5034_s25, %s5035_s26  }
  0x34   :  { %5027 = dma.done.wait [#allocation5], 256  }
  0x35   :  { %5028 = vsyncadd [#allocation5], 4294967040 }
  0x36   :  { %5029 = dma.done.wait [#allocation8], 2560  }
  0x37   :  { %5030 = vsyncadd [#allocation8], 4294964736  ;;  %v5040_v0 = vmov 0.0|0.0   ;;  %vm5041_vm0 = vmmov 0   ;;  %v5042_v1 = vmov 0.0   ;;  %v59_v2 = vld [vmem:[#allocation9] sm:$0xff] }
  0x38   :  { %4495 = vmatprep.subr.bf16.mxu0 %v5040_v0  ;;  %4063 = vmatprep.mubr.msk.f32.mxu0 %vm5041_vm0, %v5042_v1  ;;  %v60_v3 = vld [vmem:[#allocation9 + $0x8] sm:$0xff]  ;;  %v61_v4 = vld [vmem:[#allocation9 + $0x10] sm:$0xff]  ;;  %v62_v6 = vld [vmem:[#allocation9 + $0x18] sm:$0xff]  ;;  %s5043_s2 = smov 64   ;;  %vm167_vm1 = vcmask 254976   ;;  %vm64_vm2 = vcmask 261120  }
  0x39   :  { %4501 = vmatprep.subr.bf16.mxu1 %v5040_v0  ;;  %4074 = vmatprep.mubr.msk.f32.mxu1 %vm5041_vm0, %v5042_v1  ;;  %v5120_v5 = vpack.c.bf16 %v60_v3, %v59_v2  ;;  %v5123_v7 = vpack.c.bf16 %v62_v6, %v61_v4  ;;  %v63_v8 = vld [vmem:[#allocation4] sm:$0x3]  ;;  %v170_v26 = vld [vmem:[#allocation4 + $0x2] sm:$0x3]  ;;  %v275_v44 = vld [vmem:[#allocation4 + $0x4] sm:$0x3] }
  0x3a   :  { %v380_v62 = vld [vmem:[#allocation4 + $0x6] sm:$0x3] }
  0x3b   :  { %4497 = vmatpush3.bf16.msra.mxu0 %v5120_v5  ;;  %4503 = vmatpush3.bf16.msra.mxu1 %v5120_v5 }
  0x3c   :  { %4498 = vmatprep.subr.bf16.mxu0 %v5040_v0  ;;  %4504 = vmatprep.subr.bf16.mxu1 %v5040_v0 }
  0x3f   :  { %4500 = vmatpush3.bf16.msra.mxu0 %v5123_v7  ;;  %4506 = vmatpush3.bf16.msra.mxu1 %v5123_v7 }
  0x40   :  { %4507 = vmatprep.subr.bf16.mxu0 %v5040_v0  ;;  %4513 = vmatprep.subr.bf16.mxu1 %v5040_v0 }
  0x42   :  { %4064 = vmatmul.mubr.f32.vlgmr.msra.gmra.mrb[0].mxu0 %v5042_v1 }
  0x43   :  { %4509 = vmatpush3.bf16.msra.mxu0 %v5120_v5  ;;  %4085 = vmatprep.mubr.msk.f32.mxu0 %vm5041_vm0, %v5042_v1 }
  0x44   :  { %4510 = vmatprep.subr.bf16.mxu0 %v5040_v0 }
  0x47   :  { %4512 = vmatpush3.bf16.msra.mxu0 %v5123_v7 }
  0x48   :  { %4519 = vmatprep.subr.bf16.mxu0 %v5040_v0 }
 0x115   :  { %v134_v9 = vpop.f32.mrb[0].mxu0 }
 0x116   :  { %v138_v10 = vadd.f32 %v134_v9, %v63_v8  ;;  %v4065_v11 = vpop.f32.mrb[1].mxu0 }
 0x118   :  { %4747 = vtanh.f32 %v138_v10  ;;  %v3791_v13 = vmul.f32 -1.442695, %v138_v10 }
 0x11a   :  { %4749 = vpow2.f32 %v3791_v13 }
 0x122   :  { %v4748_v12 = vpop.eup %4747 }
 0x123   :  { %148 = vrot.lane.b32.xlu0 %v4748_v12, %s5037_s1 }
 0x124   :  { %v4750_v14 = vpop.eup %4749 }
 0x125   :  { %v142_v15 = vadd.f32 1.0, %v4750_v14 }
 0x127   :  { %4751 = vrcp.f32 %v142_v15 }
 0x131   :  { %v4752_v16 = vpop.eup %4751 }
 0x132   :  { %v146_v19 = vmul.f32 0.0, %v4752_v16 }
 0x195   :  { %v149_v17 = vpop.permute.xlu0 %148 }
 0x196   :  { %v151_v18 = vmul.f32 %v4752_v16, %v149_v17 }
 0x198   :  { %153 = vrot.lane.b32.xlu0 %v151_v18, %s5037_s1 }
 0x20a   :  { %v154_v20 = vpop.permute.xlu0 %153 }
 0x20b   :  { %v156_v21 = vadd.f32 %v154_v20, %v146_v19  ;;  %v485_v20 = vld [vmem:[#allocation4 + $0x8] sm:$0x3] }
 0x20d   :  { %4753 = vtanh.f32 %v156_v21 }
 0x217   :  { %v4754_v22 = vpop.eup %4753 }
 0x218   :  { %159 = vrot.lane.b32.xlu1 %v4754_v22, %s5037_s1 }
 0x28a   :  { %v160_v23 = vpop.permute.xlu1 %159 }
 0x28b   :  { %v162_v24 = vmul.f32 %v4752_v16, %v160_v23 }
 0x28d   :  { %164 = vrot.lane.b32.xlu1 %v162_v24, %s5043_s2 }
 0x2ff   :  { %v165_v25 = vpop.permute.xlu1 %164 }
 0x300   :  { %168 = vst.msk [vmem:[#allocation2] sm:$0x3] %vm167_vm1, %v165_v25  ;;  %4075 = vmatmul.mubr.msk.f32.vlgmr.msra.gmra.mrb[0].mxu1 %vm64_vm2, %v165_v25 }
 0x301   :  { %4515 = vmatpush3.bf16.msra.mxu1 %v5120_v5  ;;  %4096 = vmatprep.mubr.msk.f32.mxu1 %vm5041_vm0, %v5042_v1 }
 0x302   :  { %4516 = vmatprep.subr.bf16.mxu1 %v5040_v0 }
 0x305   :  { %4518 = vmatpush3.bf16.msra.mxu1 %v5123_v7 }
 0x306   :  { %4525 = vmatprep.subr.bf16.mxu1 %v5040_v0 }
 0x3d3   :  { %v239_v27 = vpop.f32.mrb[0].mxu1 }
 0x3d4   :  { %v243_v28 = vadd.f32 %v239_v27, %v170_v26  ;;  %v4076_v29 = vpop.f32.mrb[1].mxu1 }
 0x3d6   :  { %4755 = vtanh.f32 %v243_v28  ;;  %v3793_v31 = vmul.f32 -1.442695, %v243_v28 }
 0x3d8   :  { %4757 = vpow2.f32 %v3793_v31 }
 0x3e0   :  { %v4756_v30 = vpop.eup %4755 }
 0x3e1   :  { %253 = vrot.lane.b32.xlu0 %v4756_v30, %s5037_s1 }
 0x3e2   :  { %v4758_v32 = vpop.eup %4757 }
 0x3e3   :  { %v247_v33 = vadd.f32 1.0, %v4758_v32 }
 0x3e5   :  { %4759 = vrcp.f32 %v247_v33 }
 0x3ef   :  { %v4760_v34 = vpop.eup %4759 }
 0x3f0   :  { %v251_v37 = vmul.f32 %v4760_v34, %v156_v21 }
 0x453   :  { %v254_v35 = vpop.permute.xlu0 %253 }
 0x454   :  { %v256_v36 = vmul.f32 %v4760_v34, %v254_v35 }
 0x456   :  { %258 = vrot.lane.b32.xlu1 %v256_v36, %s5037_s1 }
 0x4c8   :  { %v259_v38 = vpop.permute.xlu1 %258 }
 0x4c9   :  { %v261_v39 = vadd.f32 %v259_v38, %v251_v37  ;;  %v590_v38 = vld [vmem:[#allocation4 + $0xa] sm:$0x3] }
 0x4cb   :  { %4761 = vtanh.f32 %v261_v39 }
 0x4d5   :  { %v4762_v40 = vpop.eup %4761 }
 0x4d6   :  { %264 = vrot.lane.b32.xlu0 %v4762_v40, %s5037_s1 }
 0x548   :  { %v265_v41 = vpop.permute.xlu0 %264 }
 0x549   :  { %v267_v42 = vmul.f32 %v4760_v34, %v265_v41 }
 0x54b   :  { %269 = vrot.lane.b32.xlu1 %v267_v42, %s5043_s2 }
 0x5bd   :  { %v270_v43 = vpop.permute.xlu1 %269 }
 0x5be   :  { %273 = vst.msk [vmem:[#allocation2 + $0x2] sm:$0x3] %vm167_vm1, %v270_v43  ;;  %4086 = vmatmul.mubr.msk.f32.vlgmr.msra.gmra.mrb[2].mxu0 %vm64_vm2, %v270_v43 }
 0x5bf   :  { %4521 = vmatpush3.bf16.msra.mxu0 %v5120_v5  ;;  %4107 = vmatprep.mubr.msk.f32.mxu0 %vm5041_vm0, %v5042_v1 }
 0x5c0   :  { %4522 = vmatprep.subr.bf16.mxu0 %v5040_v0 }
 0x5c3   :  { %4524 = vmatpush3.bf16.msra.mxu0 %v5123_v7 }
 0x5c4   :  { %4531 = vmatprep.subr.bf16.mxu0 %v5040_v0 }
 0x691   :  { %v344_v45 = vpop.f32.mrb[2].mxu0 }
 0x692   :  { %v348_v46 = vadd.f32 %v344_v45, %v275_v44  ;;  %v4087_v47 = vpop.f32.mrb[3].mxu0 }
 0x694   :  { %4763 = vtanh.f32 %v348_v46  ;;  %v3795_v49 = vmul.f32 -1.442695, %v348_v46 }
 0x696   :  { %4765 = vpow2.f32 %v3795_v49 }
 0x69e   :  { %v4764_v48 = vpop.eup %4763 }
 0x69f   :  { %358 = vrot.lane.b32.xlu0 %v4764_v48, %s5037_s1 }
 0x6a0   :  { %v4766_v50 = vpop.eup %4765 }
 0x6a1   :  { %v352_v51 = vadd.f32 1.0, %v4766_v50 }
 0x6a3   :  { %4767 = vrcp.f32 %v352_v51 }
 0x6ad   :  { %v4768_v52 = vpop.eup %4767 }
 0x6ae   :  { %v356_v55 = vmul.f32 %v4768_v52, %v261_v39 }
 0x711   :  { %v359_v53 = vpop.permute.xlu0 %358 }
 0x712   :  { %v361_v54 = vmul.f32 %v4768_v52, %v359_v53  ;;  %v904_v53 = vld [vmem:[#allocation7] sm:$0xff] }
 0x714   :  { %363 = vrot.lane.b32.xlu1 %v361_v54, %s5037_s1  ;;  %v905_v54 = vld [vmem:[#allocation7 + $0x8] sm:$0xff] }
 0x786   :  { %v364_v56 = vpop.permute.xlu1 %363 }
 0x787   :  { %v366_v57 = vadd.f32 %v364_v56, %v356_v55  ;;  %v5206_v55 = vpack.c.bf16 %v905_v54, %v904_v53  ;;  %v906_v56 = vld [vmem:[#allocation7 + $0x10] sm:$0xff] }
 0x789   :  { %4769 = vtanh.f32 %v366_v57 }
 0x793   :  { %v4770_v58 = vpop.eup %4769 }
 0x794   :  { %369 = vrot.lane.b32.xlu0 %v4770_v58, %s5037_s1 }
 0x806   :  { %v370_v59 = vpop.permute.xlu0 %369 }
 0x807   :  { %v372_v60 = vmul.f32 %v4768_v52, %v370_v59 }
 0x809   :  { %374 = vrot.lane.b32.xlu1 %v372_v60, %s5043_s2  ;;  %v909_v60 = vld [vmem:[#allocation2] sm:$0x3] }
 0x87b   :  { %v375_v61 = vpop.permute.xlu1 %374 }
 0x87c   :  { %378 = vst.msk [vmem:[#allocation2 + $0x4] sm:$0x3] %vm167_vm1, %v375_v61  ;;  %4097 = vmatmul.mubr.msk.f32.vlgmr.msra.gmra.mrb[2].mxu1 %vm64_vm2, %v375_v61 }
 0x87d   :  { %4527 = vmatpush3.bf16.msra.mxu1 %v5120_v5  ;;  %4118 = vmatprep.mubr.msk.f32.mxu1 %vm5041_vm0, %v5042_v1 }
 0x87e   :  { %4528 = vmatprep.subr.bf16.mxu1 %v5040_v0 }
 0x881   :  { %4530 = vmatpush3.bf16.msra.mxu1 %v5123_v7 }
 0x882   :  { %4537 = vmatprep.subr.bf16.mxu1 %v5040_v0 }
 0x883   :  { %v1066_v61 = vld [vmem:[#allocation2 + $0x4] sm:$0x3] }
 0x94f   :  { %v449_v63 = vpop.f32.mrb[2].mxu1 }
 0x950   :  { %v453_v2 = vadd.f32 %v449_v63, %v380_v62  ;;  %v4098_v3 = vpop.f32.mrb[3].mxu1  ;;  %v695_v63 = vld [vmem:[#allocation4 + $0xc] sm:$0x3] }
 0x952   :  { %4771 = vtanh.f32 %v453_v2  ;;  %v3797_v6 = vmul.f32 -1.442695, %v453_v2 }
 0x954   :  { %4773 = vpow2.f32 %v3797_v6  ;;  %v5242_v6 = vld [vmem:[%s5584_s3] ss:$0 sm:$0xff] }
 0x95c   :  { %v4772_v4 = vpop.eup %4771 }
 0x95d   :  { %463 = vrot.lane.b32.xlu0 %v4772_v4, %s5037_s1 }
 0x95e   :  { %v4774_v8 = vpop.eup %4773 }
 0x95f   :  { %v457_v9 = vadd.f32 1.0, %v4774_v8 }
 0x961   :  { %4775 = vrcp.f32 %v457_v9 }
 0x96b   :  { %v4776_v10 = vpop.eup %4775 }
 0x96c   :  { %v461_v13 = vmul.f32 %v4776_v10, %v366_v57  ;;  %v907_v57 = vld [vmem:[#allocation7 + $0x18] sm:$0xff] }
 0x96d   :  { %v5211_v59 = vpack.c.bf16 %v907_v57, %v906_v56 }
 0x9cf   :  { %v464_v11 = vpop.permute.xlu0 %463 }
 0x9d0   :  { %v466_v12 = vmul.f32 %v4776_v10, %v464_v11 }
 0x9d2   :  { %468 = vrot.lane.b32.xlu1 %v466_v12, %s5037_s1 }
 0xa44   :  { %v469_v14 = vpop.permute.xlu1 %468 }
 0xa45   :  { %v471_v15 = vadd.f32 %v469_v14, %v461_v13 }
 0xa47   :  { %4777 = vtanh.f32 %v471_v15 }
 0xa51   :  { %v4778_v16 = vpop.eup %4777 }
 0xa52   :  { %474 = vrot.lane.b32.xlu0 %v4778_v16, %s5037_s1 }
 0xac4   :  { %v475_v17 = vpop.permute.xlu0 %474 }
 0xac5   :  { %v477_v18 = vmul.f32 %v4776_v10, %v475_v17 }
 0xac7   :  { %479 = vrot.lane.b32.xlu1 %v477_v18, %s5043_s2 }
 0xb39   :  { %v480_v19 = vpop.permute.xlu1 %479 }
 0xb3a   :  { %483 = vst.msk [vmem:[#allocation2 + $0x6] sm:$0x3] %vm167_vm1, %v480_v19  ;;  %4108 = vmatmul.mubr.msk.f32.vlgmr.msra.gmra.mrb[4].mxu0 %vm64_vm2, %v480_v19 }
 0xb3b   :  { %4533 = vmatpush3.bf16.msra.mxu0 %v5120_v5  ;;  %4129 = vmatprep.mubr.msk.f32.mxu0 %vm5041_vm0, %v5042_v1 }
 0xb3c   :  { %4534 = vmatprep.subr.bf16.mxu0 %v5040_v0 }
 0xb3f   :  { %4536 = vmatpush3.bf16.msra.mxu0 %v5123_v7 }
 0xb40   :  { %4543 = vmatprep.subr.bf16.mxu0 %v5040_v0 }
 0xc0d   :  { %v554_v21 = vpop.f32.mrb[4].mxu0 }
 0xc0e   :  { %v558_v22 = vadd.f32 %v554_v21, %v485_v20  ;;  %v4109_v23 = vpop.f32.mrb[5].mxu0 }
 0xc10   :  { %4779 = vtanh.f32 %v558_v22  ;;  %v3799_v25 = vmul.f32 -1.442695, %v558_v22 }
 0xc12   :  { %4781 = vpow2.f32 %v3799_v25 }
 0xc1a   :  { %v4780_v24 = vpop.eup %4779 }
 0xc1b   :  { %568 = vrot.lane.b32.xlu0 %v4780_v24, %s5037_s1 }
 0xc1c   :  { %v4782_v26 = vpop.eup %4781 }
 0xc1d   :  { %v562_v27 = vadd.f32 1.0, %v4782_v26 }
 0xc1f   :  { %4783 = vrcp.f32 %v562_v27 }
 0xc29   :  { %v4784_v28 = vpop.eup %4783 }
 0xc2a   :  { %v566_v31 = vmul.f32 %v4784_v28, %v471_v15 }
 0xc8d   :  { %v569_v29 = vpop.permute.xlu0 %568 }
 0xc8e   :  { %v571_v30 = vmul.f32 %v4784_v28, %v569_v29 }
 0xc90   :  { %573 = vrot.lane.b32.xlu1 %v571_v30, %s5037_s1 }
 0xd02   :  { %v574_v32 = vpop.permute.xlu1 %573 }
 0xd03   :  { %v576_v33 = vadd.f32 %v574_v32, %v566_v31  ;;  %v1523_v31 = vld [vmem:[#allocation9 + $0x20] sm:$0xff]  ;;  %v1524_v32 = vld [vmem:[#allocation9 + $0x28] sm:$0xff] }
 0xd05   :  { %4785 = vtanh.f32 %v576_v33 }
 0xd0f   :  { %v4786_v34 = vpop.eup %4785 }
 0xd10   :  { %579 = vrot.lane.b32.xlu0 %v4786_v34, %s5037_s1  ;;  %v1525_v34 = vld [vmem:[#allocation9 + $0x30] sm:$0xff] }
 0xd82   :  { %v580_v35 = vpop.permute.xlu0 %579 }
 0xd83   :  { %v582_v36 = vmul.f32 %v4784_v28, %v580_v35  ;;  %v1526_v35 = vld [vmem:[#allocation9 + $0x38] sm:$0xff] }
 0xd85   :  { %584 = vrot.lane.b32.xlu1 %v582_v36, %s5043_s2  ;;  %v990_v36 = vld [vmem:[#allocation2 + $0x2] sm:$0x3] }
 0xdf7   :  { %v585_v37 = vpop.permute.xlu1 %584 }
 0xdf8   :  { %588 = vst.msk [vmem:[#allocation2 + $0x8] sm:$0x3] %vm167_vm1, %v585_v37  ;;  %4119 = vmatmul.mubr.msk.f32.vlgmr.msra.gmra.mrb[4].mxu1 %vm64_vm2, %v585_v37 }
 0xdf9   :  { %4539 = vmatpush3.bf16.msra.mxu1 %v5120_v5  ;;  %4140 = vmatprep.mubr.msk.f32.mxu1 %vm5041_vm0, %v5042_v1 }
 0xdfa   :  { %4540 = vmatprep.subr.bf16.mxu1 %v5040_v0 }
 0xdfd   :  { %4542 = vmatpush3.bf16.msra.mxu1 %v5123_v7 }
 0xdfe   :  { %4549 = vmatprep.subr.bf16.mxu1 %v5040_v0 }
 0xdff   :  { %v1218_v62 = vld [vmem:[#allocation2 + $0x8] sm:$0x3] }
 0xecb   :  { %v659_v39 = vpop.f32.mrb[4].mxu1 }
 0xecc   :  { %v663_v40 = vadd.f32 %v659_v39, %v590_v38  ;;  %v4120_v41 = vpop.f32.mrb[5].mxu1  ;;  %v5269_v38 = vpack.c.bf16 %v1526_v35, %v1525_v34  ;;  %v1142_v39 = vld [vmem:[#allocation2 + $0x6] sm:$0x3] }
 0xecd   :  { %v800_v41 = vld [vmem:[#allocation4 + $0xe] sm:$0x3] }
 0xece   :  { %4787 = vtanh.f32 %v663_v40  ;;  %v3801_v43 = vmul.f32 -1.442695, %v663_v40 }
 0xed0   :  { %4789 = vpow2.f32 %v3801_v43 }
 0xed8   :  { %v4788_v42 = vpop.eup %4787 }
 0xed9   :  { %673 = vrot.lane.b32.xlu0 %v4788_v42, %s5037_s1 }
 0xeda   :  { %v4790_v5 = vpop.eup %4789 }
 0xedb   :  { %v667_v44 = vadd.f32 1.0, %v4790_v5 }
 0xedd   :  { %4791 = vrcp.f32 %v667_v44 }
 0xee7   :  { %v4792_v45 = vpop.eup %4791 }
 0xee8   :  { %v671_v7 = vmul.f32 %v4792_v45, %v576_v33  ;;  %v5262_v33 = vpack.c.bf16 %v1524_v32, %v1523_v31 }
 0xf4b   :  { %v674_v46 = vpop.permute.xlu0 %673 }
 0xf4c   :  { %v676_v47 = vmul.f32 %v4792_v45, %v674_v46 }
 0xf4e   :  { %678 = vrot.lane.b32.xlu1 %v676_v47, %s5037_s1 }
 0xfc0   :  { %v679_v48 = vpop.permute.xlu1 %678 }
 0xfc1   :  { %v5201_v49 = vadd.f32 %v679_v48, %v671_v7 }
 0xfc3   :  { %4793 = vtanh.f32 %v5201_v49 }
 0xfcd   :  { %v4794_v50 = vpop.eup %4793 }
 0xfce   :  { %684 = vrot.lane.b32.xlu0 %v4794_v50, %s5037_s1 }
0x1040   :  { %v685_v51 = vpop.permute.xlu0 %684 }
0x1041   :  { %v687_v52 = vmul.f32 %v4792_v45, %v685_v51 }
0x1043   :  { %689 = vrot.lane.b32.xlu1 %v687_v52, %s5043_s2 }
0x10b5   :  { %v690_v58 = vpop.permute.xlu1 %689 }
0x10b6   :  { %693 = vst.msk [vmem:[#allocation2 + $0xa] sm:$0x3] %vm167_vm1, %v690_v58  ;;  %4130 = vmatmul.mubr.msk.f32.vlgmr.msra.gmra.mrb[6].mxu0 %vm64_vm2, %v690_v58 }
0x10b7   :  { %4545 = vmatpush3.bf16.msra.mxu0 %v5206_v55  ;;  %4151 = vmatprep.mubr.msk.f32.mxu0 %vm5041_vm0, %v5042_v1 }
0x10b8   :  { %4546 = vmatprep.subr.bf16.mxu0 %v5040_v0 }
0x10bb   :  { %4548 = vmatpush3.bf16.msra.mxu0 %v5211_v59 }
0x10bc   :  { %4555 = vmatprep.subr.bf16.mxu0 %v5040_v0 }
0x10bd   :  { %v1294_v40 = vld [vmem:[#allocation2 + $0xa] sm:$0x3] }
0x10be   :  { %4152 = vmatmul.mubr.msk.f32.vlgmr.msra.gmra.mrb[8].mxu0 %vm64_vm2, %v909_v60 }
0x10bf   :  { %4557 = vmatpush3.bf16.msra.mxu0 %v5206_v55  ;;  %4173 = vmatprep.mubr.msk.f32.mxu0 %vm5041_vm0, %v5042_v1 }
0x10c0   :  { %4558 = vmatprep.subr.bf16.mxu0 %v5040_v0 }
0x10c3   :  { %4560 = vmatpush3.bf16.msra.mxu0 %v5211_v59 }
0x10c4   :  { %4567 = vmatprep.subr.bf16.mxu0 %v5040_v0 }
0x10c6   :  { %4174 = vmatmul.mubr.msk.f32.vlgmr.msra.gmra.mrb[10].mxu0 %vm64_vm2, %v1066_v61 }
0x10c7   :  { %4569 = vmatpush3.bf16.msra.mxu0 %v5206_v55  ;;  %4195 = vmatprep.mubr.msk.f32.mxu0 %vm5041_vm0, %v5042_v1 }
0x10c8   :  { %4570 = vmatprep.subr.bf16.mxu0 %v5040_v0 }
0x10cb   :  { %4572 = vmatpush3.bf16.msra.mxu0 %v5211_v59 }
0x10cc   :  { %4579 = vmatprep.subr.bf16.mxu0 %v5040_v0 }
0x10ce   :  { %4196 = vmatmul.mubr.msk.f32.vlgmr.msra.gmra.mrb[12].mxu0 %vm64_vm2, %v1218_v62 }
0x10cf   :  { %4581 = vmatpush3.bf16.msra.mxu0 %v5206_v55  ;;  %4217 = vmatprep.mubr.msk.f32.mxu0 %vm5041_vm0, %v5042_v1 }
0x10d0   :  { %4582 = vmatprep.subr.bf16.mxu0 %v5040_v0 }
0x10d3   :  { %4584 = vmatpush3.bf16.msra.mxu0 %v5211_v59 }
0x10d4   :  { %4591 = vmatprep.subr.bf16.mxu0 %v5040_v0 }
0x1189   :  { %v764_v2 = vpop.f32.mrb[6].mxu0 }
0x118a   :  { %v768_v3 = vadd.f32 %v764_v2, %v695_v63  ;;  %v4131_v4 = vpop.f32.mrb[7].mxu0 }
0x118c   :  { %4795 = vtanh.f32 %v768_v3  ;;  %v3803_v18 = vmul.f32 -1.442695, %v768_v3 }
0x118e   :  { %4797 = vpow2.f32 %v3803_v18 }
0x1191   :  { %v985_v8 = vpop.f32.mrb[8].mxu0 }
0x1192   :  { %v986_v9 = vadd.f32 %v5242_v6, %v985_v8  ;;  %v4153_v10 = vpop.f32.mrb[9].mxu0 }
0x1194   :  { %989 = vst [vmem:[#allocation3] sm:$0x3] %v986_v9 }
0x1196   :  { %v4796_v11 = vpop.eup %4795 }
0x1197   :  { %778 = vrot.lane.b32.xlu0 %v4796_v11, %s5037_s1 }
0x1198   :  { %v4798_v19 = vpop.eup %4797 }
0x1199   :  { %v1136_v12 = vpop.f32.mrb[10].mxu0  ;;  %v772_v20 = vadd.f32 1.0, %v4798_v19 }
0x119a   :  { %v1137_v13 = vadd.f32 %v5242_v6, %v1136_v12  ;;  %v4175_v14 = vpop.f32.mrb[11].mxu0 }
0x119b   :  { %4799 = vrcp.f32 %v772_v20  ;;  %v1527_v51 = vld [vmem:[#allocation3] sm:$0x3] }
0x119c   :  { %1141 = vst [vmem:[#allocation3 + $0x4] sm:$0x3] %v1137_v13 }
0x11a1   :  { %v1288_v15 = vpop.f32.mrb[12].mxu0 }
0x11a2   :  { %v1289_v16 = vadd.f32 %v5242_v6, %v1288_v15  ;;  %v4197_v17 = vpop.f32.mrb[13].mxu0 }
0x11a4   :  { %1293 = vst [vmem:[#allocation3 + $0x8] sm:$0x3] %v1289_v16 }
0x11a5   :  { %v4800_v21 = vpop.eup %4799 }
0x11a6   :  { %v776_v24 = vmul.f32 %v4800_v21, %v5201_v49 }
0x1209   :  { %v779_v22 = vpop.permute.xlu0 %778 }
0x120a   :  { %v781_v23 = vmul.f32 %v4800_v21, %v779_v22 }
0x120c   :  { %783 = vrot.lane.b32.xlu1 %v781_v23, %s5037_s1 }
0x127e   :  { %v784_v25 = vpop.permute.xlu1 %783 }
0x127f   :  { %v5250_v26 = vadd.f32 %v784_v25, %v776_v24 }
0x1281   :  { %4801 = vtanh.f32 %v5250_v26 }
0x128b   :  { %v4802_v27 = vpop.eup %4801 }
0x128c   :  { %789 = vrot.lane.b32.xlu0 %v4802_v27, %s5037_s1 }
0x12fe   :  { %v790_v28 = vpop.permute.xlu0 %789 }
0x12ff   :  { %v792_v29 = vmul.f32 %v4800_v21, %v790_v28 }
0x1301   :  { %794 = vrot.lane.b32.xlu1 %v792_v29, %s5043_s2 }
0x1373   :  { %v795_v30 = vpop.permute.xlu1 %794 }
0x1374   :  { %798 = vst.msk [vmem:[#allocation2 + $0xc] sm:$0x3] %vm167_vm1, %v795_v30  ;;  %4141 = vmatmul.mubr.msk.f32.vlgmr.msra.gmra.mrb[6].mxu1 %vm64_vm2, %v795_v30 }
0x1375   :  { %4551 = vmatpush3.bf16.msra.mxu1 %v5206_v55  ;;  %4162 = vmatprep.mubr.msk.f32.mxu1 %vm5041_vm0, %v5042_v1 }
0x1376   :  { %4552 = vmatprep.subr.bf16.mxu1 %v5040_v0 }
0x1379   :  { %4554 = vmatpush3.bf16.msra.mxu1 %v5211_v59 }
0x137a   :  { %4561 = vmatprep.subr.bf16.mxu1 %v5040_v0 }
0x137b   :  { %v1370_v37 = vld [vmem:[#allocation2 + $0xc] sm:$0x3] }
0x137c   :  { %4163 = vmatmul.mubr.msk.f32.vlgmr.msra.gmra.mrb[8].mxu1 %vm64_vm2, %v990_v36  ;;  %4218 = vmatmul.mubr.msk.f32.vlgmr.msra.gmra.mrb[14].mxu0 %vm64_vm2, %v1370_v37 }
0x137d   :  { %4563 = vmatpush3.bf16.msra.mxu1 %v5206_v55  ;;  %4593 = vmatpush3.bf16.msra.mxu0 %v5262_v33 }
0x137e   :  { %4564 = vmatprep.subr.bf16.mxu1 %v5040_v0  ;;  %4594 = vmatprep.subr.bf16.mxu0 %v5040_v0 }
0x137f   :  { %4184 = vmatprep.mubr.msk.f32.mxu1 %vm5041_vm0, %v5042_v1  ;;  %4239 = vmatprep.mubr.msk.f32.mxu0 %vm5041_vm0, %v5042_v1 }
0x1381   :  { %4566 = vmatpush3.bf16.msra.mxu1 %v5211_v59  ;;  %4596 = vmatpush3.bf16.msra.mxu0 %v5269_v38 }
0x1382   :  { %4573 = vmatprep.subr.bf16.mxu1 %v5040_v0  ;;  %4603 = vmatprep.subr.bf16.mxu0 %v5040_v0 }
0x1384   :  { %4185 = vmatmul.mubr.msk.f32.vlgmr.msra.gmra.mrb[10].mxu1 %vm64_vm2, %v1142_v39  ;;  %4240 = vmatmul.mubr.f32.vlgmr.msra.gmra.mrb[16].mxu0 %v5042_v1 }
0x1385   :  { %4575 = vmatpush3.bf16.msra.mxu1 %v5206_v55  ;;  %4206 = vmatprep.mubr.msk.f32.mxu1 %vm5041_vm0, %v5042_v1 }
0x1386   :  { %4576 = vmatprep.subr.bf16.mxu1 %v5040_v0  ;;  %4605 = vmatpush3.bf16.msra.mxu0 %v5262_v33 }
0x1387   :  { %4606 = vmatprep.subr.bf16.mxu0 %v5040_v0  ;;  %4261 = vmatprep.mubr.msk.f32.mxu0 %vm5041_vm0, %v5042_v1 }
0x1389   :  { %4578 = vmatpush3.bf16.msra.mxu1 %v5211_v59 }
0x138a   :  { %4585 = vmatprep.subr.bf16.mxu1 %v5040_v0  ;;  %4608 = vmatpush3.bf16.msra.mxu0 %v5269_v38 }
0x138b   :  { %4615 = vmatprep.subr.bf16.mxu0 %v5040_v0 }
0x138c   :  { %4207 = vmatmul.mubr.msk.f32.vlgmr.msra.gmra.mrb[12].mxu1 %vm64_vm2, %v1294_v40 }
0x138d   :  { %4587 = vmatpush3.bf16.msra.mxu1 %v5206_v55  ;;  %4228 = vmatprep.mubr.msk.f32.mxu1 %vm5041_vm0, %v5042_v1 }
0x138e   :  { %4588 = vmatprep.subr.bf16.mxu1 %v5040_v0 }
0x1391   :  { %4590 = vmatpush3.bf16.msra.mxu1 %v5211_v59 }
0x1392   :  { %4597 = vmatprep.subr.bf16.mxu1 %v5040_v0 }
0x1447   :  { %v869_v42 = vpop.f32.mrb[6].mxu1 }
0x1448   :  { %v873_v43 = vadd.f32 %v869_v42, %v800_v41  ;;  %v4142_v5 = vpop.f32.mrb[7].mxu1 }
0x144a   :  { %4803 = vtanh.f32 %v873_v43  ;;  %v3805_v61 = vmul.f32 -1.442695, %v873_v43 }
0x144f   :  { %v1060_v44 = vpop.f32.mrb[8].mxu1  ;;  %v1440_v45 = vpop.f32.mrb[14].mxu0 }
0x1450   :  { %v1061_v46 = vadd.f32 %v5242_v6, %v1060_v44  ;;  %v4164_v47 = vpop.f32.mrb[9].mxu1  ;;  %v1441_v7 = vadd.f32 %v5242_v6, %v1440_v45  ;;  %v4219_v48 = vpop.f32.mrb[15].mxu0 }
0x1452   :  { %1065 = vst [vmem:[#allocation3 + $0x2] sm:$0x3] %v1061_v46  ;;  %1445 = vst [vmem:[#allocation3 + $0xc] sm:$0x3] %v1441_v7 }
0x1454   :  { %v4804_v49 = vpop.eup %4803 }
0x1455   :  { %883 = vrot.lane.b32.xlu0 %v4804_v49, %s5037_s1  ;;  %v1731_v49 = vld [vmem:[#allocation3 + $0x4] sm:$0x3] }
0x1457   :  { %v1212_v50 = vpop.f32.mrb[10].mxu1  ;;  %v1594_v52 = vpop.f32.mrb[16].mxu0 }
0x1458   :  { %v1213_v53 = vadd.f32 %v5242_v6, %v1212_v50  ;;  %v1598_v54 = vadd.f32 %v1594_v52, %v1527_v51  ;;  %v4186_v55 = vpop.f32.mrb[11].mxu1  ;;  %v4241_v56 = vpop.f32.mrb[17].mxu0 }
0x1459   :  { %v1628_v32 = vld [vmem:[#allocation3 + $0x2] sm:$0x3] }
0x145a   :  { %1217 = vst [vmem:[#allocation3 + $0x6] sm:$0x3] %v1213_v53  ;;  %4805 = vtanh.f32 %v1598_v54  ;;  %v3815_v63 = vmul.f32 -1.442695, %v1598_v54 }
0x145b   :  { %4807 = vpow2.f32 %v3805_v61 }
0x145c   :  { %4809 = vpow2.f32 %v3815_v63 }
0x145f   :  { %v1364_v57 = vpop.f32.mrb[12].mxu1 }
0x1460   :  { %v1365_v58 = vadd.f32 %v5242_v6, %v1364_v57  ;;  %v4208_v59 = vpop.f32.mrb[13].mxu1 }
0x1462   :  { %1369 = vst [vmem:[#allocation3 + $0xa] sm:$0x3] %v1365_v58 }
0x1464   :  { %v4806_v60 = vpop.eup %4805 }
0x1465   :  { %1608 = vrot.lane.b32.xlu1 %v4806_v60, %s5037_s1  ;;  %v4808_v62 = vpop.eup %4807 }
0x1466   :  { %v877_v2 = vadd.f32 1.0, %v4808_v62  ;;  %v4810_v3 = vpop.eup %4809 }
0x1467   :  { %v1602_v10 = vadd.f32 1.0, %v4810_v3 }
0x1468   :  { %4811 = vrcp.f32 %v877_v2 }
0x1469   :  { %4813 = vrcp.f32 %v1602_v10 }
0x1472   :  { %v4812_v4 = vpop.eup %4811 }
0x1473   :  { %v4814_v11 = vpop.eup %4813  ;;  %v881_v14 = vmul.f32 %v4812_v4, %v5250_v26 }
0x1474   :  { %v1606_v18 = vmul.f32 0.0, %v4814_v11 }
0x14c7   :  { %v884_v8 = vpop.permute.xlu0 %883 }
0x14c8   :  { %v886_v9 = vmul.f32 %v4812_v4, %v884_v8  ;;  %v1834_v8 = vld [vmem:[#allocation3 + $0x6] sm:$0x3] }
0x14ca   :  { %888 = vrot.lane.b32.xlu0 %v886_v9, %s5037_s1 }
0x14d7   :  { %v1609_v12 = vpop.permute.xlu1 %1608 }
0x14d8   :  { %v1611_v13 = vmul.f32 %v4814_v11, %v1609_v12 }
0x14da   :  { %1613 = vrot.lane.b32.xlu1 %v1611_v13, %s5037_s1 }
0x153c   :  { %v889_v15 = vpop.permute.xlu0 %888 }
0x153d   :  { %v891_v16 = vadd.f32 %v889_v15, %v881_v14 }
0x153f   :  { %4815 = vtanh.f32 %v891_v16 }
0x1549   :  { %v4816_v17 = vpop.eup %4815 }
0x154a   :  { %894 = vrot.lane.b32.xlu0 %v4816_v17, %s5037_s1 }
0x154c   :  { %v1614_v19 = vpop.permute.xlu1 %1613 }
0x154d   :  { %v1616_v20 = vadd.f32 %v1614_v19, %v1606_v18 }
0x154f   :  { %4817 = vtanh.f32 %v1616_v20 }
0x1559   :  { %v4818_v21 = vpop.eup %4817 }
0x155a   :  { %1619 = vrot.lane.b32.xlu1 %v4818_v21, %s5037_s1 }
0x15bc   :  { %v895_v22 = vpop.permute.xlu0 %894 }
0x15bd   :  { %v897_v23 = vmul.f32 %v4812_v4, %v895_v22 }
0x15bf   :  { %899 = vrot.lane.b32.xlu0 %v897_v23, %s5043_s2 }
0x15cc   :  { %v1620_v24 = vpop.permute.xlu1 %1619 }
0x15cd   :  { %v1622_v25 = vmul.f32 %v4814_v11, %v1620_v24 }
0x15cf   :  { %1624 = vrot.lane.b32.xlu1 %v1622_v25, %s5043_s2 }
0x1631   :  { %v900_v26 = vpop.permute.xlu0 %899 }
0x1632   :  { %903 = vst.msk [vmem:[#allocation2 + $0xe] sm:$0x3] %vm167_vm1, %v900_v26  ;;  %v1937_v26 = vld [vmem:[#allocation3 + $0x8] sm:$0x3] }
0x1639   :  { %v1446_v27 = vld [vmem:[#allocation2 + $0xe] sm:$0x3] }
0x163a   :  { %4229 = vmatmul.mubr.msk.f32.vlgmr.msra.gmra.mrb[14].mxu1 %vm64_vm2, %v1446_v27 }
0x163b   :  { %4599 = vmatpush3.bf16.msra.mxu1 %v5262_v33  ;;  %4250 = vmatprep.mubr.msk.f32.mxu1 %vm5041_vm0, %v5042_v1 }
0x163c   :  { %4600 = vmatprep.subr.bf16.mxu1 %v5040_v0 }
0x163f   :  { %4602 = vmatpush3.bf16.msra.mxu1 %v5269_v38 }
0x1640   :  { %4609 = vmatprep.subr.bf16.mxu1 %v5040_v0 }
0x1641   :  { %v1625_v28 = vpop.permute.xlu1 %1624 }
0x1642   :  { %1627 = vst.msk [vmem:[#allocation2] sm:$0x3] %vm167_vm1, %v1625_v28  ;;  %4251 = vmatmul.mubr.msk.f32.vlgmr.msra.gmra.mrb[16].mxu1 %vm64_vm2, %v1625_v28 }
0x1643   :  { %4611 = vmatpush3.bf16.msra.mxu1 %v5262_v33  ;;  %4272 = vmatprep.mubr.msk.f32.mxu1 %vm5041_vm0, %v5042_v1 }
0x1644   :  { %4612 = vmatprep.subr.bf16.mxu1 %v5040_v0 }
0x1647   :  { %4614 = vmatpush3.bf16.msra.mxu1 %v5269_v38 }
0x1648   :  { %4621 = vmatprep.subr.bf16.mxu1 %v5040_v0 }
0x170d   :  { %v1516_v29 = vpop.f32.mrb[14].mxu1 }
0x170e   :  { %v1517_v30 = vadd.f32 %v5242_v6, %v1516_v29  ;;  %v4230_v31 = vpop.f32.mrb[15].mxu1 }
0x1710   :  { %1521 = vst [vmem:[#allocation3 + $0xe] sm:$0x3] %v1517_v30 }
0x1715   :  { %v1697_v34 = vpop.f32.mrb[16].mxu1 }
0x1716   :  { %v1701_v35 = vadd.f32 %v1697_v34, %v1628_v32  ;;  %v4252_v36 = vpop.f32.mrb[17].mxu1 }
0x1718   :  { %4819 = vtanh.f32 %v1701_v35  ;;  %v3817_v39 = vmul.f32 -1.442695, %v1701_v35 }
0x171a   :  { %4821 = vpow2.f32 %v3817_v39 }
0x1722   :  { %v4820_v37 = vpop.eup %4819 }
0x1723   :  { %1711 = vrot.lane.b32.xlu0 %v4820_v37, %s5037_s1 }
0x1724   :  { %v4822_v40 = vpop.eup %4821 }
0x1725   :  { %v1705_v41 = vadd.f32 1.0, %v4822_v40 }
0x1727   :  { %4823 = vrcp.f32 %v1705_v41 }
0x1731   :  { %v4824_v42 = vpop.eup %4823 }
0x1732   :  { %v1709_v6 = vmul.f32 %v4824_v42, %v1616_v20 }
0x1795   :  { %v1712_v43 = vpop.permute.xlu0 %1711 }
0x1796   :  { %v1714_v5 = vmul.f32 %v4824_v42, %v1712_v43 }
0x1798   :  { %1716 = vrot.lane.b32.xlu1 %v1714_v5, %s5037_s1 }
0x180a   :  { %v1717_v44 = vpop.permute.xlu1 %1716 }
0x180b   :  { %v1719_v45 = vadd.f32 %v1717_v44, %v1709_v6  ;;  %v2040_v44 = vld [vmem:[#allocation3 + $0xa] sm:$0x3] }
0x180d   :  { %4825 = vtanh.f32 %v1719_v45 }
0x1817   :  { %v4826_v46 = vpop.eup %4825 }
0x1818   :  { %1722 = vrot.lane.b32.xlu0 %v4826_v46, %s5037_s1 }
0x188a   :  { %v1723_v47 = vpop.permute.xlu0 %1722 }
0x188b   :  { %v1725_v7 = vmul.f32 %v4824_v42, %v1723_v47 }
0x188d   :  { %1727 = vrot.lane.b32.xlu1 %v1725_v7, %s5043_s2 }
0x18ff   :  { %v1728_v48 = vpop.permute.xlu1 %1727 }
0x1900   :  { %1730 = vst.msk [vmem:[#allocation2 + $0x2] sm:$0x3] %vm167_vm1, %v1728_v48  ;;  %4262 = vmatmul.mubr.msk.f32.vlgmr.msra.gmra.mrb[18].mxu0 %vm64_vm2, %v1728_v48 }
0x1901   :  { %4617 = vmatpush3.bf16.msra.mxu0 %v5262_v33  ;;  %4283 = vmatprep.mubr.msk.f32.mxu0 %vm5041_vm0, %v5042_v1 }
0x1902   :  { %4618 = vmatprep.subr.bf16.mxu0 %v5040_v0 }
0x1905   :  { %4620 = vmatpush3.bf16.msra.mxu0 %v5269_v38 }
0x1906   :  { %4627 = vmatprep.subr.bf16.mxu0 %v5040_v0 }
0x19d3   :  { %v1800_v50 = vpop.f32.mrb[18].mxu0 }
0x19d4   :  { %v1804_v51 = vadd.f32 %v1800_v50, %v1731_v49  ;;  %v4263_v52 = vpop.f32.mrb[19].mxu0 }
0x19d6   :  { %4827 = vtanh.f32 %v1804_v51  ;;  %v3819_v54 = vmul.f32 -1.442695, %v1804_v51 }
0x19d8   :  { %4829 = vpow2.f32 %v3819_v54 }
0x19e0   :  { %v4828_v53 = vpop.eup %4827 }
0x19e1   :  { %1814 = vrot.lane.b32.xlu0 %v4828_v53, %s5037_s1 }
0x19e2   :  { %v4830_v55 = vpop.eup %4829 }
0x19e3   :  { %v1808_v56 = vadd.f32 1.0, %v4830_v55 }
0x19e5   :  { %4831 = vrcp.f32 %v1808_v56 }
0x19ef   :  { %v4832_v57 = vpop.eup %4831 }
0x19f0   :  { %v1812_v60 = vmul.f32 %v4832_v57, %v1719_v45 }
0x1a53   :  { %v1815_v58 = vpop.permute.xlu0 %1814 }
0x1a54   :  { %v1817_v59 = vmul.f32 %v4832_v57, %v1815_v58  ;;  %v2350_v58 = vld [vmem:[#allocation7 + $0x20] sm:$0xff] }
0x1a56   :  { %1819 = vrot.lane.b32.xlu1 %v1817_v59, %s5037_s1  ;;  %v2351_v59 = vld [vmem:[#allocation7 + $0x28] sm:$0xff] }
0x1ac8   :  { %v1820_v61 = vpop.permute.xlu1 %1819 }
0x1ac9   :  { %v1822_v62 = vadd.f32 %v1820_v61, %v1812_v60  ;;  %v5387_v60 = vpack.c.bf16 %v2351_v59, %v2350_v58  ;;  %v2352_v61 = vld [vmem:[#allocation7 + $0x30] sm:$0xff] }
0x1acb   :  { %4833 = vtanh.f32 %v1822_v62 }
0x1ad5   :  { %v4834_v63 = vpop.eup %4833 }
0x1ad6   :  { %1825 = vrot.lane.b32.xlu0 %v4834_v63, %s5037_s1 }
0x1b48   :  { %v1826_v2 = vpop.permute.xlu0 %1825 }
0x1b49   :  { %v1828_v3 = vmul.f32 %v4832_v57, %v1826_v2 }
0x1b4b   :  { %1830 = vrot.lane.b32.xlu1 %v1828_v3, %s5043_s2  ;;  %v2356_v3 = vld [vmem:[#allocation2] sm:$0x3] }
0x1bbd   :  { %v1831_v4 = vpop.permute.xlu1 %1830 }
0x1bbe   :  { %1833 = vst.msk [vmem:[#allocation2 + $0x4] sm:$0x3] %vm167_vm1, %v1831_v4  ;;  %4273 = vmatmul.mubr.msk.f32.vlgmr.msra.gmra.mrb[18].mxu1 %vm64_vm2, %v1831_v4 }
0x1bbf   :  { %4623 = vmatpush3.bf16.msra.mxu1 %v5262_v33  ;;  %4294 = vmatprep.mubr.msk.f32.mxu1 %vm5041_vm0, %v5042_v1 }
0x1bc0   :  { %4624 = vmatprep.subr.bf16.mxu1 %v5040_v0 }
0x1bc3   :  { %4626 = vmatpush3.bf16.msra.mxu1 %v5269_v38 }
0x1bc4   :  { %4633 = vmatprep.subr.bf16.mxu1 %v5040_v0 }
0x1bc5   :  { %v2512_v4 = vld [vmem:[#allocation2 + $0x4] sm:$0x3] }
0x1c91   :  { %v1903_v9 = vpop.f32.mrb[18].mxu1 }
0x1c92   :  { %v1907_v10 = vadd.f32 %v1903_v9, %v1834_v8  ;;  %v4274_v11 = vpop.f32.mrb[19].mxu1  ;;  %v2143_v9 = vld [vmem:[#allocation3 + $0xc] sm:$0x3] }
0x1c94   :  { %4835 = vtanh.f32 %v1907_v10  ;;  %v3821_v13 = vmul.f32 -1.442695, %v1907_v10 }
0x1c96   :  { %4837 = vpow2.f32 %v3821_v13  ;;  %v5423_v13 = vld [vmem:[%s5584_s3 + $0x1] ss:$0 sm:$0xff]  ;;  %s5044_s3 = smov [#allocation10]  }
0x1c97   :  { %s3781_s5 = sshll.u32 %s5044_s3, 4  ;;  %s3782_s5 = int_to_ptr.vmem [resolvable:$true] %s3781_s5 }
0x1c98   :  { %s5005_s6 = scalar_lea.vmem %s3782_s5, 32  ;;  %p5010_p11 = scmp.lt.s32.totalorder %s3782_s5, %s3782_s5 }
0x1c99   :  { %p5006_p10 = scmp.ne.s32.totalorder %s3782_s5, %s5005_s6  ;;  %p5011_p12 = scmp.lt.s32.totalorder %s5005_s6, %s5005_s6 }
0x1c9b   :  { %p5012_p13 = por %p5011_p12, %p5010_p11 }
0x1c9d   :  { %p5013_p0 = pnand %p5012_p13, %p5006_p10 }
0x1c9e   :  { %v4836_v12 = vpop.eup %4835 }
0x1c9f   :  { %1917 = vrot.lane.b32.xlu0 %v4836_v12, %s5037_s1 }
0x1ca0   :  { %v4838_v14 = vpop.eup %4837 }
0x1ca1   :  { %v1911_v15 = vadd.f32 1.0, %v4838_v14 }
0x1ca3   :  { %4839 = vrcp.f32 %v1911_v15 }
0x1cad   :  { %v4840_v16 = vpop.eup %4839 }
0x1cae   :  { %v1915_v19 = vmul.f32 %v4840_v16, %v1822_v62  ;;  %v2353_v62 = vld [vmem:[#allocation7 + $0x38] sm:$0xff] }
0x1caf   :  { %v5392_v2 = vpack.c.bf16 %v2353_v62, %v2352_v61 }
0x1d11   :  { %v1918_v17 = vpop.permute.xlu0 %1917 }
0x1d12   :  { %v1920_v18 = vmul.f32 %v4840_v16, %v1918_v17 }
0x1d14   :  { %1922 = vrot.lane.b32.xlu1 %v1920_v18, %s5037_s1 }
0x1d86   :  { %v1923_v20 = vpop.permute.xlu1 %1922 }
0x1d87   :  { %v1925_v21 = vadd.f32 %v1923_v20, %v1915_v19 }
0x1d89   :  { %4841 = vtanh.f32 %v1925_v21 }
0x1d93   :  { %v4842_v22 = vpop.eup %4841 }
0x1d94   :  { %1928 = vrot.lane.b32.xlu0 %v4842_v22, %s5037_s1 }
0x1e06   :  { %v1929_v23 = vpop.permute.xlu0 %1928 }
0x1e07   :  { %v1931_v24 = vmul.f32 %v4840_v16, %v1929_v23 }
0x1e09   :  { %1933 = vrot.lane.b32.xlu1 %v1931_v24, %s5043_s2 }
0x1e7b   :  { %v1934_v25 = vpop.permute.xlu1 %1933 }
0x1e7c   :  { %1936 = vst.msk [vmem:[#allocation2 + $0x6] sm:$0x3] %vm167_vm1, %v1934_v25  ;;  %4284 = vmatmul.mubr.msk.f32.vlgmr.msra.gmra.mrb[20].mxu0 %vm64_vm2, %v1934_v25 }
0x1e7d   :  { %4629 = vmatpush3.bf16.msra.mxu0 %v5262_v33  ;;  %4305 = vmatprep.mubr.msk.f32.mxu0 %vm5041_vm0, %v5042_v1 }
0x1e7e   :  { %4630 = vmatprep.subr.bf16.mxu0 %v5040_v0 }
0x1e81   :  { %4632 = vmatpush3.bf16.msra.mxu0 %v5269_v38 }
0x1e82   :  { %4639 = vmatprep.subr.bf16.mxu0 %v5040_v0 }
0x1f4f   :  { %v2006_v27 = vpop.f32.mrb[20].mxu0 }
0x1f50   :  { %v2010_v28 = vadd.f32 %v2006_v27, %v1937_v26  ;;  %v4285_v29 = vpop.f32.mrb[21].mxu0 }
0x1f52   :  { %4843 = vtanh.f32 %v2010_v28  ;;  %v3823_v31 = vmul.f32 -1.442695, %v2010_v28 }
0x1f54   :  { %4845 = vpow2.f32 %v3823_v31 }
0x1f5c   :  { %v4844_v30 = vpop.eup %4843 }
0x1f5d   :  { %2020 = vrot.lane.b32.xlu0 %v4844_v30, %s5037_s1 }
0x1f5e   :  { %v4846_v32 = vpop.eup %4845 }
0x1f5f   :  { %v2014_v34 = vadd.f32 1.0, %v4846_v32 }
0x1f61   :  { %4847 = vrcp.f32 %v2014_v34 }
0x1f6b   :  { %v4848_v35 = vpop.eup %4847 }
0x1f6c   :  { %v2018_v39 = vmul.f32 %v4848_v35, %v1925_v21 }
0x1fcf   :  { %v2021_v36 = vpop.permute.xlu0 %2020 }
0x1fd0   :  { %v2023_v37 = vmul.f32 %v4848_v35, %v2021_v36 }
0x1fd2   :  { %2025 = vrot.lane.b32.xlu1 %v2023_v37, %s5037_s1 }
0x2044   :  { %v2026_v40 = vpop.permute.xlu1 %2025 }
0x2045   :  { %v2028_v41 = vadd.f32 %v2026_v40, %v2018_v39  ;;  %v2963_v39 = vld [vmem:[#allocation9 + $0x40] sm:$0xff]  ;;  %v2964_v40 = vld [vmem:[#allocation9 + $0x48] sm:$0xff] }
0x2047   :  { %4849 = vtanh.f32 %v2028_v41 }
0x2051   :  { %v4850_v42 = vpop.eup %4849 }
0x2052   :  { %2031 = vrot.lane.b32.xlu0 %v4850_v42, %s5037_s1  ;;  %v2965_v42 = vld [vmem:[#allocation9 + $0x50] sm:$0xff] }
0x20c4   :  { %v2032_v43 = vpop.permute.xlu0 %2031 }
0x20c5   :  { %v2034_v5 = vmul.f32 %v4848_v35, %v2032_v43  ;;  %v2966_v43 = vld [vmem:[#allocation9 + $0x58] sm:$0xff] }
0x20c7   :  { %2036 = vrot.lane.b32.xlu1 %v2034_v5, %s5043_s2  ;;  %v2437_v5 = vld [vmem:[#allocation2 + $0x2] sm:$0x3] }
0x2139   :  { %v2037_v6 = vpop.permute.xlu1 %2036 }
0x213a   :  { %2039 = vst.msk [vmem:[#allocation2 + $0x8] sm:$0x3] %vm167_vm1, %v2037_v6  ;;  %4295 = vmatmul.mubr.msk.f32.vlgmr.msra.gmra.mrb[20].mxu1 %vm64_vm2, %v2037_v6 }
0x213b   :  { %4635 = vmatpush3.bf16.msra.mxu1 %v5262_v33  ;;  %4316 = vmatprep.mubr.msk.f32.mxu1 %vm5041_vm0, %v5042_v1 }
0x213c   :  { %4636 = vmatprep.subr.bf16.mxu1 %v5040_v0 }
0x213f   :  { %4638 = vmatpush3.bf16.msra.mxu1 %v5269_v38 }
0x2140   :  { %4645 = vmatprep.subr.bf16.mxu1 %v5040_v0 }
0x2141   :  { %v2662_v8 = vld [vmem:[#allocation2 + $0x8] sm:$0x3] }
0x220d   :  { %v2109_v45 = vpop.f32.mrb[20].mxu1 }
0x220e   :  { %v2113_v46 = vadd.f32 %v2109_v45, %v2040_v44  ;;  %v4296_v47 = vpop.f32.mrb[21].mxu1  ;;  %v5450_v44 = vpack.c.bf16 %v2966_v43, %v2965_v42  ;;  %v2587_v45 = vld [vmem:[#allocation2 + $0x6] sm:$0x3] }
0x220f   :  { %v2246_v47 = vld [vmem:[#allocation3 + $0xe] sm:$0x3] }
0x2210   :  { %4851 = vtanh.f32 %v2113_v46  ;;  %v3825_v48 = vmul.f32 -1.442695, %v2113_v46 }
0x2212   :  { %4853 = vpow2.f32 %v3825_v48 }
0x221a   :  { %v4852_v7 = vpop.eup %4851 }
0x221b   :  { %2123 = vrot.lane.b32.xlu0 %v4852_v7, %s5037_s1 }
0x221c   :  { %v4854_v33 = vpop.eup %4853 }
0x221d   :  { %v2117_v49 = vadd.f32 1.0, %v4854_v33 }
0x221f   :  { %4855 = vrcp.f32 %v2117_v49 }
0x2229   :  { %v4856_v50 = vpop.eup %4855 }
0x222a   :  { %v2121_v38 = vmul.f32 %v4856_v50, %v2028_v41  ;;  %v5443_v41 = vpack.c.bf16 %v2964_v40, %v2963_v39 }
0x228d   :  { %v2124_v51 = vpop.permute.xlu0 %2123 }
0x228e   :  { %v2126_v52 = vmul.f32 %v4856_v50, %v2124_v51 }
0x2290   :  { %2128 = vrot.lane.b32.xlu1 %v2126_v52, %s5037_s1 }
0x2302   :  { %v2129_v53 = vpop.permute.xlu1 %2128 }
0x2303   :  { %v5382_v54 = vadd.f32 %v2129_v53, %v2121_v38 }
0x2305   :  { %4857 = vtanh.f32 %v5382_v54 }
0x230f   :  { %v4858_v55 = vpop.eup %4857 }
0x2310   :  { %2134 = vrot.lane.b32.xlu0 %v4858_v55, %s5037_s1 }
0x2382   :  { %v2135_v56 = vpop.permute.xlu0 %2134 }
0x2383   :  { %v2137_v57 = vmul.f32 %v4856_v50, %v2135_v56 }
0x2385   :  { %2139 = vrot.lane.b32.xlu1 %v2137_v57, %s5043_s2 }
0x23f7   :  { %v2140_v63 = vpop.permute.xlu1 %2139 }
0x23f8   :  { %2142 = vst.msk [vmem:[#allocation2 + $0xa] sm:$0x3] %vm167_vm1, %v2140_v63  ;;  %4306 = vmatmul.mubr.msk.f32.vlgmr.msra.gmra.mrb[22].mxu0 %vm64_vm2, %v2140_v63 }
0x23f9   :  { %4641 = vmatpush3.bf16.msra.mxu0 %v5387_v60  ;;  %4327 = vmatprep.mubr.msk.f32.mxu0 %vm5041_vm0, %v5042_v1 }
0x23fa   :  { %4642 = vmatprep.subr.bf16.mxu0 %v5040_v0 }
0x23fd   :  { %4644 = vmatpush3.bf16.msra.mxu0 %v5392_v2 }
0x23fe   :  { %4651 = vmatprep.subr.bf16.mxu0 %v5040_v0 }
0x23ff   :  { %v2737_v46 = vld [vmem:[#allocation2 + $0xa] sm:$0x3] }
0x2400   :  { %4328 = vmatmul.mubr.msk.f32.vlgmr.msra.gmra.mrb[24].mxu0 %vm64_vm2, %v2356_v3 }
0x2401   :  { %4653 = vmatpush3.bf16.msra.mxu0 %v5387_v60  ;;  %4349 = vmatprep.mubr.msk.f32.mxu0 %vm5041_vm0, %v5042_v1 }
0x2402   :  { %4654 = vmatprep.subr.bf16.mxu0 %v5040_v0 }
0x2405   :  { %4656 = vmatpush3.bf16.msra.mxu0 %v5392_v2 }
0x2406   :  { %4663 = vmatprep.subr.bf16.mxu0 %v5040_v0 }
0x2408   :  { %4350 = vmatmul.mubr.msk.f32.vlgmr.msra.gmra.mrb[26].mxu0 %vm64_vm2, %v2512_v4 }
0x2409   :  { %4665 = vmatpush3.bf16.msra.mxu0 %v5387_v60  ;;  %4371 = vmatprep.mubr.msk.f32.mxu0 %vm5041_vm0, %v5042_v1 }
0x240a   :  { %4666 = vmatprep.subr.bf16.mxu0 %v5040_v0 }
0x240d   :  { %4668 = vmatpush3.bf16.msra.mxu0 %v5392_v2 }
0x240e   :  { %4675 = vmatprep.subr.bf16.mxu0 %v5040_v0 }
0x2410   :  { %4372 = vmatmul.mubr.msk.f32.vlgmr.msra.gmra.mrb[28].mxu0 %vm64_vm2, %v2662_v8 }
0x2411   :  { %4677 = vmatpush3.bf16.msra.mxu0 %v5387_v60  ;;  %4393 = vmatprep.mubr.msk.f32.mxu0 %vm5041_vm0, %v5042_v1 }
0x2412   :  { %4678 = vmatprep.subr.bf16.mxu0 %v5040_v0 }
0x2415   :  { %4680 = vmatpush3.bf16.msra.mxu0 %v5392_v2 }
0x2416   :  { %4687 = vmatprep.subr.bf16.mxu0 %v5040_v0 }
0x24cb   :  { %v2212_v10 = vpop.f32.mrb[22].mxu0 }
0x24cc   :  { %v2216_v11 = vadd.f32 %v2212_v10, %v2143_v9  ;;  %v4307_v12 = vpop.f32.mrb[23].mxu0 }
0x24ce   :  { %4859 = vtanh.f32 %v2216_v11  ;;  %v3827_v24 = vmul.f32 -1.442695, %v2216_v11 }
0x24d0   :  { %4861 = vpow2.f32 %v3827_v24 }
0x24d3   :  { %v2432_v14 = vpop.f32.mrb[24].mxu0 }
0x24d4   :  { %v2433_v15 = vadd.f32 %v5423_v13, %v2432_v14  ;;  %v4329_v16 = vpop.f32.mrb[25].mxu0 }
0x24d6   :  { %2436 = vst [vmem:[#allocation3] sm:$0x3] %v2433_v15 }
0x24d8   :  { %v4860_v17 = vpop.eup %4859 }
0x24d9   :  { %2226 = vrot.lane.b32.xlu0 %v4860_v17, %s5037_s1 }
0x24da   :  { %v4862_v25 = vpop.eup %4861 }
0x24db   :  { %v2582_v18 = vpop.f32.mrb[26].mxu0  ;;  %v2220_v26 = vadd.f32 1.0, %v4862_v25 }
0x24dc   :  { %v2583_v19 = vadd.f32 %v5423_v13, %v2582_v18  ;;  %v4351_v20 = vpop.f32.mrb[27].mxu0 }
0x24dd   :  { %4863 = vrcp.f32 %v2220_v26  ;;  %v2967_v56 = vld [vmem:[#allocation3] sm:$0x3] }
0x24de   :  { %2586 = vst [vmem:[#allocation3 + $0x4] sm:$0x3] %v2583_v19 }
0x24e3   :  { %v2732_v21 = vpop.f32.mrb[28].mxu0 }
0x24e4   :  { %v2733_v22 = vadd.f32 %v5423_v13, %v2732_v21  ;;  %v4373_v23 = vpop.f32.mrb[29].mxu0 }
0x24e6   :  { %2736 = vst [vmem:[#allocation3 + $0x8] sm:$0x3] %v2733_v22 }
0x24e7   :  { %v4864_v27 = vpop.eup %4863 }
0x24e8   :  { %v2224_v30 = vmul.f32 %v4864_v27, %v5382_v54 }
0x254b   :  { %v2227_v28 = vpop.permute.xlu0 %2226 }
0x254c   :  { %v2229_v29 = vmul.f32 %v4864_v27, %v2227_v28 }
0x254e   :  { %2231 = vrot.lane.b32.xlu1 %v2229_v29, %s5037_s1 }
0x25c0   :  { %v2232_v31 = vpop.permute.xlu1 %2231 }
0x25c1   :  { %v5431_v32 = vadd.f32 %v2232_v31, %v2224_v30 }
0x25c3   :  { %4865 = vtanh.f32 %v5431_v32 }
0x25cd   :  { %v4866_v34 = vpop.eup %4865 }
0x25ce   :  { %2237 = vrot.lane.b32.xlu0 %v4866_v34, %s5037_s1 }
0x2640   :  { %v2238_v35 = vpop.permute.xlu0 %2237 }
0x2641   :  { %v2240_v36 = vmul.f32 %v4864_v27, %v2238_v35 }
0x2643   :  { %2242 = vrot.lane.b32.xlu1 %v2240_v36, %s5043_s2 }
0x26b5   :  { %v2243_v37 = vpop.permute.xlu1 %2242 }
0x26b6   :  { %2245 = vst.msk [vmem:[#allocation2 + $0xc] sm:$0x3] %vm167_vm1, %v2243_v37  ;;  %4317 = vmatmul.mubr.msk.f32.vlgmr.msra.gmra.mrb[22].mxu1 %vm64_vm2, %v2243_v37 }
0x26b7   :  { %4647 = vmatpush3.bf16.msra.mxu1 %v5387_v60  ;;  %4338 = vmatprep.mubr.msk.f32.mxu1 %vm5041_vm0, %v5042_v1 }
0x26b8   :  { %4648 = vmatprep.subr.bf16.mxu1 %v5040_v0 }
0x26bb   :  { %4650 = vmatpush3.bf16.msra.mxu1 %v5392_v2 }
0x26bc   :  { %4657 = vmatprep.subr.bf16.mxu1 %v5040_v0 }
0x26bd   :  { %v2812_v6 = vld [vmem:[#allocation2 + $0xc] sm:$0x3] }
0x26be   :  { %4339 = vmatmul.mubr.msk.f32.vlgmr.msra.gmra.mrb[24].mxu1 %vm64_vm2, %v2437_v5  ;;  %4394 = vmatmul.mubr.msk.f32.vlgmr.msra.gmra.mrb[30].mxu0 %vm64_vm2, %v2812_v6 }
0x26bf   :  { %4659 = vmatpush3.bf16.msra.mxu1 %v5387_v60  ;;  %4689 = vmatpush3.bf16.msra.mxu0 %v5443_v41 }
0x26c0   :  { %4660 = vmatprep.subr.bf16.mxu1 %v5040_v0  ;;  %4690 = vmatprep.subr.bf16.mxu0 %v5040_v0 }
0x26c1   :  { %4360 = vmatprep.mubr.msk.f32.mxu1 %vm5041_vm0, %v5042_v1  ;;  %4415 = vmatprep.mubr.msk.f32.mxu0 %vm5041_vm0, %v5042_v1 }
0x26c3   :  { %4662 = vmatpush3.bf16.msra.mxu1 %v5392_v2  ;;  %4692 = vmatpush3.bf16.msra.mxu0 %v5450_v44 }
0x26c4   :  { %4669 = vmatprep.subr.bf16.mxu1 %v5040_v0  ;;  %4699 = vmatprep.subr.bf16.mxu0 %v5040_v0 }
0x26c6   :  { %4361 = vmatmul.mubr.msk.f32.vlgmr.msra.gmra.mrb[26].mxu1 %vm64_vm2, %v2587_v45  ;;  %4416 = vmatmul.mubr.f32.vlgmr.msra.gmra.mrb[32].mxu0 %v5042_v1 }
0x26c7   :  { %4671 = vmatpush3.bf16.msra.mxu1 %v5387_v60  ;;  %4382 = vmatprep.mubr.msk.f32.mxu1 %vm5041_vm0, %v5042_v1 }
0x26c8   :  { %4672 = vmatprep.subr.bf16.mxu1 %v5040_v0  ;;  %4701 = vmatpush3.bf16.msra.mxu0 %v5443_v41 }
0x26c9   :  { %4702 = vmatprep.subr.bf16.mxu0 %v5040_v0  ;;  %4437 = vmatprep.mubr.msk.f32.mxu0 %vm5041_vm0, %v5042_v1 }
0x26cb   :  { %4674 = vmatpush3.bf16.msra.mxu1 %v5392_v2 }
0x26cc   :  { %4681 = vmatprep.subr.bf16.mxu1 %v5040_v0  ;;  %4704 = vmatpush3.bf16.msra.mxu0 %v5450_v44 }
0x26cd   :  { %4711 = vmatprep.subr.bf16.mxu0 %v5040_v0 }
0x26ce   :  { %4383 = vmatmul.mubr.msk.f32.vlgmr.msra.gmra.mrb[28].mxu1 %vm64_vm2, %v2737_v46 }
0x26cf   :  { %4683 = vmatpush3.bf16.msra.mxu1 %v5387_v60  ;;  %4404 = vmatprep.mubr.msk.f32.mxu1 %vm5041_vm0, %v5042_v1 }
0x26d0   :  { %4684 = vmatprep.subr.bf16.mxu1 %v5040_v0 }
0x26d3   :  { %4686 = vmatpush3.bf16.msra.mxu1 %v5392_v2 }
0x26d4   :  { %4693 = vmatprep.subr.bf16.mxu1 %v5040_v0 }
0x2789   :  { %v2315_v7 = vpop.f32.mrb[22].mxu1 }
0x278a   :  { %v2319_v48 = vadd.f32 %v2315_v7, %v2246_v47  ;;  %v4318_v33 = vpop.f32.mrb[23].mxu1 }
0x278c   :  { %4867 = vtanh.f32 %v2319_v48  ;;  %v3829_v4 = vmul.f32 -1.442695, %v2319_v48 }
0x2791   :  { %v2507_v49 = vpop.f32.mrb[24].mxu1  ;;  %v2882_v50 = vpop.f32.mrb[30].mxu0 }
0x2792   :  { %v2508_v51 = vadd.f32 %v5423_v13, %v2507_v49  ;;  %v4340_v52 = vpop.f32.mrb[25].mxu1  ;;  %v2883_v38 = vadd.f32 %v5423_v13, %v2882_v50  ;;  %v4395_v53 = vpop.f32.mrb[31].mxu0 }
0x2794   :  { %2511 = vst [vmem:[#allocation3 + $0x2] sm:$0x3] %v2508_v51  ;;  %2886 = vst [vmem:[#allocation3 + $0xc] sm:$0x3] %v2883_v38 }
0x2796   :  { %v4868_v54 = vpop.eup %4867 }
0x2797   :  { %2329 = vrot.lane.b32.xlu0 %v4868_v54, %s5037_s1  ;;  %v3164_v54 = vld [vmem:[#allocation3 + $0x4] sm:$0x3] }
0x2799   :  { %v2657_v55 = vpop.f32.mrb[26].mxu1  ;;  %v3034_v57 = vpop.f32.mrb[32].mxu0 }
0x279a   :  { %v2658_v58 = vadd.f32 %v5423_v13, %v2657_v55  ;;  %v3038_v59 = vadd.f32 %v3034_v57, %v2967_v56  ;;  %v4362_v60 = vpop.f32.mrb[27].mxu1  ;;  %v4417_v61 = vpop.f32.mrb[33].mxu0 }
0x279b   :  { %v3063_v40 = vld [vmem:[#allocation3 + $0x2] sm:$0x3] }
0x279c   :  { %2661 = vst [vmem:[#allocation3 + $0x6] sm:$0x3] %v2658_v58  ;;  %4869 = vtanh.f32 %v3038_v59  ;;  %v3840_v9 = vmul.f32 -1.442695, %v3038_v59 }
0x279d   :  { %4871 = vpow2.f32 %v3829_v4 }
0x279e   :  { %4873 = vpow2.f32 %v3840_v9 }
0x27a1   :  { %v2807_v62 = vpop.f32.mrb[28].mxu1 }
0x27a2   :  { %v2808_v63 = vadd.f32 %v5423_v13, %v2807_v62  ;;  %v4384_v2 = vpop.f32.mrb[29].mxu1 }
0x27a4   :  { %2811 = vst [vmem:[#allocation3 + $0xa] sm:$0x3] %v2808_v63 }
0x27a6   :  { %v4870_v3 = vpop.eup %4869 }
0x27a7   :  { %3048 = vrot.lane.b32.xlu1 %v4870_v3, %s5037_s1  ;;  %v4872_v8 = vpop.eup %4871 }
0x27a8   :  { %v2323_v10 = vadd.f32 1.0, %v4872_v8  ;;  %v4874_v11 = vpop.eup %4873 }
0x27a9   :  { %v3042_v16 = vadd.f32 1.0, %v4874_v11 }
0x27aa   :  { %4875 = vrcp.f32 %v2323_v10 }
0x27ab   :  { %4877 = vrcp.f32 %v3042_v16 }
0x27b4   :  { %v4876_v12 = vpop.eup %4875 }
0x27b5   :  { %v4878_v17 = vpop.eup %4877  ;;  %v2327_v20 = vmul.f32 %v4876_v12, %v5431_v32 }
0x27b6   :  { %v3046_v24 = vmul.f32 0.0, %v4878_v17 }
0x2809   :  { %v2330_v14 = vpop.permute.xlu0 %2329 }
0x280a   :  { %v2332_v15 = vmul.f32 %v4876_v12, %v2330_v14  ;;  %v3265_v14 = vld [vmem:[#allocation3 + $0x6] sm:$0x3] }
0x280c   :  { %2334 = vrot.lane.b32.xlu0 %v2332_v15, %s5037_s1 }
0x2819   :  { %v3049_v18 = vpop.permute.xlu1 %3048 }
0x281a   :  { %v3051_v19 = vmul.f32 %v4878_v17, %v3049_v18 }
0x281c   :  { %3053 = vrot.lane.b32.xlu1 %v3051_v19, %s5037_s1 }
0x287e   :  { %v2335_v21 = vpop.permute.xlu0 %2334 }
0x287f   :  { %v2337_v22 = vadd.f32 %v2335_v21, %v2327_v20 }
0x2881   :  { %4879 = vtanh.f32 %v2337_v22 }
0x288b   :  { %v4880_v23 = vpop.eup %4879 }
0x288c   :  { %2340 = vrot.lane.b32.xlu0 %v4880_v23, %s5037_s1 }
0x288e   :  { %v3054_v25 = vpop.permute.xlu1 %3053 }
0x288f   :  { %v3056_v26 = vadd.f32 %v3054_v25, %v3046_v24 }
0x2891   :  { %4881 = vtanh.f32 %v3056_v26 }
0x289b   :  { %v4882_v27 = vpop.eup %4881 }
0x289c   :  { %3059 = vrot.lane.b32.xlu1 %v4882_v27, %s5037_s1 }
0x28fe   :  { %v2341_v28 = vpop.permute.xlu0 %2340 }
0x28ff   :  { %v2343_v29 = vmul.f32 %v4876_v12, %v2341_v28 }
0x2901   :  { %2345 = vrot.lane.b32.xlu0 %v2343_v29, %s5043_s2 }
0x290e   :  { %v3060_v30 = vpop.permute.xlu1 %3059 }
0x290f   :  { %v3062_v31 = vmul.f32 %v4878_v17, %v3060_v30 }
0x2911   :  { %3065 = vrot.lane.b32.xlu1 %v3062_v31, %s5043_s2 }
0x2973   :  { %v2346_v32 = vpop.permute.xlu0 %2345 }
0x2974   :  { %2348 = vst.msk [vmem:[#allocation2 + $0xe] sm:$0x3] %vm167_vm1, %v2346_v32  ;;  %v3366_v32 = vld [vmem:[#allocation3 + $0x8] sm:$0x3] }
0x297b   :  { %v2887_v34 = vld [vmem:[#allocation2 + $0xe] sm:$0x3] }
0x297c   :  { %4405 = vmatmul.mubr.msk.f32.vlgmr.msra.gmra.mrb[30].mxu1 %vm64_vm2, %v2887_v34 }
0x297d   :  { %4695 = vmatpush3.bf16.msra.mxu1 %v5443_v41  ;;  %4426 = vmatprep.mubr.msk.f32.mxu1 %vm5041_vm0, %v5042_v1 }
0x297e   :  { %4696 = vmatprep.subr.bf16.mxu1 %v5040_v0 }
0x2981   :  { %4698 = vmatpush3.bf16.msra.mxu1 %v5450_v44 }
0x2982   :  { %4705 = vmatprep.subr.bf16.mxu1 %v5040_v0 }
0x2983   :  { %v3066_v35 = vpop.permute.xlu1 %3065 }
0x2984   :  { %4427 = vmatmul.mubr.msk.f32.vlgmr.msra.gmra.mrb[32].mxu1 %vm64_vm2, %v3066_v35 }
0x2985   :  { %4707 = vmatpush3.bf16.msra.mxu1 %v5443_v41  ;;  %4448 = vmatprep.mubr.msk.f32.mxu1 %vm5041_vm0, %v5042_v1 }
0x2986   :  { %4708 = vmatprep.subr.bf16.mxu1 %v5040_v0 }
0x2989   :  { %4710 = vmatpush3.bf16.msra.mxu1 %v5450_v44 }
0x298a   :  { %4717 = vmatprep.subr.bf16.mxu1 %v5040_v0 }
0x2a4f   :  { %v2957_v36 = vpop.f32.mrb[30].mxu1 }
0x2a50   :  { %v2958_v37 = vadd.f32 %v5423_v13, %v2957_v36  ;;  %v4406_v39 = vpop.f32.mrb[31].mxu1 }
0x2a52   :  { %2961 = vst [vmem:[#allocation3 + $0xe] sm:$0x3] %v2958_v37 }
0x2a57   :  { %v3135_v42 = vpop.f32.mrb[32].mxu1 }
0x2a58   :  { %v3139_v43 = vadd.f32 %v3135_v42, %v3063_v40  ;;  %v4428_v5 = vpop.f32.mrb[33].mxu1 }
0x2a5a   :  { %4883 = vtanh.f32 %v3139_v43  ;;  %v3842_v45 = vmul.f32 -1.442695, %v3139_v43 }
0x2a5c   :  { %4885 = vpow2.f32 %v3842_v45 }
0x2a64   :  { %v4884_v6 = vpop.eup %4883 }
0x2a65   :  { %3149 = vrot.lane.b32.xlu0 %v4884_v6, %s5037_s1 }
0x2a66   :  { %v4886_v46 = vpop.eup %4885 }
0x2a67   :  { %v3143_v47 = vadd.f32 1.0, %v4886_v46 }
0x2a69   :  { %4887 = vrcp.f32 %v3143_v47 }
0x2a73   :  { %v4888_v7 = vpop.eup %4887 }
0x2a74   :  { %v3147_v13 = vmul.f32 %v4888_v7, %v3056_v26 }
0x2ad7   :  { %v3150_v48 = vpop.permute.xlu0 %3149 }
0x2ad8   :  { %v3152_v33 = vmul.f32 %v4888_v7, %v3150_v48 }
0x2ada   :  { %3154 = vrot.lane.b32.xlu1 %v3152_v33, %s5037_s1 }
0x2b4c   :  { %v3155_v49 = vpop.permute.xlu1 %3154 }
0x2b4d   :  { %v3157_v50 = vadd.f32 %v3155_v49, %v3147_v13  ;;  %v3467_v49 = vld [vmem:[#allocation3 + $0xa] sm:$0x3] }
0x2b4f   :  { %4889 = vtanh.f32 %v3157_v50 }
0x2b59   :  { %v4890_v51 = vpop.eup %4889 }
0x2b5a   :  { %3160 = vrot.lane.b32.xlu0 %v4890_v51, %s5037_s1 }
0x2bcc   :  { %v3161_v52 = vpop.permute.xlu0 %3160 }
0x2bcd   :  { %v3163_v38 = vmul.f32 %v4888_v7, %v3161_v52 }
0x2bcf   :  { %3166 = vrot.lane.b32.xlu1 %v3163_v38, %s5043_s2 }
0x2c41   :  { %v3167_v53 = vpop.permute.xlu1 %3166 }
0x2c42   :  { %4438 = vmatmul.mubr.msk.f32.vlgmr.msra.gmra.mrb[34].mxu0 %vm64_vm2, %v3167_v53 }
0x2c43   :  { %4713 = vmatpush3.bf16.msra.mxu0 %v5443_v41  ;;  %4459 = vmatprep.mubr.msk.f32.mxu0 %vm5041_vm0, %v5042_v1 }
0x2c44   :  { %4714 = vmatprep.subr.bf16.mxu0 %v5040_v0 }
0x2c47   :  { %4716 = vmatpush3.bf16.msra.mxu0 %v5450_v44 }
0x2c48   :  { %4723 = vmatprep.subr.bf16.mxu0 %v5040_v0 }
0x2d15   :  { %v3236_v55 = vpop.f32.mrb[34].mxu0 }
0x2d16   :  { %v3240_v56 = vadd.f32 %v3236_v55, %v3164_v54  ;;  %v4439_v57 = vpop.f32.mrb[35].mxu0 }
0x2d18   :  { %4891 = vtanh.f32 %v3240_v56  ;;  %v3844_v59 = vmul.f32 -1.442695, %v3240_v56 }
0x2d1a   :  { %4893 = vpow2.f32 %v3844_v59 }
0x2d22   :  { %v4892_v58 = vpop.eup %4891 }
0x2d23   :  { %3250 = vrot.lane.b32.xlu0 %v4892_v58, %s5037_s1 }
0x2d24   :  { %v4894_v60 = vpop.eup %4893 }
0x2d25   :  { %v3244_v61 = vadd.f32 1.0, %v4894_v60 }
0x2d27   :  { %4895 = vrcp.f32 %v3244_v61 }
0x2d31   :  { %v4896_v62 = vpop.eup %4895 }
0x2d32   :  { %v3248_v3 = vmul.f32 %v4896_v62, %v3157_v50 }
0x2d95   :  { %v3251_v63 = vpop.permute.xlu0 %3250 }
0x2d96   :  { %v3253_v2 = vmul.f32 %v4896_v62, %v3251_v63 }
0x2d98   :  { %3255 = vrot.lane.b32.xlu1 %v3253_v2, %s5037_s1 }
0x2e0a   :  { %v3256_v4 = vpop.permute.xlu1 %3255 }
0x2e0b   :  { %v3258_v8 = vadd.f32 %v3256_v4, %v3248_v3 }
0x2e0d   :  { %4897 = vtanh.f32 %v3258_v8 }
0x2e17   :  { %v4898_v9 = vpop.eup %4897 }
0x2e18   :  { %3261 = vrot.lane.b32.xlu0 %v4898_v9, %s5037_s1 }
0x2e8a   :  { %v3262_v10 = vpop.permute.xlu0 %3261 }
0x2e8b   :  { %v3264_v11 = vmul.f32 %v4896_v62, %v3262_v10  ;;  %v3568_v62 = vld [vmem:[#allocation3 + $0xc] sm:$0x3] }
0x2e8d   :  { %3267 = vrot.lane.b32.xlu1 %v3264_v11, %s5043_s2 }
0x2eff   :  { %v3268_v12 = vpop.permute.xlu1 %3267 }
0x2f00   :  { %4449 = vmatmul.mubr.msk.f32.vlgmr.msra.gmra.mrb[34].mxu1 %vm64_vm2, %v3268_v12 }
0x2f01   :  { %4719 = vmatpush3.bf16.msra.mxu1 %v5443_v41  ;;  %4470 = vmatprep.mubr.msk.f32.mxu1 %vm5041_vm0, %v5042_v1 }
0x2f02   :  { %4720 = vmatprep.subr.bf16.mxu1 %v5040_v0 }
0x2f05   :  { %4722 = vmatpush3.bf16.msra.mxu1 %v5450_v44 }
0x2f06   :  { %4729 = vmatprep.subr.bf16.mxu1 %v5040_v0 }
0x2fd3   :  { %v3337_v15 = vpop.f32.mrb[34].mxu1 }
0x2fd4   :  { %v3341_v16 = vadd.f32 %v3337_v15, %v3265_v14  ;;  %v4450_v17 = vpop.f32.mrb[35].mxu1 }
0x2fd6   :  { %4899 = vtanh.f32 %v3341_v16  ;;  %v3846_v19 = vmul.f32 -1.442695, %v3341_v16 }
0x2fd8   :  { %4901 = vpow2.f32 %v3846_v19 }
0x2fe0   :  { %v4900_v18 = vpop.eup %4899 }
0x2fe1   :  { %3351 = vrot.lane.b32.xlu0 %v4900_v18, %s5037_s1 }
0x2fe2   :  { %v4902_v20 = vpop.eup %4901 }
0x2fe3   :  { %v3345_v21 = vadd.f32 1.0, %v4902_v20 }
0x2fe5   :  { %4903 = vrcp.f32 %v3345_v21 }
0x2fef   :  { %v4904_v22 = vpop.eup %4903 }
0x2ff0   :  { %v3349_v25 = vmul.f32 %v4904_v22, %v3258_v8 }
0x3053   :  { %v3352_v23 = vpop.permute.xlu0 %3351 }
0x3054   :  { %v3354_v24 = vmul.f32 %v4904_v22, %v3352_v23 }
0x3056   :  { %3356 = vrot.lane.b32.xlu1 %v3354_v24, %s5037_s1 }
0x30c8   :  { %v3357_v26 = vpop.permute.xlu1 %3356 }
0x30c9   :  { %v3359_v27 = vadd.f32 %v3357_v26, %v3349_v25 }
0x30cb   :  { %4905 = vtanh.f32 %v3359_v27 }
0x30d5   :  { %v4906_v28 = vpop.eup %4905 }
0x30d6   :  { %3362 = vrot.lane.b32.xlu0 %v4906_v28, %s5037_s1 }
0x3148   :  { %v3363_v29 = vpop.permute.xlu0 %3362 }
0x3149   :  { %v3365_v30 = vmul.f32 %v4904_v22, %v3363_v29  ;;  %v3669_v22 = vld [vmem:[#allocation3 + $0xe] sm:$0x3] }
0x314b   :  { %3368 = vrot.lane.b32.xlu1 %v3365_v30, %s5043_s2 }
0x31bd   :  { %v3369_v31 = vpop.permute.xlu1 %3368 }
0x31be   :  { %4460 = vmatmul.mubr.msk.f32.vlgmr.msra.gmra.mrb[36].mxu0 %vm64_vm2, %v3369_v31 }
0x31bf   :  { %4725 = vmatpush3.bf16.msra.mxu0 %v5443_v41  ;;  %4481 = vmatprep.mubr.msk.f32.mxu0 %vm5041_vm0, %v5042_v1 }
0x31c0   :  { %4726 = vmatprep.subr.bf16.mxu0 %v5040_v0 }
0x31c3   :  { %4728 = vmatpush3.bf16.msra.mxu0 %v5450_v44 }
0x3291   :  { %v3438_v34 = vpop.f32.mrb[36].mxu0 }
0x3292   :  { %v3442_v35 = vadd.f32 %v3438_v34, %v3366_v32  ;;  %v4461_v36 = vpop.f32.mrb[37].mxu0 }
0x3294   :  { %4907 = vtanh.f32 %v3442_v35  ;;  %v3848_v39 = vmul.f32 -1.442695, %v3442_v35 }
0x3296   :  { %4909 = vpow2.f32 %v3848_v39 }
0x329e   :  { %v4908_v37 = vpop.eup %4907 }
0x329f   :  { %3452 = vrot.lane.b32.xlu0 %v4908_v37, %s5037_s1 }
0x32a0   :  { %v4910_v40 = vpop.eup %4909 }
0x32a1   :  { %v3446_v42 = vadd.f32 1.0, %v4910_v40 }
0x32a3   :  { %4911 = vrcp.f32 %v3446_v42 }
0x32ad   :  { %v4912_v43 = vpop.eup %4911 }
0x32ae   :  { %v3450_v45 = vmul.f32 %v4912_v43, %v3359_v27 }
0x3311   :  { %v3453_v5 = vpop.permute.xlu0 %3452 }
0x3312   :  { %v3455_v6 = vmul.f32 %v4912_v43, %v3453_v5 }
0x3314   :  { %3457 = vrot.lane.b32.xlu1 %v3455_v6, %s5037_s1 }
0x3386   :  { %v3458_v46 = vpop.permute.xlu1 %3457 }
0x3387   :  { %v3460_v47 = vadd.f32 %v3458_v46, %v3450_v45 }
0x3389   :  { %4913 = vtanh.f32 %v3460_v47 }
0x3393   :  { %v4914_v7 = vpop.eup %4913 }
0x3394   :  { %3463 = vrot.lane.b32.xlu0 %v4914_v7, %s5037_s1 }
0x3406   :  { %v3464_v48 = vpop.permute.xlu0 %3463 }
0x3407   :  { %v3466_v33 = vmul.f32 %v4912_v43, %v3464_v48 }
0x3409   :  { %3469 = vrot.lane.b32.xlu1 %v3466_v33, %s5043_s2 }
0x347b   :  { %v3470_v13 = vpop.permute.xlu1 %3469 }
0x347c   :  { %4471 = vmatmul.mubr.msk.f32.vlgmr.msra.gmra.mrb[36].mxu1 %vm64_vm2, %v3470_v13 }
0x347d   :  { %4731 = vmatpush3.bf16.msra.mxu1 %v5443_v41  ;;  %4492 = vmatprep.mubr.msk.f32.mxu1 %vm5041_vm0, %v5042_v1 }
0x347e   :  { %4732 = vmatprep.subr.bf16.mxu1 %v5040_v0 }
0x3481   :  { %4734 = vmatpush3.bf16.msra.mxu1 %v5450_v44 }
0x354f   :  { %v3539_v50 = vpop.f32.mrb[36].mxu1 }
0x3550   :  { %v3543_v51 = vadd.f32 %v3539_v50, %v3467_v49  ;;  %v4472_v52 = vpop.f32.mrb[37].mxu1 }
0x3552   :  { %4915 = vtanh.f32 %v3543_v51  ;;  %v3850_v53 = vmul.f32 -1.442695, %v3543_v51 }
0x3554   :  { %4917 = vpow2.f32 %v3850_v53 }
0x355c   :  { %v4916_v38 = vpop.eup %4915 }
0x355d   :  { %3553 = vrot.lane.b32.xlu0 %v4916_v38, %s5037_s1 }
0x355e   :  { %v4918_v54 = vpop.eup %4917 }
0x355f   :  { %v3547_v55 = vadd.f32 1.0, %v4918_v54 }
0x3561   :  { %4919 = vrcp.f32 %v3547_v55 }
0x356b   :  { %v4920_v41 = vpop.eup %4919 }
0x356c   :  { %v3551_v0 = vmul.f32 %v4920_v41, %v3460_v47 }
0x35cf   :  { %v3554_v56 = vpop.permute.xlu0 %3553 }
0x35d0   :  { %v3556_v1 = vmul.f32 %v4920_v41, %v3554_v56 }
0x35d2   :  { %3558 = vrot.lane.b32.xlu1 %v3556_v1, %s5037_s1 }
0x3644   :  { %v3559_v44 = vpop.permute.xlu1 %3558 }
0x3645   :  { %v3561_v57 = vadd.f32 %v3559_v44, %v3551_v0 }
0x3647   :  { %4921 = vtanh.f32 %v3561_v57 }
0x3651   :  { %v4922_v58 = vpop.eup %4921 }
0x3652   :  { %3564 = vrot.lane.b32.xlu0 %v4922_v58, %s5037_s1 }
0x36c4   :  { %v3565_v59 = vpop.permute.xlu0 %3564 }
0x36c5   :  { %v3567_v60 = vmul.f32 %v4920_v41, %v3565_v59 }
0x36c7   :  { %3570 = vrot.lane.b32.xlu1 %v3567_v60, %s5043_s2 }
0x3739   :  { %v3571_v61 = vpop.permute.xlu1 %3570 }
0x373a   :  { %4482 = vmatmul.mubr.msk.f32.vlgmr.msra.gmra.mrb[38].mxu0 %vm64_vm2, %v3571_v61 }
0x380d   :  { %v3640_v63 = vpop.f32.mrb[38].mxu0 }
0x380e   :  { %v3644_v2 = vadd.f32 %v3640_v63, %v3568_v62  ;;  %v4483_v3 = vpop.f32.mrb[39].mxu0 }
0x3810   :  { %4923 = vtanh.f32 %v3644_v2  ;;  %v3852_v8 = vmul.f32 -1.442695, %v3644_v2 }
0x3812   :  { %4925 = vpow2.f32 %v3852_v8 }
0x381a   :  { %v4924_v4 = vpop.eup %4923 }
0x381b   :  { %3654 = vrot.lane.b32.xlu0 %v4924_v4, %s5037_s1 }
0x381c   :  { %v4926_v9 = vpop.eup %4925 }
0x381d   :  { %v3648_v10 = vadd.f32 1.0, %v4926_v9 }
0x381f   :  { %4927 = vrcp.f32 %v3648_v10 }
0x3829   :  { %v4928_v11 = vpop.eup %4927 }
0x382a   :  { %v3652_v15 = vmul.f32 %v4928_v11, %v3561_v57 }
0x388d   :  { %v3655_v12 = vpop.permute.xlu0 %3654 }
0x388e   :  { %v3657_v14 = vmul.f32 %v4928_v11, %v3655_v12 }
0x3890   :  { %3659 = vrot.lane.b32.xlu1 %v3657_v14, %s5037_s1 }
0x3902   :  { %v3660_v16 = vpop.permute.xlu1 %3659 }
0x3903   :  { %v3662_v17 = vadd.f32 %v3660_v16, %v3652_v15 }
0x3905   :  { %4929 = vtanh.f32 %v3662_v17 }
0x390f   :  { %v4930_v18 = vpop.eup %4929 }
0x3910   :  { %3665 = vrot.lane.b32.xlu0 %v4930_v18, %s5037_s1 }
0x3982   :  { %v3666_v19 = vpop.permute.xlu0 %3665 }
0x3983   :  { %v3668_v20 = vmul.f32 %v4928_v11, %v3666_v19 }
0x3985   :  { %3671 = vrot.lane.b32.xlu1 %v3668_v20, %s5043_s2 }
0x39f7   :  { %v3672_v21 = vpop.permute.xlu1 %3671 }
0x39f8   :  { %4493 = vmatmul.mubr.msk.f32.vlgmr.msra.gmra.mrb[38].mxu1 %vm64_vm2, %v3672_v21 }
0x3acb   :  { %v3741_v23 = vpop.f32.mrb[38].mxu1 }
0x3acc   :  { %v3745_v24 = vadd.f32 %v3741_v23, %v3669_v22  ;;  %v4494_v25 = vpop.f32.mrb[39].mxu1 }
0x3ace   :  { %4931 = vtanh.f32 %v3745_v24  ;;  %v3854_v27 = vmul.f32 -1.442695, %v3745_v24 }
0x3ad0   :  { %4933 = vpow2.f32 %v3854_v27 }
0x3ad8   :  { %v4932_v26 = vpop.eup %4931 }
0x3ad9   :  { %3755 = vrot.lane.b32.xlu0 %v4932_v26, %s5037_s1 }
0x3ada   :  { %v4934_v28 = vpop.eup %4933 }
0x3adb   :  { %v3749_v29 = vadd.f32 1.0, %v4934_v28 }
0x3add   :  { %4935 = vrcp.f32 %v3749_v29 }
0x3ae7   :  { %v4936_v30 = vpop.eup %4935 }
0x3ae8   :  { %v3753_v34 = vmul.f32 %v4936_v30, %v3662_v17 }
0x3b4b   :  { %v3756_v31 = vpop.permute.xlu0 %3755 }
0x3b4c   :  { %v3758_v32 = vmul.f32 %v4936_v30, %v3756_v31 }
0x3b4e   :  { %3760 = vrot.lane.b32.xlu1 %v3758_v32, %s5037_s1 }
0x3bc0   :  { %v3761_v35 = vpop.permute.xlu1 %3760 }
0x3bc1   :  { %v3763_v36 = vadd.f32 %v3761_v35, %v3753_v34 }
0x3bc3   :  { %4937 = vtanh.f32 %v3763_v36 }
0x3bcd   :  { %v4938_v37 = vpop.eup %4937 }
0x3bce   :  { %3766 = vrot.lane.b32.xlu0 %v4938_v37, %s5037_s1 }
0x3c40   :  { %v3767_v39 = vpop.permute.xlu0 %3766 }
0x3c41   :  { %v3769_v40 = vmul.f32 %v4936_v30, %v3767_v39 }
0x3c43   :  { %3771 = vrot.lane.b32.xlu1 %v3769_v40, %s5043_s2 }
0x3cb5   :  { %v3772_v42 = vpop.permute.xlu1 %3771 }
0x3cb6   :  { %3774 = vst.msk [vmem:[#allocation10] sm:$0x3] %vm167_vm1, %v3772_v42 }
0x3cb7   :  { %5016 = shalt.err (!%p5013_p0)
}
0x3cb8   :  { %s5017_s9 = scalar_lea.hbm %s5585_s4, 32 }
0x3cb9   :  { %p5018_p1 = scmp.ne.s32.totalorder %s5585_s4, %s5017_s9  ;;  %p5021_p2 = scmp.lt.u32.totalorder %s5017_s9, %s5585_s4 }
0x3cbb   :  { %p5023_p3 = pnand %p5021_p2, %p5018_p1 }
0x3cbd   :  { %5026 = shalt.err (!%p5023_p3)
}
0x3cbe   :  { %3784 = dma.vmem_to_hbm [thread:$0]  %s3782_s5, 32, %s5585_s4, [#allocation6]  }
0x3cbf   :  { %5031 = dma.done.wait [#allocation6], 32  }
0x3cc0   :  { %5032 = vsyncadd [#allocation6], 4294967264 }
0x3cc1   :  { %3788 = vsyncpa [#allocation5], 1 }
0x3cc2   :  { %3789 = vsyncpa [#allocation8], 1 }
0x3cc3   :  { %3790 = vsyncpa [#allocation6], 1 }

</bundles_post_ra>
